<compile_context>
chip_gen: v5e
topology: v5e:2x2
jax: 0.10.0
libtpu: 0.0.40
codegen_flags: <defaults>
</compile_context>

<pallas_src>
import jax
import jax.numpy as jnp
from jax.experimental import pallas as pl
from jax.experimental.pallas import tpu as pltpu


def relu_conv1x1_kernel(x_ref, w_ref, o_ref, xs_ref):
    # x_ref : (Cin, HW)  f32  activation slab (resident across Cout tiles)
    # w_ref : (tm, Cin)  bf16 weight row tile
    # o_ref : (tm, HW)   f32  output tile
    # xs_ref: (Cin, HW)  bf16 VMEM scratch = relu(x) cast to bf16
    #
    # The inner (arbitrary) Cout axis is iterated fully and in-order on every
    # TensorCore, so gating the scratch init on program_id(2) == 0 is correct
    # even when the outer 'parallel' axes are sharded across megacore.
    @pl.when(pl.program_id(2) == 0)
    def _():
        xs_ref[...] = jnp.maximum(x_ref[...], 0.0).astype(jnp.bfloat16)

    # 1x1 conv == matmul on the MXU; bf16 x bf16 -> f32 accumulation.
    o_ref[...] = jnp.dot(
        w_ref[...], xs_ref[...], preferred_element_type=jnp.float32
    ).astype(o_ref.dtype)


def relu_conv1x1(x_nchw: jax.Array, weight_oihw: jax.Array,
                 *, tm: int = 256, n_outer: int = 2) -> jax.Array:
    """ReLU followed by a 1x1 conv (stride 1, no bias). NCHW in / NCHW out (f32)."""
    N, Cin, H, W = x_nchw.shape
    Cout = weight_oihw.shape[0]
    assert weight_oihw.shape == (Cout, Cin, 1, 1)
    assert Cout % tm == 0
    num_tiles = Cout // tm
    if num_tiles % n_outer != 0:
        n_outer = 1
    n_inner = num_tiles // n_outer

    HW = H * W
    # Free reshapes (no data movement / no transposes).
    x3d = x_nchw.reshape(N, Cin, HW)
    # Cast weights to bf16 once in the wrapper (halves the weight HBM stream,
    # single-pass MXU instead of multi-pass f32).
    w2d = weight_oihw.reshape(Cout, Cin).astype(jnp.bfloat16)

    flops = 2 * N * Cout * Cin * HW
    bytes_accessed = (
        x3d.size * jnp.dtype(x_nchw.dtype).itemsize
        + w2d.size * 2
        + N * Cout * HW * jnp.dtype(x_nchw.dtype).itemsize
    )

    out3d = pl.pallas_call(
        relu_conv1x1_kernel,
        out_shape=jax.ShapeDtypeStruct((N, Cout, HW), x_nchw.dtype),
        grid_spec=pltpu.PrefetchScalarGridSpec(
            num_scalar_prefetch=0,
            grid=(N, n_outer, n_inner),
            in_specs=[
                # Full activation slab per batch element; block index constant
                # across both Cout axes -> DMA'd once, stays resident in VMEM.
                pl.BlockSpec((None, Cin, HW), lambda n, o, i: (n, 0, 0)),
                # Weight row tile (tm, Cin) in bf16.
                pl.BlockSpec((tm, Cin), lambda n, o, i: (o * n_inner + i, 0)),
            ],
            out_specs=pl.BlockSpec(
                (None, tm, HW), lambda n, o, i: (n, o * n_inner + i, 0)
            ),
            scratch_shapes=[pltpu.VMEM((Cin, HW), jnp.bfloat16)],
        ),
        compiler_params=pltpu.CompilerParams(
            dimension_semantics=("parallel", "parallel", "arbitrary"),
        ),
        cost_estimate=pl.CostEstimate(
            flops=flops, transcendentals=0, bytes_accessed=bytes_accessed
        ),
    )(x3d, w2d)

    # (N, Cout, H*W) -> NCHW, free reshape.
    return out3d.reshape(N, Cout, H, W)


if __name__ == "__main__":
    key = jax.random.PRNGKey(0)
    kx, kw = jax.random.split(key)

    # Shapes implied by the module: x [1, 256, 28, 28], weight [1024, 256, 1, 1]
    N, Cin, H, W, Cout = 1, 256, 28, 28, 1024
    x = jax.random.normal(kx, (N, Cin, H, W), dtype=jnp.float32)
    # Deterministic synthetic weights (kaiming-ish scale for a 1x1 conv).
    weight = jax.random.normal(kw, (Cout, Cin, 1, 1), dtype=jnp.float32) * (2.0 / Cin) ** 0.5

    out = relu_conv1x1(x, weight)
    jax.block_until_ready(out)
    assert out.shape == (N, Cout, H, W), out.shape
    assert out.dtype == jnp.float32

    # Tight check against a reference using the SAME bf16 operands with f32
    # accumulation (what the kernel computes).
    xr = jnp.maximum(x, 0.0).astype(jnp.bfloat16).astype(jnp.float32)
    wr = weight.reshape(Cout, Cin).astype(jnp.bfloat16).astype(jnp.float32)
    ref_bf16 = jnp.einsum(
        "nchw,oc->nohw", xr, wr, precision=jax.lax.Precision.HIGHEST
    )
    assert jnp.allclose(out, ref_bf16, atol=1e-3, rtol=1e-3)

    # Loose sanity check against the true f32 module semantics (bf16 operand
    # rounding absorbed by the tolerance).
    ref_f32 = jnp.einsum(
        "nchw,oc->nohw",
        jnp.maximum(x, 0.0),
        weight.reshape(Cout, Cin),
        precision=jax.lax.Precision.HIGHEST,
    )
    assert jnp.allclose(out, ref_f32, atol=5e-2, rtol=5e-2)

    print("KERNEL_OK")
</pallas_src>

<mosaic_0001>
module attributes {stable_mosaic.version = 11 : i64} {
  func.func @relu_conv1x1_kernel(%arg0: i32, %arg1: i32, %arg2: i32, %arg3: memref<1x256x784xf32, #tpu.memory_space<vmem>>, %arg4: memref<256x256xbf16, #tpu.memory_space<vmem>>, %arg5: memref<1x256x784xf32, #tpu.memory_space<vmem>>, %arg6: memref<256x784xbf16, #tpu.memory_space<vmem>>) attributes {dimension_semantics = [#tpu.dimension_semantics<parallel>, #tpu.dimension_semantics<parallel>, #tpu.dimension_semantics<arbitrary>], iteration_bounds = array<i64: 1, 2, 2>, scalar_prefetch = 0 : i64, scratch_operands = 1 : i64, tpu.core_type = #tpu.core_type<tc>, window_params = [{transform_indices = @transform_0, window_bounds = array<i64: 1, 256, 784>}, {transform_indices = @transform_1, window_bounds = array<i64: 256, 256>}, {transform_indices = @transform_2, window_bounds = array<i64: 1, 256, 784>}]} {
    %c0_i32 = arith.constant 0 : i32
    %0 = arith.cmpi eq, %arg2, %c0_i32 : i32
    %1 = arith.extui %0 : i1 to i32
    %c0_i32_0 = arith.constant 0 : i32
    %2 = arith.cmpi ne, %1, %c0_i32_0 : i32
    scf.if %2 {
      %c0_7 = arith.constant 0 : index
      %c0_8 = arith.constant 0 : index
      %c0_9 = arith.constant 0 : index
      %9 = vector.load %arg3[%c0_7, %c0_8, %c0_9] : memref<1x256x784xf32, #tpu.memory_space<vmem>>, vector<1x256x784xf32>
      %10 = vector.shape_cast %9 : vector<1x256x784xf32> to vector<256x784xf32>
      %cst_10 = arith.constant 0.000000e+00 : f32
      %11 = vector.broadcast %cst_10 : f32 to vector<256x784xf32>
      %12 = arith.maximumf %10, %11 : vector<256x784xf32>
      %13 = arith.truncf %12 : vector<256x784xf32> to vector<256x784xbf16>
      %c0_11 = arith.constant 0 : index
      %c0_12 = arith.constant 0 : index
      %14 = vector.load %arg6[%c0_11, %c0_12] : memref<256x784xbf16, #tpu.memory_space<vmem>>, vector<256x784xbf16>
      tpu.vector_store %arg6[%c0_11, %c0_12], %13 {strides = array<i32>} : memref<256x784xbf16, #tpu.memory_space<vmem>>, vector<256x784xbf16>,
    } else {
    }
    %c0 = arith.constant 0 : index
    %c0_1 = arith.constant 0 : index
    %3 = vector.load %arg4[%c0, %c0_1] : memref<256x256xbf16, #tpu.memory_space<vmem>>, vector<256x256xbf16>
    %c0_2 = arith.constant 0 : index
    %c0_3 = arith.constant 0 : index
    %4 = vector.load %arg6[%c0_2, %c0_3] : memref<256x784xbf16, #tpu.memory_space<vmem>>, vector<256x784xbf16>
    %cst = arith.constant dense<0.000000e+00> : vector<256x784xf32>
    %5 = tpu.matmul %3, %4, %cst {dimension_numbers = #tpu.dot_dimension_numbers<[1], [0], [0], [1], [0, 0, 1, 1], [], []>} : vector<256x256xbf16>, vector<256x784xbf16>, vector<256x784xf32> -> vector<256x784xf32>
    %c0_4 = arith.constant 0 : index
    %c0_5 = arith.constant 0 : index
    %c0_6 = arith.constant 0 : index
    %6 = vector.load %arg5[%c0_4, %c0_5, %c0_6] : memref<1x256x784xf32, #tpu.memory_space<vmem>>, vector<1x256x784xf32>
    %7 = vector.shape_cast %6 : vector<1x256x784xf32> to vector<256x784xf32>
    %8 = vector.shape_cast %5 : vector<256x784xf32> to vector<1x256x784xf32>
    tpu.vector_store %arg5[%c0_4, %c0_5, %c0_6], %8 {strides = array<i32>} : memref<1x256x784xf32, #tpu.memory_space<vmem>>, vector<1x256x784xf32>,
    return
  }
  func.func @transform_0(%arg0: i32, %arg1: i32, %arg2: i32) -> (i32, i32, i32) {
    %c0_i32 = arith.constant 0 : i32
    %c0_i32_0 = arith.constant 0 : i32
    %c0_i32_1 = arith.constant 0 : i32
    return %arg0, %c0_i32, %c0_i32_0 : i32, i32, i32
  }
  func.func @transform_1(%arg0: i32, %arg1: i32, %arg2: i32) -> (i32, i32) {
    %c2_i32 = arith.constant 2 : i32
    %0 = arith.muli %arg1, %c2_i32 : i32
    %1 = arith.addi %0, %arg2 : i32
    %c0_i32 = arith.constant 0 : i32
    %c0_i32_0 = arith.constant 0 : i32
    return %1, %c0_i32 : i32, i32
  }
  func.func @transform_2(%arg0: i32, %arg1: i32, %arg2: i32) -> (i32, i32, i32) {
    %c2_i32 = arith.constant 2 : i32
    %0 = arith.muli %arg1, %c2_i32 : i32
    %1 = arith.addi %0, %arg2 : i32
    %c0_i32 = arith.constant 0 : i32
    %c0_i32_0 = arith.constant 0 : i32
    return %arg0, %1, %c0_i32 : i32, i32, i32
  }
}

</mosaic_0001>

<bundles_post_ra>
// kernel: tpu_custom_call.1
= control target key start
LH: loop header
LB: loop body
LE: loop exit
PB: predicated region body
PF: predicated region fallthrough
CT: control target
= control target key end

     0   :  { %7 = vsyncpa [#allocation4], 0  ;;  %s5818_s0 = inlined_call_operand.vmem [shape: f32[1,256,784], index: 0, kind: input, shape index: {}]   ;;  %s5819_s1 = inlined_call_operand.hbm [shape: bf16[1024,256], index: 1, kind: input, shape index: {}]   ;;  %s5820_s2 = inlined_call_operand.vmem [shape: f32[1,1024,784], index: 2, kind: output, shape index: {}]  }
   0x1   :  { %9 = vsyncpa [#allocation4 + $0x1], 0  ;;  %s4390_s9 = smov 0   ;;  %s4392_s10 = smov 0  }
   0x2   :  { %s4394_s11 = smov 0   ;;  %s4396_s12 = smov 0  }
   0x3   :  { %s4398_s13 = smov 0   ;;  %s4400_s14 = smov 0  }
   0x4   :  { %s4402_s15 = smov 0   ;;  %s4404_s16 = smov 0  }
   0x5 LB: > { %s3441_s17 = sadd.s32 4294967295, %s4371_s16   ;;  %s27_s18 = sadd.s32 1, %s4363_s14  ;;  %s4371_s16 = sphi %s4404_s16, %s15_s16   ;;  %s4367_s15 = sphi %s4402_s15, %s5829_s15   ;;  %s4363_s14 = sphi %s4400_s14, %s5828_s14   ;;  %s4359_s13 = sphi %s4398_s13, %s5827_s13   ;;  %s4355_s12 = sphi %s4396_s12, %s5826_s12   ;;  %s4351_s11 = sphi %s4394_s11, %s5825_s11   ;;  %s4347_s10 = sphi %s4392_s10, %s5824_s10   ;;  %s4343_s9 = sphi %s4390_s9, %s5823_s9  }
   0x6   : > { %p28_p0 = scmp.ge.s32.totalorder %s27_s18, 2  ;;  %s30_s19 = sadd.s32 1, %s4367_s15 }
   0x7   : > { %s3443_s20 = sshll.u32 %s4367_s15, 1  ;;  %s71_s21 = sadd.s32 1, %s4351_s11 }
   0x8   : > { %s5831_s18 = smov (%p28_p0, %s27_s18), 0  ;;  %s5833_s19 = smov (!%p28_p0, %s30_s19), %s4367_s15 }
   0x9   : > { %s65_s22 = sadd.s32 %s4363_s14, %s3443_s20  ;;  %p78_p1 = scmp.ne.s32.totalorder %s4351_s11, %s4347_s10 }
   0xa   : > { %p32_p2 = scmp.ge.s32.totalorder %s5833_s19, 2  ;;  %p79_p3 = scmp.eq.s32.totalorder %s4371_s16, 0 }
   0xb   : > { %p84_p4 = scmp.ne.s32.totalorder %s4347_s10, %s4343_s9  ;;  %p85_p5 = scmp.eq.s32.totalorder %s3441_s17, 0 }
   0xc   : > { %s5835_s19 = smov (%p32_p2, %s5833_s19), 0  ;;  %p4443_p6 = por %p79_p3, %p78_p1 }
   0xd   : > { %p4447_p7 = por %p85_p5, %p84_p4  ;;  %s3444_s25 = sshll.u32 %s5835_s19, 1 }
   0xe   : > { %s67_s26 = sadd.s32 %s3444_s25, %s5831_s18  ;;  %p4208_p8 = scmp.lt.s32.totalorder %s4371_s16, 4 }
   0xf   : > { %s68_s27 = ssub.s32 %s65_s22, %s67_s26  ;;  %s148_s28 = sand.u32 1, %s4351_s11  }
  0x10   : > { %p69_p9 = scmp.eq.s32.totalorder %s68_s27, 0  ;;  %s3450_s29 = sshll.u32 %s148_s28, 8 }
  0x11   : > { %s4040_s30 = sshll.u32 %s65_s22, 8  ;;  %s152_s8 = scalar_lea.vmem [#allocation3], %s3450_s29 }
  0x12   : > { %s4456_s3 = scalar_select %p69_p9, %s4351_s11, %s71_s21  }
  0x13   : > { %s160_s6 = scalar_lea.hbm %s5819_s1, %s4040_s30  ;;  %s163_s9 = sshll.u32 %s152_s8, 4  ;;  %s164_s9 = int_to_ptr.vmem [resolvable:$true] %s163_s9 }
  0x14   : > { %s161_s7 = sshll.u32 %s160_s6, 4  ;;  %p4205_p10 = pnand %p4208_p8, %p4443_p6  ;;  %s162_s7 = int_to_ptr.hbm [resolvable:$true] %s161_s7 }
  0x15   : > { %p3455_p11 = scmp.ge.s32.totalorder %s4371_s16, 1  ;;  %p171_p12 = scmp.lt.s32.totalorder %s4371_s16, 5 }
  0x16   : > { %s149_s17 = scalar_lea.sflag [#allocation4], %s148_s28  ;;  %s4373_s20 = smov 128  }
  0x17   : > { %s4374_s25 = smov 8   ;;  %p172_p13 = pnand %p3455_p11, %p171_p12 }
  0x18   : > { %4207 = dma.hbm_to_vmem [thread:$0]  (!%p4205_p10), %s162_s7, 4096, %s164_s9, %s149_s17, %s4373_s20, %s4373_s20, %s4374_s25  }
  0x19   : > { %175 = sbr.rel (%p172_p13) target bundleno = 1233 (0x4d1), region = 28  ;;  %s177_s21 = sand.u32 (!%p172_p13), 1, %s4347_s10  }
  0x1a   : > { %s3456_s22 = sshll.u32 (!%p172_p13), %s177_s21, 8  ;;  %s178_s26 = scalar_lea.sflag (!%p172_p13), [#allocation4], %s177_s21 }
  0x1b   : > { %s4468_s27 = scalar_lea.vmem (!%p172_p13), [#allocation3], %s3456_s22 }
  0x1e   : > { %4338 = dma.done.wait (%p4447_p7), %s178_s26, 4096  }
  0x1f   : > { %4340 = vsyncadd (%p4447_p7), %s178_s26, 4294963200  ;;  %s3457_s23 = sshll.u32 %s4359_s13, 1  ;;  %p3460_p1 = scmp.ne.s32.totalorder %s4355_s12, 0 }
  0x20   : > { %s224_s28 = sadd.s32 %s4355_s12, %s3457_s23 }
  0x21   : > { %s3458_s29 = sshll.u32 %s224_s28, 5 }
  0x22   : > { %p228_p0 = scmp.lt.s32.totalorder %s3458_s29, 127 }
  0x23   : > { %241 = sbr.rel (%p3460_p1) target bundleno = 173 (0xad), region = 36 }
  0x24   : > { %s5837_s29 = smov (!%p228_p0, %s3458_s29), 127 }
  0x25   : > { %s4201_s30 = smul.u32 56, %s5837_s29 }
  0x27   : > { %s4479_s6 = scalar_lea.vmem %s5820_s2, %s4201_s30 }
  0x28   : > { %v242_v0 = vld [vmem:[%s5818_s0] sm:$0xff]  ;;  %v243_v1 = vld [vmem:[%s5818_s0 + $0x8] sm:$0xff]  ;;  %v244_v2 = vld [vmem:[%s5818_s0 + $0x10] sm:$0xff]  ;;  %vm821_vm0 = vcmask 125952  }
  0x29   : > { %v466_v3 = vmax.f32 %v242_v0, 0.0  ;;  %v467_v4 = vmax.f32 %v243_v1, 0.0  ;;  %v245_v5 = vld [vmem:[%s5818_s0 + $0x18] sm:$0xff]  ;;  %v468_v6 = vmax.f32 %v244_v2, 0.0  ;;  %v246_v7 = vld [vmem:[%s5818_s0 + $0x20] sm:$0xff]  ;;  %v247_v8 = vld [vmem:[%s5818_s0 + $0x28] sm:$0xff] }
  0x2a   : > { %v469_v9 = vmax.f32 %v245_v5, 0.0  ;;  %v470_v10 = vmax.f32 %v246_v7, 0.0  ;;  %v471_v11 = vmax.f32 %v247_v8, 0.0  ;;  %v248_v12 = vld [vmem:[%s5818_s0 + $0x30] sm:$0xff]  ;;  %v249_v13 = vld [vmem:[%s5818_s0 + $0x38] sm:$0xff]  ;;  %v250_v14 = vld [vmem:[%s5818_s0 + $0x40] sm:$0xff] }
  0x2b   : > { %v690_v15 = vpack.c.bf16 %v467_v4, %v466_v3  ;;  %v472_v16 = vmax.f32 %v248_v12, 0.0  ;;  %v473_v17 = vmax.f32 %v249_v13, 0.0  ;;  %v474_v18 = vmax.f32 %v250_v14, 0.0  ;;  %v251_v19 = vld [vmem:[%s5818_s0 + $0x48] sm:$0xff]  ;;  %v252_v20 = vld [vmem:[%s5818_s0 + $0x50] sm:$0xff]  ;;  %v253_v21 = vld [vmem:[%s5818_s0 + $0x58] sm:$0xff] }
  0x2c   : > { %v691_v22 = vpack.c.bf16 %v469_v9, %v468_v6  ;;  %v692_v23 = vpack.c.bf16 %v471_v11, %v470_v10  ;;  %v475_v24 = vmax.f32 %v251_v19, 0.0  ;;  %v476_v25 = vmax.f32 %v252_v20, 0.0  ;;  %v254_v26 = vld [vmem:[%s5818_s0 + $0x60] sm:$0xff]  ;;  %v255_v27 = vld [vmem:[%s5818_s0 + $0x68] sm:$0xff]  ;;  %v256_v28 = vld [vmem:[%s5818_s0 + $0x70] sm:$0xff] }
  0x2d   : > { %818 = vst [vmem:[#allocation2] sm:$0xff] %v690_v15  ;;  %v693_v29 = vpack.c.bf16 %v472_v16, %v472_v16  ;;  %v694_v30 = vpack.c.bf16 %v474_v18, %v473_v17  ;;  %v477_v31 = vmax.f32 %v253_v21, 0.0  ;;  %v478_v32 = vmax.f32 %v254_v26, 0.0  ;;  %v257_v33 = vld [vmem:[%s5818_s0 + $0x78] sm:$0xff]  ;;  %v258_v34 = vld [vmem:[%s5818_s0 + $0x80] sm:$0xff]  ;;  %v259_v35 = vld [vmem:[%s5818_s0 + $0x88] sm:$0xff] }
  0x2e   : > { %819 = vst [vmem:[#allocation2 + $0x8] sm:$0xff] %v691_v22  ;;  %v695_v36 = vpack.c.bf16 %v476_v25, %v475_v24  ;;  %v479_v37 = vmax.f32 %v255_v27, 0.0  ;;  %v480_v38 = vmax.f32 %v256_v28, 0.0  ;;  %v481_v39 = vmax.f32 %v257_v33, 0.0  ;;  %v260_v40 = vld [vmem:[%s5818_s0 + $0x90] sm:$0xff]  ;;  %v261_v41 = vld [vmem:[%s5818_s0 + $0x98] sm:$0xff] }
  0x2f   : > { %820 = vst [vmem:[#allocation2 + $0x10] sm:$0xff] %v692_v23  ;;  %v696_v42 = vpack.c.bf16 %v478_v32, %v477_v31  ;;  %v482_v43 = vmax.f32 %v258_v34, 0.0  ;;  %v483_v44 = vmax.f32 %v259_v35, 0.0  ;;  %v484_v45 = vmax.f32 %v260_v40, 0.0  ;;  %v262_v46 = vld [vmem:[%s5818_s0 + $0xa0] sm:$0xff]  ;;  %v263_v47 = vld [vmem:[%s5818_s0 + $0xa8] sm:$0xff] }
  0x30   : > { %822 = vst.msk [vmem:[#allocation2 + $0x18] sm:$0xf] %vm821_vm0, %v693_v29  ;;  %v697_v48 = vpack.c.bf16 %v479_v37, %v479_v37  ;;  %v485_v49 = vmax.f32 %v261_v41, 0.0  ;;  %v486_v50 = vmax.f32 %v262_v46, 0.0  ;;  %v264_v51 = vld [vmem:[%s5818_s0 + $0xb0] sm:$0xff]  ;;  %v265_v52 = vld [vmem:[%s5818_s0 + $0xb8] sm:$0xff]  ;;  %v698_v53 = vpack.c.bf16 %v481_v39, %v480_v38 }
  0x31   : > { %823 = vst [vmem:[#allocation2 + $0x1c] sm:$0xff] %v694_v30  ;;  %v487_v54 = vmax.f32 %v263_v47, 0.0  ;;  %v488_v55 = vmax.f32 %v264_v51, 0.0  ;;  %v266_v56 = vld [vmem:[%s5818_s0 + $0xc0] sm:$0xff]  ;;  %v267_v57 = vld [vmem:[%s5818_s0 + $0xc8] sm:$0xff]  ;;  %v699_v58 = vpack.c.bf16 %v483_v44, %v482_v43  ;;  %v489_v59 = vmax.f32 %v265_v52, 0.0 }
  0x32   : > { %824 = vst [vmem:[#allocation2 + $0x24] sm:$0xff] %v695_v36  ;;  %v490_v60 = vmax.f32 %v266_v56, 0.0  ;;  %v268_v61 = vld [vmem:[%s5818_s0 + $0xd0] sm:$0xff]  ;;  %v269_v62 = vld [vmem:[%s5818_s0 + $0xd8] sm:$0xff]  ;;  %v270_v63 = vld [vmem:[%s5818_s0 + $0xe0] sm:$0xff]  ;;  %v700_v0 = vpack.c.bf16 %v485_v49, %v484_v45  ;;  %v491_v1 = vmax.f32 %v267_v57, 0.0  ;;  %v701_v5 = vpack.c.bf16 %v486_v50, %v486_v50 }
  0x33   : > { %825 = vst [vmem:[#allocation2 + $0x2c] sm:$0xff] %v696_v42  ;;  %v492_v2 = vmax.f32 %v268_v61, 0.0  ;;  %v271_v3 = vld [vmem:[%s5818_s0 + $0xe8] sm:$0xff]  ;;  %v272_v4 = vld [vmem:[%s5818_s0 + $0xf0] sm:$0xff]  ;;  %v493_v6 = vmax.f32 %v269_v62, 0.0  ;;  %v273_v7 = vld [vmem:[%s5818_s0 + $0xf8] sm:$0xff]  ;;  %v702_v9 = vpack.c.bf16 %v488_v55, %v487_v54 }
  0x34   : > { %826 = vst.msk [vmem:[#allocation2 + $0x34] sm:$0xf] %vm821_vm0, %v697_v48  ;;  %v274_v8 = vld [vmem:[%s5818_s0 + $0x100] sm:$0xff]  ;;  %v494_v10 = vmax.f32 %v270_v63, 0.0  ;;  %v495_v11 = vmax.f32 %v271_v3, 0.0  ;;  %v275_v12 = vld [vmem:[%s5818_s0 + $0x108] sm:$0xff]  ;;  %v703_v14 = vpack.c.bf16 %v490_v60, %v489_v59 }
  0x35   : > { %827 = vst [vmem:[#allocation2 + $0x38] sm:$0xff] %v698_v53  ;;  %v276_v13 = vld [vmem:[%s5818_s0 + $0x110] sm:$0xff]  ;;  %v496_v15 = vmax.f32 %v272_v4, 0.0  ;;  %v497_v16 = vmax.f32 %v273_v7, 0.0  ;;  %v277_v17 = vld [vmem:[%s5818_s0 + $0x118] sm:$0xff]  ;;  %v278_v18 = vld [vmem:[%s5818_s0 + $0x120] sm:$0xff]  ;;  %v704_v19 = vpack.c.bf16 %v492_v2, %v491_v1  ;;  %v705_v24 = vpack.c.bf16 %v493_v6, %v493_v6 }
  0x36   : > { %828 = vst [vmem:[#allocation2 + $0x40] sm:$0xff] %v699_v58  ;;  %v498_v20 = vmax.f32 %v274_v8, 0.0  ;;  %v499_v21 = vmax.f32 %v275_v12, 0.0  ;;  %v279_v22 = vld [vmem:[%s5818_s0 + $0x128] sm:$0xff]  ;;  %v280_v23 = vld [vmem:[%s5818_s0 + $0x130] sm:$0xff]  ;;  %v500_v25 = vmax.f32 %v276_v13, 0.0  ;;  %v706_v28 = vpack.c.bf16 %v495_v11, %v494_v10 }
  0x37   : > { %829 = vst [vmem:[#allocation2 + $0x48] sm:$0xff] %v700_v0  ;;  %v281_v26 = vld [vmem:[%s5818_s0 + $0x138] sm:$0xff]  ;;  %v282_v27 = vld [vmem:[%s5818_s0 + $0x140] sm:$0xff]  ;;  %v501_v29 = vmax.f32 %v277_v17, 0.0  ;;  %v502_v30 = vmax.f32 %v278_v18, 0.0  ;;  %v283_v31 = vld [vmem:[%s5818_s0 + $0x148] sm:$0xff]  ;;  %v707_v32 = vpack.c.bf16 %v497_v16, %v496_v15 }
  0x38   : > { %830 = vst.msk [vmem:[#allocation2 + $0x50] sm:$0xf] %vm821_vm0, %v701_v5  ;;  %v503_v33 = vmax.f32 %v279_v22, 0.0  ;;  %v504_v34 = vmax.f32 %v280_v23, 0.0  ;;  %v284_v35 = vld [vmem:[%s5818_s0 + $0x150] sm:$0xff]  ;;  %v285_v36 = vld [vmem:[%s5818_s0 + $0x158] sm:$0xff]  ;;  %v708_v37 = vpack.c.bf16 %v499_v21, %v498_v20  ;;  %v709_v42 = vpack.c.bf16 %v500_v25, %v500_v25 }
  0x39   : > { %831 = vst [vmem:[#allocation2 + $0x54] sm:$0xff] %v702_v9  ;;  %v505_v38 = vmax.f32 %v281_v26, 0.0  ;;  %v506_v39 = vmax.f32 %v282_v27, 0.0  ;;  %v286_v40 = vld [vmem:[%s5818_s0 + $0x160] sm:$0xff]  ;;  %v287_v41 = vld [vmem:[%s5818_s0 + $0x168] sm:$0xff]  ;;  %v507_v43 = vmax.f32 %v283_v31, 0.0  ;;  %v710_v46 = vpack.c.bf16 %v502_v30, %v501_v29 }
  0x3a   : > { %832 = vst [vmem:[#allocation2 + $0x5c] sm:$0xff] %v703_v14  ;;  %v288_v44 = vld [vmem:[%s5818_s0 + $0x170] sm:$0xff]  ;;  %v289_v45 = vld [vmem:[%s5818_s0 + $0x178] sm:$0xff]  ;;  %v508_v47 = vmax.f32 %v284_v35, 0.0  ;;  %v509_v48 = vmax.f32 %v285_v36, 0.0  ;;  %v290_v49 = vld [vmem:[%s5818_s0 + $0x180] sm:$0xff]  ;;  %v711_v50 = vpack.c.bf16 %v504_v34, %v503_v33 }
  0x3b   : > { %833 = vst [vmem:[#allocation2 + $0x64] sm:$0xff] %v704_v19  ;;  %v510_v51 = vmax.f32 %v286_v40, 0.0  ;;  %v511_v52 = vmax.f32 %v287_v41, 0.0  ;;  %v291_v53 = vld [vmem:[%s5818_s0 + $0x188] sm:$0xff]  ;;  %v292_v54 = vld [vmem:[%s5818_s0 + $0x190] sm:$0xff]  ;;  %v712_v55 = vpack.c.bf16 %v506_v39, %v505_v38  ;;  %v512_v56 = vmax.f32 %v288_v44, 0.0 }
  0x3c   : > { %834 = vst.msk [vmem:[#allocation2 + $0x6c] sm:$0xf] %vm821_vm0, %v705_v24  ;;  %v513_v57 = vmax.f32 %v289_v45, 0.0  ;;  %v293_v58 = vld [vmem:[%s5818_s0 + $0x198] sm:$0xff]  ;;  %v294_v59 = vld [vmem:[%s5818_s0 + $0x1a0] sm:$0xff]  ;;  %v713_v60 = vpack.c.bf16 %v507_v43, %v507_v43  ;;  %v514_v61 = vmax.f32 %v290_v49, 0.0  ;;  %v714_v0 = vpack.c.bf16 %v509_v48, %v508_v47 }
  0x3d   : > { %835 = vst [vmem:[#allocation2 + $0x70] sm:$0xff] %v706_v28  ;;  %v295_v62 = vld [vmem:[%s5818_s0 + $0x1a8] sm:$0xff]  ;;  %v296_v63 = vld [vmem:[%s5818_s0 + $0x1b0] sm:$0xff]  ;;  %v515_v1 = vmax.f32 %v291_v53, 0.0  ;;  %v516_v2 = vmax.f32 %v292_v54, 0.0  ;;  %v297_v3 = vld [vmem:[%s5818_s0 + $0x1b8] sm:$0xff]  ;;  %v715_v4 = vpack.c.bf16 %v511_v52, %v510_v51 }
  0x3e   : > { %836 = vst [vmem:[#allocation2 + $0x78] sm:$0xff] %v707_v32  ;;  %v517_v5 = vmax.f32 %v293_v58, 0.0  ;;  %v518_v6 = vmax.f32 %v294_v59, 0.0  ;;  %v298_v7 = vld [vmem:[%s5818_s0 + $0x1c0] sm:$0xff]  ;;  %v299_v8 = vld [vmem:[%s5818_s0 + $0x1c8] sm:$0xff]  ;;  %v716_v9 = vpack.c.bf16 %v513_v57, %v512_v56  ;;  %v519_v10 = vmax.f32 %v295_v62, 0.0 }
  0x3f   : > { %837 = vst [vmem:[#allocation2 + $0x80] sm:$0xff] %v708_v37  ;;  %v520_v11 = vmax.f32 %v296_v63, 0.0  ;;  %v300_v12 = vld [vmem:[%s5818_s0 + $0x1d0] sm:$0xff]  ;;  %v301_v13 = vld [vmem:[%s5818_s0 + $0x1d8] sm:$0xff]  ;;  %v717_v14 = vpack.c.bf16 %v514_v61, %v514_v61  ;;  %v521_v15 = vmax.f32 %v297_v3, 0.0  ;;  %v302_v16 = vld [vmem:[%s5818_s0 + $0x1e0] sm:$0xff]  ;;  %v718_v18 = vpack.c.bf16 %v516_v2, %v515_v1 }
  0x40   : > { %838 = vst.msk [vmem:[#allocation2 + $0x88] sm:$0xf] %vm821_vm0, %v709_v42  ;;  %v303_v17 = vld [vmem:[%s5818_s0 + $0x1e8] sm:$0xff]  ;;  %v522_v19 = vmax.f32 %v298_v7, 0.0  ;;  %v523_v20 = vmax.f32 %v299_v8, 0.0  ;;  %v304_v21 = vld [vmem:[%s5818_s0 + $0x1f0] sm:$0xff]  ;;  %v719_v22 = vpack.c.bf16 %v518_v6, %v517_v5 }
  0x41   : > { %839 = vst [vmem:[#allocation2 + $0x8c] sm:$0xff] %v710_v46  ;;  %v524_v23 = vmax.f32 %v300_v12, 0.0  ;;  %v525_v24 = vmax.f32 %v301_v13, 0.0  ;;  %v305_v25 = vld [vmem:[%s5818_s0 + $0x1f8] sm:$0xff]  ;;  %v306_v26 = vld [vmem:[%s5818_s0 + $0x200] sm:$0xff]  ;;  %v720_v27 = vpack.c.bf16 %v520_v11, %v519_v10  ;;  %v526_v28 = vmax.f32 %v302_v16, 0.0 }
  0x42   : > { %840 = vst [vmem:[#allocation2 + $0x94] sm:$0xff] %v711_v50  ;;  %v527_v29 = vmax.f32 %v303_v17, 0.0  ;;  %v307_v30 = vld [vmem:[%s5818_s0 + $0x208] sm:$0xff]  ;;  %v308_v31 = vld [vmem:[%s5818_s0 + $0x210] sm:$0xff]  ;;  %v721_v32 = vpack.c.bf16 %v521_v15, %v521_v15  ;;  %v528_v33 = vmax.f32 %v304_v21, 0.0  ;;  %v309_v34 = vld [vmem:[%s5818_s0 + $0x218] sm:$0xff]  ;;  %v722_v36 = vpack.c.bf16 %v523_v20, %v522_v19 }
  0x43   : > { %841 = vst [vmem:[#allocation2 + $0x9c] sm:$0xff] %v712_v55  ;;  %v310_v35 = vld [vmem:[%s5818_s0 + $0x220] sm:$0xff]  ;;  %v529_v37 = vmax.f32 %v305_v25, 0.0  ;;  %v530_v38 = vmax.f32 %v306_v26, 0.0  ;;  %v311_v39 = vld [vmem:[%s5818_s0 + $0x228] sm:$0xff]  ;;  %v723_v40 = vpack.c.bf16 %v525_v24, %v524_v23  ;;  %v531_v41 = vmax.f32 %v307_v30, 0.0 }
  0x44   : > { %842 = vst.msk [vmem:[#allocation2 + $0xa4] sm:$0xf] %vm821_vm0, %v713_v60  ;;  %v532_v42 = vmax.f32 %v308_v31, 0.0  ;;  %v312_v43 = vld [vmem:[%s5818_s0 + $0x230] sm:$0xff]  ;;  %v313_v44 = vld [vmem:[%s5818_s0 + $0x238] sm:$0xff]  ;;  %v724_v45 = vpack.c.bf16 %v527_v29, %v526_v28  ;;  %v533_v46 = vmax.f32 %v309_v34, 0.0  ;;  %v725_v50 = vpack.c.bf16 %v528_v33, %v528_v33 }
  0x45   : > { %843 = vst [vmem:[#allocation2 + $0xa8] sm:$0xff] %v714_v0  ;;  %v534_v47 = vmax.f32 %v310_v35, 0.0  ;;  %v314_v48 = vld [vmem:[%s5818_s0 + $0x240] sm:$0xff]  ;;  %v315_v49 = vld [vmem:[%s5818_s0 + $0x248] sm:$0xff]  ;;  %v535_v51 = vmax.f32 %v311_v39, 0.0  ;;  %v316_v52 = vld [vmem:[%s5818_s0 + $0x250] sm:$0xff]  ;;  %v726_v54 = vpack.c.bf16 %v530_v38, %v529_v37 }
  0x46   : > { %844 = vst [vmem:[#allocation2 + $0xb0] sm:$0xff] %v715_v4  ;;  %v317_v53 = vld [vmem:[%s5818_s0 + $0x258] sm:$0xff]  ;;  %v536_v55 = vmax.f32 %v312_v43, 0.0  ;;  %v537_v56 = vmax.f32 %v313_v44, 0.0  ;;  %v318_v57 = vld [vmem:[%s5818_s0 + $0x260] sm:$0xff]  ;;  %v727_v58 = vpack.c.bf16 %v532_v42, %v531_v41  ;;  %v538_v59 = vmax.f32 %v314_v48, 0.0 }
  0x47   : > { %845 = vst [vmem:[#allocation2 + $0xb8] sm:$0xff] %v716_v9  ;;  %v539_v60 = vmax.f32 %v315_v49, 0.0  ;;  %v319_v61 = vld [vmem:[%s5818_s0 + $0x268] sm:$0xff]  ;;  %v320_v62 = vld [vmem:[%s5818_s0 + $0x270] sm:$0xff]  ;;  %v728_v63 = vpack.c.bf16 %v534_v47, %v533_v46  ;;  %v540_v0 = vmax.f32 %v316_v52, 0.0  ;;  %v541_v1 = vmax.f32 %v317_v53, 0.0 }
  0x48   : > { %846 = vst.msk [vmem:[#allocation2 + $0xc0] sm:$0xf] %vm821_vm0, %v717_v14  ;;  %v321_v2 = vld [vmem:[%s5818_s0 + $0x278] sm:$0xff]  ;;  %v322_v3 = vld [vmem:[%s5818_s0 + $0x280] sm:$0xff]  ;;  %v729_v4 = vpack.c.bf16 %v535_v51, %v535_v51  ;;  %v542_v5 = vmax.f32 %v318_v57, 0.0  ;;  %v323_v6 = vld [vmem:[%s5818_s0 + $0x288] sm:$0xff]  ;;  %v730_v8 = vpack.c.bf16 %v537_v56, %v536_v55 }
  0x49   : > { %847 = vst [vmem:[#allocation2 + $0xc4] sm:$0xff] %v718_v18  ;;  %v324_v7 = vld [vmem:[%s5818_s0 + $0x290] sm:$0xff]  ;;  %v543_v9 = vmax.f32 %v319_v61, 0.0  ;;  %v544_v10 = vmax.f32 %v320_v62, 0.0  ;;  %v325_v11 = vld [vmem:[%s5818_s0 + $0x298] sm:$0xff]  ;;  %v731_v12 = vpack.c.bf16 %v539_v60, %v538_v59  ;;  %v545_v13 = vmax.f32 %v321_v2, 0.0 }
  0x4a   : > { %848 = vst [vmem:[#allocation2 + $0xcc] sm:$0xff] %v719_v22  ;;  %v546_v14 = vmax.f32 %v322_v3, 0.0  ;;  %v326_v15 = vld [vmem:[%s5818_s0 + $0x2a0] sm:$0xff]  ;;  %v327_v16 = vld [vmem:[%s5818_s0 + $0x2a8] sm:$0xff]  ;;  %v732_v17 = vpack.c.bf16 %v541_v1, %v540_v0  ;;  %v547_v18 = vmax.f32 %v323_v6, 0.0  ;;  %v548_v19 = vmax.f32 %v324_v7, 0.0 }
  0x4b   : > { %849 = vst [vmem:[#allocation2 + $0xd4] sm:$0xff] %v720_v27  ;;  %v328_v20 = vld [vmem:[%s5818_s0 + $0x2b0] sm:$0xff]  ;;  %v329_v21 = vld [vmem:[%s5818_s0 + $0x2b8] sm:$0xff]  ;;  %v733_v22 = vpack.c.bf16 %v542_v5, %v542_v5  ;;  %v549_v23 = vmax.f32 %v325_v11, 0.0  ;;  %v330_v24 = vld [vmem:[%s5818_s0 + $0x2c0] sm:$0xff]  ;;  %v734_v26 = vpack.c.bf16 %v544_v10, %v543_v9  ;;  %v550_v27 = vmax.f32 %v326_v15, 0.0 }
  0x4c   : > { %850 = vst.msk [vmem:[#allocation2 + $0xdc] sm:$0xf] %vm821_vm0, %v721_v32  ;;  %v331_v25 = vld [vmem:[%s5818_s0 + $0x2c8] sm:$0xff]  ;;  %v551_v28 = vmax.f32 %v327_v16, 0.0  ;;  %v332_v29 = vld [vmem:[%s5818_s0 + $0x2d0] sm:$0xff]  ;;  %v735_v30 = vpack.c.bf16 %v546_v14, %v545_v13  ;;  %v552_v31 = vmax.f32 %v328_v20, 0.0  ;;  %v736_v35 = vpack.c.bf16 %v548_v19, %v547_v18 }
  0x4d   : > { %851 = vst [vmem:[#allocation2 + $0xe0] sm:$0xff] %v722_v36  ;;  %v553_v32 = vmax.f32 %v329_v21, 0.0  ;;  %v333_v33 = vld [vmem:[%s5818_s0 + $0x2d8] sm:$0xff]  ;;  %v334_v34 = vld [vmem:[%s5818_s0 + $0x2e0] sm:$0xff]  ;;  %v554_v36 = vmax.f32 %v330_v24, 0.0  ;;  %v555_v37 = vmax.f32 %v331_v25, 0.0 }
  0x4e   : > { %852 = vst [vmem:[#allocation2 + $0xe8] sm:$0xff] %v723_v40  ;;  %v335_v38 = vld [vmem:[%s5818_s0 + $0x2e8] sm:$0xff]  ;;  %v336_v39 = vld [vmem:[%s5818_s0 + $0x2f0] sm:$0xff]  ;;  %v737_v40 = vpack.c.bf16 %v549_v23, %v549_v23  ;;  %v556_v41 = vmax.f32 %v332_v29, 0.0  ;;  %v337_v42 = vld [vmem:[%s5818_s0 + $0x2f8] sm:$0xff]  ;;  %v738_v44 = vpack.c.bf16 %v551_v28, %v550_v27  ;;  %v558_v46 = vmax.f32 %v334_v34, 0.0 }
  0x4f   : > { %853 = vst [vmem:[#allocation2 + $0xf0] sm:$0xff] %v724_v45  ;;  %v338_v43 = vld [vmem:[%s5818_s0 + $0x300] sm:$0xff]  ;;  %v557_v45 = vmax.f32 %v333_v33, 0.0  ;;  %v339_v47 = vld [vmem:[%s5818_s0 + $0x308] sm:$0xff]  ;;  %v739_v48 = vpack.c.bf16 %v553_v32, %v552_v31  ;;  %v559_v49 = vmax.f32 %v335_v38, 0.0  ;;  %v340_v51 = vld [vmem:[%s5818_s0 + $0x310] sm:$0xff]  ;;  %v740_v53 = vpack.c.bf16 %v555_v37, %v554_v36 }
  0x50   : > { %854 = vst.msk [vmem:[#allocation2 + $0xf8] sm:$0xf] %vm821_vm0, %v725_v50  ;;  %v560_v50 = vmax.f32 %v336_v39, 0.0  ;;  %v341_v52 = vld [vmem:[%s5818_s0 + $0x318] sm:$0xff]  ;;  %v562_v55 = vmax.f32 %v338_v43, 0.0  ;;  %v342_v56 = vld [vmem:[%s5818_s0 + $0x320] sm:$0xff] }
  0x51   : > { %855 = vst [vmem:[#allocation2 + $0xfc] sm:$0xff] %v726_v54  ;;  %v561_v54 = vmax.f32 %v337_v42, 0.0  ;;  %v343_v57 = vld [vmem:[%s5818_s0 + $0x328] sm:$0xff]  ;;  %v563_v59 = vmax.f32 %v339_v47, 0.0  ;;  %v344_v60 = vld [vmem:[%s5818_s0 + $0x330] sm:$0xff]  ;;  %v345_v61 = vld [vmem:[%s5818_s0 + $0x338] sm:$0xff]  ;;  %v742_v62 = vpack.c.bf16 %v558_v46, %v557_v45 }
  0x52   : > { %856 = vst [vmem:[#allocation2 + $0x104] sm:$0xff] %v727_v58  ;;  %v741_v58 = vpack.c.bf16 %v556_v41, %v556_v41  ;;  %v565_v0 = vmax.f32 %v341_v52, 0.0  ;;  %v346_v1 = vld [vmem:[%s5818_s0 + $0x340] sm:$0xff]  ;;  %v743_v2 = vpack.c.bf16 %v560_v50, %v559_v49  ;;  %v566_v3 = vmax.f32 %v342_v56, 0.0  ;;  %v347_v5 = vld [vmem:[%s5818_s0 + $0x348] sm:$0xff]  ;;  %v348_v6 = vld [vmem:[%s5818_s0 + $0x350] sm:$0xff] }
  0x53   : > { %857 = vst [vmem:[#allocation2 + $0x10c] sm:$0xff] %v728_v63  ;;  %v564_v63 = vmax.f32 %v340_v51, 0.0  ;;  %v744_v7 = vpack.c.bf16 %v562_v55, %v561_v54  ;;  %v569_v9 = vmax.f32 %v345_v61, 0.0  ;;  %v349_v10 = vld [vmem:[%s5818_s0 + $0x358] sm:$0xff]  ;;  %v350_v11 = vld [vmem:[%s5818_s0 + $0x360] sm:$0xff]  ;;  %v570_v13 = vmax.f32 %v346_v1, 0.0 }
  0x54   : > { %858 = vst.msk [vmem:[#allocation2 + $0x114] sm:$0xf] %vm821_vm0, %v729_v4  ;;  %v567_v4 = vmax.f32 %v343_v57, 0.0  ;;  %v351_v14 = vld [vmem:[%s5818_s0 + $0x368] sm:$0xff]  ;;  %v352_v15 = vld [vmem:[%s5818_s0 + $0x370] sm:$0xff]  ;;  %v572_v18 = vmax.f32 %v348_v6, 0.0 }
  0x55   : > { %859 = vst [vmem:[#allocation2 + $0x118] sm:$0xff] %v730_v8  ;;  %v568_v8 = vmax.f32 %v344_v60, 0.0  ;;  %v746_v16 = vpack.c.bf16 %v565_v0, %v564_v63  ;;  %v353_v19 = vld [vmem:[%s5818_s0 + $0x378] sm:$0xff]  ;;  %v573_v21 = vmax.f32 %v349_v10, 0.0  ;;  %v354_v23 = vld [vmem:[%s5818_s0 + $0x380] sm:$0xff]  ;;  %v355_v24 = vld [vmem:[%s5818_s0 + $0x388] sm:$0xff] }
  0x56   : > { %860 = vst [vmem:[#allocation2 + $0x120] sm:$0xff] %v731_v12  ;;  %v745_v12 = vpack.c.bf16 %v563_v59, %v563_v59  ;;  %v747_v20 = vpack.c.bf16 %v567_v4, %v566_v3  ;;  %v576_v27 = vmax.f32 %v352_v15, 0.0  ;;  %v356_v28 = vld [vmem:[%s5818_s0 + $0x390] sm:$0xff]  ;;  %v357_v29 = vld [vmem:[%s5818_s0 + $0x398] sm:$0xff]  ;;  %v577_v31 = vmax.f32 %v353_v19, 0.0  ;;  %v358_v32 = vld [vmem:[%s5818_s0 + $0x3a0] sm:$0xff] }
  0x57   : > { %861 = vst [vmem:[#allocation2 + $0x128] sm:$0xff] %v732_v17  ;;  %v571_v17 = vmax.f32 %v347_v5, 0.0  ;;  %v748_v25 = vpack.c.bf16 %v569_v9, %v568_v8  ;;  %v359_v33 = vld [vmem:[%s5818_s0 + $0x3a8] sm:$0xff]  ;;  %v579_v36 = vmax.f32 %v355_v24, 0.0  ;;  %v360_v37 = vld [vmem:[%s5818_s0 + $0x3b0] sm:$0xff]  ;;  %v580_v39 = vmax.f32 %v356_v28, 0.0 }
  0x58   : > { %862 = vst.msk [vmem:[#allocation2 + $0x130] sm:$0xf] %vm821_vm0, %v733_v22  ;;  %v574_v22 = vmax.f32 %v350_v11, 0.0  ;;  %v361_v41 = vld [vmem:[%s5818_s0 + $0x3b8] sm:$0xff]  ;;  %v362_v42 = vld [vmem:[%s5818_s0 + $0x3c0] sm:$0xff]  ;;  %v583_v45 = vmax.f32 %v359_v33, 0.0 }
  0x59   : > { %863 = vst [vmem:[#allocation2 + $0x134] sm:$0xff] %v734_v26  ;;  %v575_v26 = vmax.f32 %v351_v14, 0.0  ;;  %v750_v34 = vpack.c.bf16 %v572_v18, %v571_v17  ;;  %v363_v46 = vld [vmem:[%s5818_s0 + $0x3c8] sm:$0xff]  ;;  %v364_v47 = vld [vmem:[%s5818_s0 + $0x3d0] sm:$0xff]  ;;  %v584_v49 = vmax.f32 %v360_v37, 0.0  ;;  %v365_v50 = vld [vmem:[%s5818_s0 + $0x3d8] sm:$0xff] }
  0x5a   : > { %864 = vst [vmem:[#allocation2 + $0x13c] sm:$0xff] %v735_v30  ;;  %v749_v30 = vpack.c.bf16 %v570_v13, %v570_v13  ;;  %v751_v38 = vpack.c.bf16 %v574_v22, %v573_v21  ;;  %v366_v51 = vld [vmem:[%s5818_s0 + $0x3e0] sm:$0xff]  ;;  %v586_v54 = vmax.f32 %v362_v42, 0.0  ;;  %v367_v55 = vld [vmem:[%s5818_s0 + $0x3e8] sm:$0xff]  ;;  %v587_v57 = vmax.f32 %v363_v46, 0.0  ;;  %v368_v59 = vld [vmem:[%s5818_s0 + $0x3f0] sm:$0xff] }
  0x5b   : > { %865 = vst [vmem:[#allocation2 + $0x144] sm:$0xff] %v736_v35  ;;  %v578_v35 = vmax.f32 %v354_v23, 0.0  ;;  %v752_v43 = vpack.c.bf16 %v576_v27, %v575_v26  ;;  %v369_v60 = vld [vmem:[%s5818_s0 + $0x3f8] sm:$0xff]  ;;  %v590_v63 = vmax.f32 %v366_v51, 0.0  ;;  %v370_v0 = vld [vmem:[%s5818_s0 + $0x400] sm:$0xff]  ;;  %v371_v1 = vld [vmem:[%s5818_s0 + $0x408] sm:$0xff] }
  0x5c   : > { %866 = vst.msk [vmem:[#allocation2 + $0x14c] sm:$0xf] %vm821_vm0, %v737_v40  ;;  %v581_v40 = vmax.f32 %v357_v29, 0.0  ;;  %v591_v3 = vmax.f32 %v367_v55, 0.0  ;;  %v372_v4 = vld [vmem:[%s5818_s0 + $0x410] sm:$0xff]  ;;  %v373_v5 = vld [vmem:[%s5818_s0 + $0x418] sm:$0xff] }
  0x5d   : > { %867 = vst [vmem:[#allocation2 + $0x150] sm:$0xff] %v738_v44  ;;  %v582_v44 = vmax.f32 %v358_v32, 0.0  ;;  %v754_v52 = vpack.c.bf16 %v579_v36, %v578_v35  ;;  %v593_v8 = vmax.f32 %v369_v60, 0.0  ;;  %v374_v9 = vld [vmem:[%s5818_s0 + $0x420] sm:$0xff]  ;;  %v594_v11 = vmax.f32 %v370_v0, 0.0  ;;  %v375_v13 = vld [vmem:[%s5818_s0 + $0x428] sm:$0xff] }
  0x5e   : > { %868 = vst [vmem:[#allocation2 + $0x158] sm:$0xff] %v739_v48  ;;  %v753_v48 = vpack.c.bf16 %v577_v31, %v577_v31  ;;  %v755_v56 = vpack.c.bf16 %v581_v40, %v580_v39  ;;  %v376_v14 = vld [vmem:[%s5818_s0 + $0x430] sm:$0xff]  ;;  %v597_v17 = vmax.f32 %v373_v5, 0.0  ;;  %v377_v18 = vld [vmem:[%s5818_s0 + $0x438] sm:$0xff]  ;;  %v378_v19 = vld [vmem:[%s5818_s0 + $0x440] sm:$0xff]  ;;  %v598_v21 = vmax.f32 %v374_v9, 0.0 }
  0x5f   : > { %869 = vst [vmem:[#allocation2 + $0x160] sm:$0xff] %v740_v53  ;;  %v585_v53 = vmax.f32 %v361_v41, 0.0  ;;  %v756_v61 = vpack.c.bf16 %v583_v45, %v582_v44  ;;  %v379_v22 = vld [vmem:[%s5818_s0 + $0x448] sm:$0xff]  ;;  %v380_v23 = vld [vmem:[%s5818_s0 + $0x450] sm:$0xff]  ;;  %v600_v26 = vmax.f32 %v376_v14, 0.0  ;;  %v381_v27 = vld [vmem:[%s5818_s0 + $0x458] sm:$0xff] }
  0x60   : > { %870 = vst.msk [vmem:[#allocation2 + $0x168] sm:$0xf] %vm821_vm0, %v741_v58  ;;  %v588_v58 = vmax.f32 %v364_v47, 0.0  ;;  %v601_v29 = vmax.f32 %v377_v18, 0.0  ;;  %v382_v31 = vld [vmem:[%s5818_s0 + $0x460] sm:$0xff]  ;;  %v383_v32 = vld [vmem:[%s5818_s0 + $0x468] sm:$0xff] }
  0x61   : > { %871 = vst [vmem:[#allocation2 + $0x16c] sm:$0xff] %v742_v62  ;;  %v589_v62 = vmax.f32 %v365_v50, 0.0  ;;  %v758_v6 = vpack.c.bf16 %v586_v54, %v585_v53  ;;  %v604_v35 = vmax.f32 %v380_v23, 0.0  ;;  %v384_v36 = vld [vmem:[%s5818_s0 + $0x470] sm:$0xff]  ;;  %v385_v37 = vld [vmem:[%s5818_s0 + $0x478] sm:$0xff]  ;;  %v605_v39 = vmax.f32 %v381_v27, 0.0 }
  0x62   : > { %872 = vst [vmem:[#allocation2 + $0x174] sm:$0xff] %v743_v2  ;;  %v757_v2 = vpack.c.bf16 %v584_v49, %v584_v49  ;;  %v759_v10 = vpack.c.bf16 %v588_v58, %v587_v57  ;;  %v386_v40 = vld [vmem:[%s5818_s0 + $0x480] sm:$0xff]  ;;  %v387_v41 = vld [vmem:[%s5818_s0 + $0x488] sm:$0xff]  ;;  %v607_v44 = vmax.f32 %v383_v32, 0.0  ;;  %v388_v45 = vld [vmem:[%s5818_s0 + $0x490] sm:$0xff]  ;;  %v608_v47 = vmax.f32 %v384_v36, 0.0 }
  0x63   : > { %873 = vst [vmem:[#allocation2 + $0x17c] sm:$0xff] %v744_v7  ;;  %v592_v7 = vmax.f32 %v368_v59, 0.0  ;;  %v760_v15 = vpack.c.bf16 %v590_v63, %v589_v62  ;;  %v389_v49 = vld [vmem:[%s5818_s0 + $0x498] sm:$0xff]  ;;  %v390_v50 = vld [vmem:[%s5818_s0 + $0x4a0] sm:$0xff]  ;;  %v611_v53 = vmax.f32 %v387_v41, 0.0  ;;  %v391_v54 = vld [vmem:[%s5818_s0 + $0x4a8] sm:$0xff] }
  0x64   : > { %874 = vst.msk [vmem:[#allocation2 + $0x184] sm:$0xf] %vm821_vm0, %v745_v12  ;;  %v595_v12 = vmax.f32 %v371_v1, 0.0  ;;  %v392_v55 = vld [vmem:[%s5818_s0 + $0x4b0] sm:$0xff]  ;;  %v612_v57 = vmax.f32 %v388_v45, 0.0  ;;  %v393_v58 = vld [vmem:[%s5818_s0 + $0x4b8] sm:$0xff] }
  0x65   : > { %875 = vst [vmem:[#allocation2 + $0x188] sm:$0xff] %v746_v16  ;;  %v596_v16 = vmax.f32 %v372_v4, 0.0  ;;  %v762_v24 = vpack.c.bf16 %v593_v8, %v592_v7  ;;  %v394_v59 = vld [vmem:[%s5818_s0 + $0x4c0] sm:$0xff]  ;;  %v614_v62 = vmax.f32 %v390_v50, 0.0  ;;  %v395_v63 = vld [vmem:[%s5818_s0 + $0x4c8] sm:$0xff]  ;;  %v615_v1 = vmax.f32 %v391_v54, 0.0 }
  0x66   : > { %876 = vst [vmem:[#allocation2 + $0x190] sm:$0xff] %v747_v20  ;;  %v761_v20 = vpack.c.bf16 %v591_v3, %v591_v3  ;;  %v763_v28 = vpack.c.bf16 %v595_v12, %v594_v11  ;;  %v396_v3 = vld [vmem:[%s5818_s0 + $0x4d0] sm:$0xff]  ;;  %v397_v4 = vld [vmem:[%s5818_s0 + $0x4d8] sm:$0xff]  ;;  %v618_v7 = vmax.f32 %v394_v59, 0.0  ;;  %v398_v8 = vld [vmem:[%s5818_s0 + $0x4e0] sm:$0xff]  ;;  %v619_v11 = vmax.f32 %v395_v63, 0.0 }
  0x67   : > { %877 = vst [vmem:[#allocation2 + $0x198] sm:$0xff] %v748_v25  ;;  %v599_v25 = vmax.f32 %v375_v13, 0.0  ;;  %v764_v33 = vpack.c.bf16 %v597_v17, %v596_v16  ;;  %v399_v9 = vld [vmem:[%s5818_s0 + $0x4e8] sm:$0xff]  ;;  %v400_v12 = vld [vmem:[%s5818_s0 + $0x4f0] sm:$0xff]  ;;  %v401_v13 = vld [vmem:[%s5818_s0 + $0x4f8] sm:$0xff]  ;;  %v621_v16 = vmax.f32 %v397_v4, 0.0 }
  0x68   : > { %878 = vst.msk [vmem:[#allocation2 + $0x1a0] sm:$0xf] %vm821_vm0, %v749_v30  ;;  %v602_v30 = vmax.f32 %v378_v19, 0.0  ;;  %v402_v17 = vld [vmem:[%s5818_s0 + $0x500] sm:$0xff]  ;;  %v622_v19 = vmax.f32 %v398_v8, 0.0  ;;  %v413_v45 = vld [vmem:[%s5818_s0 + $0x558] sm:$0xff] }
  0x69   : > { %879 = vst [vmem:[#allocation2 + $0x1a4] sm:$0xff] %v750_v34  ;;  %v603_v34 = vmax.f32 %v379_v22, 0.0  ;;  %v766_v42 = vpack.c.bf16 %v600_v26, %v599_v25  ;;  %v404_v22 = vld [vmem:[%s5818_s0 + $0x510] sm:$0xff]  ;;  %v625_v25 = vmax.f32 %v401_v13, 0.0  ;;  %v405_v26 = vld [vmem:[%s5818_s0 + $0x518] sm:$0xff]  ;;  %v406_v27 = vld [vmem:[%s5818_s0 + $0x520] sm:$0xff] }
  0x6a   : > { %880 = vst [vmem:[#allocation2 + $0x1ac] sm:$0xff] %v751_v38  ;;  %v765_v38 = vpack.c.bf16 %v598_v21, %v598_v21  ;;  %v767_v46 = vpack.c.bf16 %v602_v30, %v601_v29  ;;  %v403_v21 = vld [vmem:[%s5818_s0 + $0x508] sm:$0xff]  ;;  %v626_v29 = vmax.f32 %v402_v17, 0.0  ;;  %v420_v63 = vld [vmem:[%s5818_s0 + $0x590] sm:$0xff] }
  0x6b   : > { %881 = vst [vmem:[#allocation2 + $0x1b4] sm:$0xff] %v752_v43  ;;  %v606_v43 = vmax.f32 %v382_v31, 0.0  ;;  %v768_v51 = vpack.c.bf16 %v604_v35, %v603_v34  ;;  %v407_v30 = vld [vmem:[%s5818_s0 + $0x528] sm:$0xff]  ;;  %v408_v31 = vld [vmem:[%s5818_s0 + $0x530] sm:$0xff]  ;;  %v628_v34 = vmax.f32 %v404_v22, 0.0  ;;  %v409_v35 = vld [vmem:[%s5818_s0 + $0x538] sm:$0xff] }
  0x6c   : > { %882 = vst.msk [vmem:[#allocation2 + $0x1bc] sm:$0xf] %vm821_vm0, %v753_v48  ;;  %v609_v48 = vmax.f32 %v385_v37, 0.0  ;;  %v629_v37 = vmax.f32 %v405_v26, 0.0  ;;  %v427_v17 = vld [vmem:[%s5818_s0 + $0x5c8] sm:$0xff] }
  0x6d   : > { %883 = vst [vmem:[#allocation2 + $0x1c0] sm:$0xff] %v754_v52  ;;  %v610_v52 = vmax.f32 %v386_v40, 0.0  ;;  %v770_v60 = vpack.c.bf16 %v607_v44, %v606_v43  ;;  %v411_v40 = vld [vmem:[%s5818_s0 + $0x548] sm:$0xff]  ;;  %v632_v43 = vmax.f32 %v408_v31, 0.0  ;;  %v412_v44 = vld [vmem:[%s5818_s0 + $0x550] sm:$0xff] }
  0x6e   : > { %884 = vst [vmem:[#allocation2 + $0x1c8] sm:$0xff] %v755_v56  ;;  %v769_v56 = vpack.c.bf16 %v605_v39, %v605_v39  ;;  %v771_v0 = vpack.c.bf16 %v609_v48, %v608_v47  ;;  %v410_v39 = vld [vmem:[%s5818_s0 + $0x540] sm:$0xff]  ;;  %v633_v47 = vmax.f32 %v409_v35, 0.0 }
  0x6f   : > { %885 = vst [vmem:[#allocation2 + $0x1d0] sm:$0xff] %v756_v61  ;;  %v613_v61 = vmax.f32 %v389_v49, 0.0  ;;  %v772_v5 = vpack.c.bf16 %v611_v53, %v610_v52  ;;  %v414_v48 = vld [vmem:[%s5818_s0 + $0x560] sm:$0xff]  ;;  %v415_v49 = vld [vmem:[%s5818_s0 + $0x568] sm:$0xff]  ;;  %v635_v52 = vmax.f32 %v411_v40, 0.0  ;;  %v416_v53 = vld [vmem:[%s5818_s0 + $0x570] sm:$0xff] }
  0x70   : > { %886 = vst.msk [vmem:[#allocation2 + $0x1d8] sm:$0xf] %vm821_vm0, %v757_v2  ;;  %v616_v2 = vmax.f32 %v392_v55, 0.0  ;;  %v636_v55 = vmax.f32 %v412_v44, 0.0  ;;  %v434_v35 = vld [vmem:[%s5818_s0 + $0x600] sm:$0xff] }
  0x71   : > { %887 = vst [vmem:[#allocation2 + $0x1dc] sm:$0xff] %v758_v6  ;;  %v617_v6 = vmax.f32 %v393_v58, 0.0  ;;  %v774_v14 = vpack.c.bf16 %v614_v62, %v613_v61  ;;  %v418_v58 = vld [vmem:[%s5818_s0 + $0x580] sm:$0xff]  ;;  %v639_v61 = vmax.f32 %v415_v49, 0.0  ;;  %v419_v62 = vld [vmem:[%s5818_s0 + $0x588] sm:$0xff] }
  0x72   : > { %888 = vst [vmem:[#allocation2 + $0x1e4] sm:$0xff] %v759_v10  ;;  %v773_v10 = vpack.c.bf16 %v612_v57, %v612_v57  ;;  %v775_v18 = vpack.c.bf16 %v616_v2, %v615_v1  ;;  %v417_v57 = vld [vmem:[%s5818_s0 + $0x578] sm:$0xff]  ;;  %v640_v1 = vmax.f32 %v416_v53, 0.0 }
  0x73   : > { %889 = vst [vmem:[#allocation2 + $0x1ec] sm:$0xff] %v760_v15  ;;  %v620_v15 = vmax.f32 %v396_v3, 0.0  ;;  %v776_v23 = vpack.c.bf16 %v618_v7, %v617_v6  ;;  %v421_v2 = vld [vmem:[%s5818_s0 + $0x598] sm:$0xff]  ;;  %v422_v3 = vld [vmem:[%s5818_s0 + $0x5a0] sm:$0xff]  ;;  %v642_v6 = vmax.f32 %v418_v58, 0.0  ;;  %v423_v7 = vld [vmem:[%s5818_s0 + $0x5a8] sm:$0xff] }
  0x74   : > { %890 = vst.msk [vmem:[#allocation2 + $0x1f4] sm:$0xf] %vm821_vm0, %v761_v20  ;;  %v623_v20 = vmax.f32 %v399_v9, 0.0  ;;  %v643_v9 = vmax.f32 %v419_v62, 0.0  ;;  %v441_v53 = vld [vmem:[%s5818_s0 + $0x638] sm:$0xff] }
  0x75   : > { %891 = vst [vmem:[#allocation2 + $0x1f8] sm:$0xff] %v762_v24  ;;  %v624_v24 = vmax.f32 %v400_v12, 0.0  ;;  %v778_v32 = vpack.c.bf16 %v621_v16, %v620_v15  ;;  %v425_v12 = vld [vmem:[%s5818_s0 + $0x5b8] sm:$0xff]  ;;  %v646_v15 = vmax.f32 %v422_v3, 0.0  ;;  %v426_v16 = vld [vmem:[%s5818_s0 + $0x5c0] sm:$0xff] }
  0x76   : > { %892 = vst [vmem:[#allocation2 + $0x200] sm:$0xff] %v763_v28  ;;  %v777_v28 = vpack.c.bf16 %v619_v11, %v619_v11  ;;  %v779_v36 = vpack.c.bf16 %v623_v20, %v622_v19  ;;  %v424_v11 = vld [vmem:[%s5818_s0 + $0x5b0] sm:$0xff]  ;;  %v647_v19 = vmax.f32 %v423_v7, 0.0 }
  0x77   : > { %893 = vst [vmem:[#allocation2 + $0x208] sm:$0xff] %v764_v33  ;;  %v627_v33 = vmax.f32 %v403_v21, 0.0  ;;  %v780_v41 = vpack.c.bf16 %v625_v25, %v624_v24  ;;  %v428_v20 = vld [vmem:[%s5818_s0 + $0x5d0] sm:$0xff]  ;;  %v429_v21 = vld [vmem:[%s5818_s0 + $0x5d8] sm:$0xff]  ;;  %v649_v24 = vmax.f32 %v425_v12, 0.0  ;;  %v430_v25 = vld [vmem:[%s5818_s0 + $0x5e0] sm:$0xff] }
  0x78   : > { %894 = vst.msk [vmem:[#allocation2 + $0x210] sm:$0xf] %vm821_vm0, %v765_v38  ;;  %v630_v38 = vmax.f32 %v406_v27, 0.0  ;;  %v650_v27 = vmax.f32 %v426_v16, 0.0  ;;  %v448_v7 = vld [vmem:[%s5818_s0 + $0x670] sm:$0xff] }
  0x79   : > { %895 = vst [vmem:[#allocation2 + $0x214] sm:$0xff] %v766_v42  ;;  %v631_v42 = vmax.f32 %v407_v30, 0.0  ;;  %v782_v50 = vpack.c.bf16 %v628_v34, %v627_v33  ;;  %v432_v30 = vld [vmem:[%s5818_s0 + $0x5f0] sm:$0xff]  ;;  %v653_v33 = vmax.f32 %v429_v21, 0.0  ;;  %v433_v34 = vld [vmem:[%s5818_s0 + $0x5f8] sm:$0xff] }
  0x7a   : > { %896 = vst [vmem:[#allocation2 + $0x21c] sm:$0xff] %v767_v46  ;;  %v781_v46 = vpack.c.bf16 %v626_v29, %v626_v29  ;;  %v783_v54 = vpack.c.bf16 %v630_v38, %v629_v37  ;;  %v431_v29 = vld [vmem:[%s5818_s0 + $0x5e8] sm:$0xff]  ;;  %v654_v37 = vmax.f32 %v430_v25, 0.0 }
  0x7b   : > { %897 = vst [vmem:[#allocation2 + $0x224] sm:$0xff] %v768_v51  ;;  %v634_v51 = vmax.f32 %v410_v39, 0.0  ;;  %v784_v59 = vpack.c.bf16 %v632_v43, %v631_v42  ;;  %v435_v38 = vld [vmem:[%s5818_s0 + $0x608] sm:$0xff]  ;;  %v436_v39 = vld [vmem:[%s5818_s0 + $0x610] sm:$0xff]  ;;  %v656_v42 = vmax.f32 %v432_v30, 0.0  ;;  %v437_v43 = vld [vmem:[%s5818_s0 + $0x618] sm:$0xff] }
  0x7c   : > { %898 = vst.msk [vmem:[#allocation2 + $0x22c] sm:$0xf] %vm821_vm0, %v769_v56  ;;  %v637_v56 = vmax.f32 %v413_v45, 0.0  ;;  %v657_v45 = vmax.f32 %v433_v34, 0.0  ;;  %v455_v25 = vld [vmem:[%s5818_s0 + $0x6a8] sm:$0xff] }
  0x7d   : > { %899 = vst [vmem:[#allocation2 + $0x230] sm:$0xff] %v770_v60  ;;  %v638_v60 = vmax.f32 %v414_v48, 0.0  ;;  %v786_v4 = vpack.c.bf16 %v635_v52, %v634_v51  ;;  %v439_v48 = vld [vmem:[%s5818_s0 + $0x628] sm:$0xff]  ;;  %v660_v51 = vmax.f32 %v436_v39, 0.0  ;;  %v440_v52 = vld [vmem:[%s5818_s0 + $0x630] sm:$0xff] }
  0x7e   : > { %900 = vst [vmem:[#allocation2 + $0x238] sm:$0xff] %v771_v0  ;;  %v785_v0 = vpack.c.bf16 %v633_v47, %v633_v47  ;;  %v787_v8 = vpack.c.bf16 %v637_v56, %v636_v55  ;;  %v438_v47 = vld [vmem:[%s5818_s0 + $0x620] sm:$0xff]  ;;  %v661_v55 = vmax.f32 %v437_v43, 0.0 }
  0x7f   : > { %901 = vst [vmem:[#allocation2 + $0x240] sm:$0xff] %v772_v5  ;;  %v641_v5 = vmax.f32 %v417_v57, 0.0  ;;  %v788_v13 = vpack.c.bf16 %v639_v61, %v638_v60  ;;  %v442_v56 = vld [vmem:[%s5818_s0 + $0x640] sm:$0xff]  ;;  %v443_v57 = vld [vmem:[%s5818_s0 + $0x648] sm:$0xff]  ;;  %v663_v60 = vmax.f32 %v439_v48, 0.0  ;;  %v444_v61 = vld [vmem:[%s5818_s0 + $0x650] sm:$0xff] }
  0x80   : > { %902 = vst.msk [vmem:[#allocation2 + $0x248] sm:$0xf] %vm821_vm0, %v773_v10  ;;  %v644_v10 = vmax.f32 %v420_v63, 0.0  ;;  %v664_v63 = vmax.f32 %v440_v52, 0.0  ;;  %v462_v43 = vld [vmem:[%s5818_s0 + $0x6e0] sm:$0xff] }
  0x81   : > { %903 = vst [vmem:[#allocation2 + $0x24c] sm:$0xff] %v774_v14  ;;  %v645_v14 = vmax.f32 %v421_v2, 0.0  ;;  %v790_v22 = vpack.c.bf16 %v642_v6, %v641_v5  ;;  %v446_v2 = vld [vmem:[%s5818_s0 + $0x660] sm:$0xff]  ;;  %v667_v5 = vmax.f32 %v443_v57, 0.0  ;;  %v447_v6 = vld [vmem:[%s5818_s0 + $0x668] sm:$0xff] }
  0x82   : > { %904 = vst [vmem:[#allocation2 + $0x254] sm:$0xff] %v775_v18  ;;  %v789_v18 = vpack.c.bf16 %v640_v1, %v640_v1  ;;  %v791_v26 = vpack.c.bf16 %v644_v10, %v643_v9  ;;  %v445_v1 = vld [vmem:[%s5818_s0 + $0x658] sm:$0xff]  ;;  %v668_v9 = vmax.f32 %v444_v61, 0.0 }
  0x83   : > { %905 = vst [vmem:[#allocation2 + $0x25c] sm:$0xff] %v776_v23  ;;  %v648_v23 = vmax.f32 %v424_v11, 0.0  ;;  %v792_v31 = vpack.c.bf16 %v646_v15, %v645_v14  ;;  %v449_v10 = vld [vmem:[%s5818_s0 + $0x678] sm:$0xff]  ;;  %v450_v11 = vld [vmem:[%s5818_s0 + $0x680] sm:$0xff]  ;;  %v670_v14 = vmax.f32 %v446_v2, 0.0  ;;  %v451_v15 = vld [vmem:[%s5818_s0 + $0x688] sm:$0xff] }
  0x84   : > { %906 = vst.msk [vmem:[#allocation2 + $0x264] sm:$0xf] %vm821_vm0, %v777_v28  ;;  %v651_v28 = vmax.f32 %v427_v17, 0.0  ;;  %v671_v17 = vmax.f32 %v447_v6, 0.0 }
  0x85   : > { %907 = vst [vmem:[#allocation2 + $0x268] sm:$0xff] %v778_v32  ;;  %v652_v32 = vmax.f32 %v428_v20, 0.0  ;;  %v794_v40 = vpack.c.bf16 %v649_v24, %v648_v23  ;;  %v453_v20 = vld [vmem:[%s5818_s0 + $0x698] sm:$0xff]  ;;  %v674_v23 = vmax.f32 %v450_v11, 0.0  ;;  %v454_v24 = vld [vmem:[%s5818_s0 + $0x6a0] sm:$0xff] }
  0x86   : > { %908 = vst [vmem:[#allocation2 + $0x270] sm:$0xff] %v779_v36  ;;  %v793_v36 = vpack.c.bf16 %v647_v19, %v647_v19  ;;  %v795_v44 = vpack.c.bf16 %v651_v28, %v650_v27  ;;  %v452_v19 = vld [vmem:[%s5818_s0 + $0x690] sm:$0xff]  ;;  %v675_v27 = vmax.f32 %v451_v15, 0.0 }
  0x87   : > { %909 = vst [vmem:[#allocation2 + $0x278] sm:$0xff] %v780_v41  ;;  %v655_v41 = vmax.f32 %v431_v29, 0.0  ;;  %v796_v49 = vpack.c.bf16 %v653_v33, %v652_v32  ;;  %v456_v28 = vld [vmem:[%s5818_s0 + $0x6b0] sm:$0xff]  ;;  %v457_v29 = vld [vmem:[%s5818_s0 + $0x6b8] sm:$0xff]  ;;  %v677_v32 = vmax.f32 %v453_v20, 0.0  ;;  %v458_v33 = vld [vmem:[%s5818_s0 + $0x6c0] sm:$0xff] }
  0x88   : > { %910 = vst.msk [vmem:[#allocation2 + $0x280] sm:$0xf] %vm821_vm0, %v781_v46  ;;  %v658_v46 = vmax.f32 %v434_v35, 0.0  ;;  %v678_v35 = vmax.f32 %v454_v24, 0.0 }
  0x89   : > { %911 = vst [vmem:[#allocation2 + $0x284] sm:$0xff] %v782_v50  ;;  %v659_v50 = vmax.f32 %v435_v38, 0.0  ;;  %v798_v58 = vpack.c.bf16 %v656_v42, %v655_v41  ;;  %v460_v38 = vld [vmem:[%s5818_s0 + $0x6d0] sm:$0xff]  ;;  %v681_v41 = vmax.f32 %v457_v29, 0.0  ;;  %v461_v42 = vld [vmem:[%s5818_s0 + $0x6d8] sm:$0xff] }
  0x8a   : > { %912 = vst [vmem:[#allocation2 + $0x28c] sm:$0xff] %v783_v54  ;;  %v797_v54 = vpack.c.bf16 %v654_v37, %v654_v37  ;;  %v799_v62 = vpack.c.bf16 %v658_v46, %v657_v45  ;;  %v459_v37 = vld [vmem:[%s5818_s0 + $0x6c8] sm:$0xff]  ;;  %v682_v45 = vmax.f32 %v458_v33, 0.0 }
  0x8b   : > { %913 = vst [vmem:[#allocation2 + $0x294] sm:$0xff] %v784_v59  ;;  %v662_v59 = vmax.f32 %v438_v47, 0.0  ;;  %v800_v3 = vpack.c.bf16 %v660_v51, %v659_v50  ;;  %v463_v46 = vld [vmem:[%s5818_s0 + $0x6e8] sm:$0xff]  ;;  %v464_v47 = vld [vmem:[%s5818_s0 + $0x6f0] sm:$0xff]  ;;  %v684_v50 = vmax.f32 %v460_v38, 0.0  ;;  %v465_v51 = vld [vmem:[%s5818_s0 + $0x6f8] sm:$0xff] }
  0x8c   : > { %914 = vst.msk [vmem:[#allocation2 + $0x29c] sm:$0xf] %vm821_vm0, %v785_v0  ;;  %v665_v0 = vmax.f32 %v441_v53, 0.0  ;;  %v685_v53 = vmax.f32 %v461_v42, 0.0  ;;  %v688_v57 = vmax.f32 %v464_v47, 0.0 }
  0x8d   : > { %915 = vst [vmem:[#allocation2 + $0x2a0] sm:$0xff] %v786_v4  ;;  %v666_v4 = vmax.f32 %v442_v56, 0.0  ;;  %v802_v12 = vpack.c.bf16 %v663_v60, %v662_v59  ;;  %v687_v56 = vmax.f32 %v463_v46, 0.0  ;;  %v689_v59 = vmax.f32 %v465_v51, 0.0 }
  0x8e   : > { %916 = vst [vmem:[#allocation2 + $0x2a8] sm:$0xff] %v787_v8  ;;  %v801_v8 = vpack.c.bf16 %v661_v55, %v661_v55  ;;  %v803_v16 = vpack.c.bf16 %v665_v0, %v664_v63 }
  0x8f   : > { %917 = vst [vmem:[#allocation2 + $0x2b0] sm:$0xff] %v788_v13  ;;  %v669_v13 = vmax.f32 %v445_v1, 0.0  ;;  %v804_v21 = vpack.c.bf16 %v667_v5, %v666_v4  ;;  %v817_v63 = vpack.c.bf16 %v689_v59, %v689_v59 }
  0x90   : > { %918 = vst.msk [vmem:[#allocation2 + $0x2b8] sm:$0xf] %vm821_vm0, %v789_v18  ;;  %v672_v18 = vmax.f32 %v448_v7, 0.0 }
  0x91   : > { %919 = vst [vmem:[#allocation2 + $0x2bc] sm:$0xff] %v790_v22  ;;  %v673_v22 = vmax.f32 %v449_v10, 0.0  ;;  %v806_v30 = vpack.c.bf16 %v670_v14, %v669_v13 }
  0x92   : > { %920 = vst [vmem:[#allocation2 + $0x2c4] sm:$0xff] %v791_v26  ;;  %v805_v26 = vpack.c.bf16 %v668_v9, %v668_v9  ;;  %v807_v34 = vpack.c.bf16 %v672_v18, %v671_v17 }
  0x93   : > { %921 = vst [vmem:[#allocation2 + $0x2cc] sm:$0xff] %v792_v31  ;;  %v676_v31 = vmax.f32 %v452_v19, 0.0  ;;  %v808_v39 = vpack.c.bf16 %v674_v23, %v673_v22 }
  0x94   : > { %922 = vst.msk [vmem:[#allocation2 + $0x2d4] sm:$0xf] %vm821_vm0, %v793_v36  ;;  %v679_v36 = vmax.f32 %v455_v25, 0.0 }
  0x95   : > { %923 = vst [vmem:[#allocation2 + $0x2d8] sm:$0xff] %v794_v40  ;;  %v680_v40 = vmax.f32 %v456_v28, 0.0  ;;  %v810_v48 = vpack.c.bf16 %v677_v32, %v676_v31 }
  0x96   : > { %924 = vst [vmem:[#allocation2 + $0x2e0] sm:$0xff] %v795_v44  ;;  %v809_v44 = vpack.c.bf16 %v675_v27, %v675_v27  ;;  %v811_v52 = vpack.c.bf16 %v679_v36, %v678_v35 }
  0x97   : > { %925 = vst [vmem:[#allocation2 + $0x2e8] sm:$0xff] %v796_v49  ;;  %v683_v49 = vmax.f32 %v459_v37, 0.0  ;;  %v812_v55 = vpack.c.bf16 %v681_v41, %v680_v40 }
  0x98   : > { %926 = vst.msk [vmem:[#allocation2 + $0x2f0] sm:$0xf] %vm821_vm0, %v797_v54  ;;  %v686_v54 = vmax.f32 %v462_v43, 0.0 }
  0x99   : > { %927 = vst [vmem:[#allocation2 + $0x2f4] sm:$0xff] %v798_v58  ;;  %v813_v58 = vpack.c.bf16 %v682_v45, %v682_v45  ;;  %v814_v60 = vpack.c.bf16 %v684_v50, %v683_v49 }
  0x9a   : > { %928 = vst [vmem:[#allocation2 + $0x2fc] sm:$0xff] %v799_v62  ;;  %v815_v61 = vpack.c.bf16 %v686_v54, %v685_v53  ;;  %v816_v62 = vpack.c.bf16 %v688_v57, %v687_v56 }
  0x9b   : > { %929 = vst [vmem:[#allocation2 + $0x304] sm:$0xff] %v800_v3 }
  0x9c   : > { %930 = vst.msk [vmem:[#allocation2 + $0x30c] sm:$0xf] %vm821_vm0, %v801_v8 }
  0x9d   : > { %931 = vst [vmem:[#allocation2 + $0x310] sm:$0xff] %v802_v12 }
  0x9e   : > { %932 = vst [vmem:[#allocation2 + $0x318] sm:$0xff] %v803_v16 }
  0x9f   : > { %933 = vst [vmem:[#allocation2 + $0x320] sm:$0xff] %v804_v21 }
  0xa0   : > { %934 = vst.msk [vmem:[#allocation2 + $0x328] sm:$0xf] %vm821_vm0, %v805_v26 }
  0xa1   : > { %935 = vst [vmem:[#allocation2 + $0x32c] sm:$0xff] %v806_v30 }
  0xa2   : > { %936 = vst [vmem:[#allocation2 + $0x334] sm:$0xff] %v807_v34 }
  0xa3   : > { %937 = vst [vmem:[#allocation2 + $0x33c] sm:$0xff] %v808_v39 }
  0xa4   : > { %938 = vst.msk [vmem:[#allocation2 + $0x344] sm:$0xf] %vm821_vm0, %v809_v44 }
  0xa5   : > { %939 = vst [vmem:[#allocation2 + $0x348] sm:$0xff] %v810_v48 }
  0xa6   : > { %940 = vst [vmem:[#allocation2 + $0x350] sm:$0xff] %v811_v52 }
  0xa7   : > { %941 = vst [vmem:[#allocation2 + $0x358] sm:$0xff] %v812_v55 }
  0xa8   : > { %942 = vst.msk [vmem:[#allocation2 + $0x360] sm:$0xf] %vm821_vm0, %v813_v58 }
  0xa9   : > { %943 = vst [vmem:[#allocation2 + $0x364] sm:$0xff] %v814_v60 }
  0xaa   : > { %944 = vst [vmem:[#allocation2 + $0x36c] sm:$0xff] %v815_v61 }
  0xab   : > { %945 = vst [vmem:[#allocation2 + $0x374] sm:$0xff] %v816_v62 }
  0xac   : > { %946 = vst.msk [vmem:[#allocation2 + $0x37c] sm:$0xf] %vm821_vm0, %v817_v63 }
  0xad PF: > { %v3787_v0 = vld [vmem:[#allocation2 + $0x188] sm:$0xf]  ;;  %v4125_v1 = vld [vmem:[#allocation2 + $0x1a0] sm:$0xf0]  ;;  %v3759_v5 = vld [vmem:[#allocation2 + $0x150] sm:$0xf] }
  0xae   : > { %v4011_v2 = vld [vmem:[#allocation2 + $0x348] sm:$0xf]  ;;  %v3788_v3 = vor.u32 %v4125_v1, %v3787_v0  ;;  %v4118_v6 = vld [vmem:[#allocation2 + $0x168] sm:$0xf0]  ;;  %v3983_v8 = vld [vmem:[#allocation2 + $0x310] sm:$0xf] }
  0xaf   : > { %v4174_v9 = vld [vmem:[#allocation2 + $0x328] sm:$0xf0]  ;;  %v3760_v10 = vor.u32 %v4118_v6, %v3759_v5  ;;  %v3731_v12 = vld [vmem:[#allocation2 + $0x118] sm:$0xf]  ;;  %v4111_v13 = vld [vmem:[#allocation2 + $0x130] sm:$0xf0] }
  0xb0   : > { %v4181_v4 = vld [vmem:[#allocation2 + $0x360] sm:$0xf0]  ;;  %1843 = vmatpush.bf16.msra.mxu0 %v3788_v3  ;;  %4185 = vmatpush.bf16.msra.mxu2 %v3788_v3  ;;  %v3984_v11 = vor.u32 %v4174_v9, %v3983_v8  ;;  %v3955_v14 = vld [vmem:[#allocation2 + $0x2d8] sm:$0xf]  ;;  %v4167_v15 = vld [vmem:[#allocation2 + $0x2f0] sm:$0xf0]  ;;  %v3732_v16 = vor.u32 %v4111_v13, %v3731_v12 }
  0xb1   : > { %v4012_v7 = vor.u32 %v4181_v4, %v4011_v2  ;;  %v3956_v17 = vor.u32 %v4167_v15, %v3955_v14  ;;  %v3703_v18 = vld [vmem:[#allocation2 + $0xe0] sm:$0xf]  ;;  %v4104_v19 = vld [vmem:[#allocation2 + $0xf8] sm:$0xf0]  ;;  %v3675_v24 = vld [vmem:[#allocation2 + $0xa8] sm:$0xf] }
  0xb2   : > { %v3927_v20 = vld [vmem:[#allocation2 + $0x2a0] sm:$0xf]  ;;  %v4160_v21 = vld [vmem:[#allocation2 + $0x2b8] sm:$0xf0]  ;;  %v3704_v22 = vor.u32 %v4104_v19, %v3703_v18  ;;  %v4097_v25 = vld [vmem:[#allocation2 + $0xc0] sm:$0xf0] }
  0xb3   : > { %1932 = vmatpush.bf16.msra.mxu1 %v4012_v7  ;;  %4193 = vmatpush.bf16.msra.mxu3 %v4012_v7  ;;  %v3928_v23 = vor.u32 %v4160_v21, %v3927_v20  ;;  %v3899_v26 = vld [vmem:[#allocation2 + $0x268] sm:$0xf]  ;;  %v4153_v27 = vld [vmem:[#allocation2 + $0x280] sm:$0xf0]  ;;  %v3676_v28 = vor.u32 %v4097_v25, %v3675_v24  ;;  %v3647_v30 = vld [vmem:[#allocation2 + $0x70] sm:$0xf] }
  0xb4   : > { %1844 = vmatpush.bf16.msra.mxu0 %v3760_v10  ;;  %4186 = vmatpush.bf16.msra.mxu2 %v3760_v10  ;;  %v3900_v29 = vor.u32 %v4153_v27, %v3899_v26  ;;  %v4090_v31 = vld [vmem:[#allocation2 + $0x88] sm:$0xf0]  ;;  %v3871_v32 = vld [vmem:[#allocation2 + $0x230] sm:$0xf]  ;;  %v3619_v36 = vld [vmem:[#allocation2 + $0x38] sm:$0xf] }
  0xb5   : > { %v4146_v33 = vld [vmem:[#allocation2 + $0x248] sm:$0xf0]  ;;  %v3648_v34 = vor.u32 %v4090_v31, %v3647_v30  ;;  %v4083_v37 = vld [vmem:[#allocation2 + $0x50] sm:$0xf0]  ;;  %v3843_v38 = vld [vmem:[#allocation2 + $0x1f8] sm:$0xf] }
  0xb6   : > { %v3872_v35 = vor.u32 %v4146_v33, %v3871_v32  ;;  %v4139_v39 = vld [vmem:[#allocation2 + $0x210] sm:$0xf0]  ;;  %v3620_v40 = vor.u32 %v4083_v37, %v3619_v36  ;;  %v3591_v41 = vld [vmem:[#allocation2] sm:$0xf]  ;;  %v4076_v43 = vld [vmem:[#allocation2 + $0x18] sm:$0xf0] }
  0xb7   : > { %1933 = vmatpush.bf16.msra.mxu1 %v3984_v11  ;;  %4194 = vmatpush.bf16.msra.mxu3 %v3984_v11  ;;  %v3844_v42 = vor.u32 %v4139_v39, %v3843_v38  ;;  %v3815_v44 = vld [vmem:[#allocation2 + $0x1c0] sm:$0xf]  ;;  %v4132_v45 = vld [vmem:[#allocation2 + $0x1d8] sm:$0xf0]  ;;  %v4042_v47 = vld [vmem:[%s4468_s27 + $0x4] sm:$0xf0]  ;;  %v3592_v54 = vor.u32 %v4076_v43, %v3591_v41 }
  0xb8   : > { %1845 = vmatpush.bf16.msra.mxu0 %v3732_v16  ;;  %4187 = vmatpush.bf16.msra.mxu2 %v3732_v16  ;;  %v3463_v46 = vld [vmem:[%s4468_s27] sm:$0xf]  ;;  %v4058_v49 = vld [vmem:[%s4468_s27 + $0x84] sm:$0xf0]  ;;  %v4122_v50 = vld [vmem:[#allocation2 + $0x18c] sm:$0xf]  ;;  %v3816_v58 = vor.u32 %v4132_v45, %v3815_v44 }
  0xb9   : > { %v3527_v48 = vld [vmem:[%s4468_s27 + $0x80] sm:$0xf]  ;;  %v3789_v51 = vld [vmem:[#allocation2 + $0x1a4] sm:$0xf0]  ;;  %v4178_v52 = vld [vmem:[#allocation2 + $0x34c] sm:$0xf]  ;;  %v5194_v3 = vor.u32 %v4042_v47, %v3463_v46 }
  0xba   : > { %v4013_v53 = vld [vmem:[#allocation2 + $0x364] sm:$0xf0]  ;;  %v4041_v55 = vld [vmem:[%s4468_s27 + $0x4] sm:$0xf]  ;;  %v3465_v56 = vld [vmem:[%s4468_s27 + $0x8] sm:$0xf0]  ;;  %v3792_v62 = vor.u32 %v4122_v50, %v3789_v51  ;;  %v5196_v4 = vor.u32 %v4058_v49, %v3527_v48 }
  0xbb   : > { %1934 = vmatpush.bf16.msra.mxu1 %v3956_v17  ;;  %4195 = vmatpush.bf16.msra.mxu3 %v3956_v17  ;;  %v4057_v57 = vld [vmem:[%s4468_s27 + $0x84] sm:$0xf]  ;;  %v3529_v59 = vld [vmem:[%s4468_s27 + $0x88] sm:$0xf0]  ;;  %v3795_v60 = vld [vmem:[#allocation2 + $0x190] sm:$0xf]  ;;  %v4016_v63 = vor.u32 %v4178_v52, %v4013_v53  ;;  %v5198_v8 = vor.u32 %v4041_v55, %v3465_v56 }
  0xbc   : > { %1846 = vmatpush.bf16.msra.mxu0 %v3704_v22  ;;  %4188 = vmatpush.bf16.msra.mxu2 %v3704_v22  ;;  %v4126_v61 = vld [vmem:[#allocation2 + $0x1a8] sm:$0xf0]  ;;  %v4019_v0 = vld [vmem:[#allocation2 + $0x350] sm:$0xf]  ;;  %v4115_v2 = vld [vmem:[#allocation2 + $0x154] sm:$0xf]  ;;  %v5200_v9 = vor.u32 %v4057_v57, %v3529_v59 }
  0xbd   : > { %v4182_v1 = vld [vmem:[#allocation2 + $0x368] sm:$0xf0]  ;;  %v3761_v5 = vld [vmem:[#allocation2 + $0x16c] sm:$0xf0]  ;;  %v4171_v6 = vld [vmem:[#allocation2 + $0x314] sm:$0xf]  ;;  %v3796_v10 = vor.u32 %v4126_v61, %v3795_v60 }
  0xbe   : > { %v3985_v7 = vld [vmem:[#allocation2 + $0x32c] sm:$0xf0]  ;;  %v4020_v11 = vor.u32 %v4182_v1, %v4019_v0  ;;  %v3767_v12 = vld [vmem:[#allocation2 + $0x158] sm:$0xf]  ;;  %v3764_v13 = vor.u32 %v4115_v2, %v3761_v5  ;;  %v4119_v15 = vld [vmem:[#allocation2 + $0x170] sm:$0xf0] }
  0xbf   : > { %1935 = vmatpush.bf16.msra.mxu1 %v3928_v23  ;;  %4196 = vmatpush.bf16.msra.mxu3 %v3928_v23  ;;  %v3988_v14 = vor.u32 %v4171_v6, %v3985_v7  ;;  %v3991_v16 = vld [vmem:[#allocation2 + $0x318] sm:$0xf]  ;;  %v4175_v17 = vld [vmem:[#allocation2 + $0x330] sm:$0xf0]  ;;  %v4108_v18 = vld [vmem:[#allocation2 + $0x11c] sm:$0xf]  ;;  %v3768_v21 = vor.u32 %v4119_v15, %v3767_v12 }
  0xc0   : > { %1847 = vmatpush.bf16.msra.mxu0 %v3676_v28  ;;  %4189 = vmatpush.bf16.msra.mxu2 %v3676_v28  ;;  %v3733_v19 = vld [vmem:[#allocation2 + $0x134] sm:$0xf0]  ;;  %v4164_v20 = vld [vmem:[#allocation2 + $0x2dc] sm:$0xf]  ;;  %v3992_v22 = vor.u32 %v4175_v17, %v3991_v16  ;;  %v3739_v24 = vld [vmem:[#allocation2 + $0x120] sm:$0xf] }
  0xc1   : > { %v3957_v23 = vld [vmem:[#allocation2 + $0x2f4] sm:$0xf0]  ;;  %v3736_v25 = vor.u32 %v4108_v18, %v3733_v19  ;;  %v4112_v27 = vld [vmem:[#allocation2 + $0x138] sm:$0xf0]  ;;  %v3963_v28 = vld [vmem:[#allocation2 + $0x2e0] sm:$0xf] }
  0xc2   : > { %v3960_v26 = vor.u32 %v4164_v20, %v3957_v23  ;;  %v3740_v30 = vor.u32 %v4112_v27, %v3739_v24  ;;  %v3471_v32 = vld [vmem:[%s4468_s27 + $0x10] sm:$0xf]  ;;  %v4044_v33 = vld [vmem:[%s4468_s27 + $0x14] sm:$0xf0]  ;;  %v4043_v36 = vld [vmem:[%s4468_s27 + $0x14] sm:$0xf] }
  0xc3   : > { %1936 = vmatpush.bf16.msra.mxu1 %v3900_v29  ;;  %4197 = vmatpush.bf16.msra.mxu3 %v3900_v29  ;;  %v4168_v29 = vld [vmem:[#allocation2 + $0x2f8] sm:$0xf0]  ;;  %v4059_v38 = vld [vmem:[%s4468_s27 + $0x94] sm:$0xf]  ;;  %v4101_v44 = vld [vmem:[#allocation2 + $0xe4] sm:$0xf] }
  0xc4   : > { %1848 = vmatpush.bf16.msra.mxu0 %v3648_v34  ;;  %4190 = vmatpush.bf16.msra.mxu2 %v3648_v34  ;;  %v3964_v31 = vor.u32 %v4168_v29, %v3963_v28  ;;  %v3535_v34 = vld [vmem:[%s4468_s27 + $0x90] sm:$0xf]  ;;  %v3473_v37 = vld [vmem:[%s4468_s27 + $0x18] sm:$0xf0]  ;;  %v3705_v45 = vld [vmem:[#allocation2 + $0xfc] sm:$0xf0] }
  0xc5   : > { %v3537_v39 = vld [vmem:[%s4468_s27 + $0x98] sm:$0xf0]  ;;  %v4157_v46 = vld [vmem:[#allocation2 + $0x2a4] sm:$0xf]  ;;  %v3708_v47 = vor.u32 %v4101_v44, %v3705_v45  ;;  %v3929_v48 = vld [vmem:[#allocation2 + $0x2bc] sm:$0xf0] }
  0xc6   : > { %v5220_v43 = vor.u32 %v4059_v38, %v3537_v39  ;;  %v3711_v49 = vld [vmem:[#allocation2 + $0xe8] sm:$0xf]  ;;  %v4105_v50 = vld [vmem:[#allocation2 + $0x100] sm:$0xf0]  ;;  %v3932_v51 = vor.u32 %v4157_v46, %v3929_v48  ;;  %v3479_v56 = vld [vmem:[%s4468_s27 + $0x20] sm:$0xf] }
  0xc7   : > { %1937 = vmatpush.bf16.msra.mxu1 %v3872_v35  ;;  %4198 = vmatpush.bf16.msra.mxu3 %v3872_v35  ;;  %v4060_v35 = vld [vmem:[%s4468_s27 + $0x94] sm:$0xf0]  ;;  %v3712_v52 = vor.u32 %v4105_v50, %v3711_v49  ;;  %v3935_v53 = vld [vmem:[#allocation2 + $0x2a8] sm:$0xf]  ;;  %v4045_v60 = vld [vmem:[%s4468_s27 + $0x24] sm:$0xf] }
  0xc8   : > { %1849 = vmatpush.bf16.msra.mxu0 %v3620_v40  ;;  %4191 = vmatpush.bf16.msra.mxu2 %v3620_v40  ;;  %v5214_v40 = vor.u32 %v4044_v33, %v3471_v32  ;;  %v5216_v41 = vor.u32 %v4060_v35, %v3535_v34  ;;  %v4046_v57 = vld [vmem:[%s4468_s27 + $0x24] sm:$0xf0]  ;;  %v3481_v61 = vld [vmem:[%s4468_s27 + $0x28] sm:$0xf0]  ;;  %v3907_v17 = vld [vmem:[#allocation2 + $0x270] sm:$0xf] }
  0xc9   : > { %v4062_v59 = vld [vmem:[%s4468_s27 + $0xa4] sm:$0xf0]  ;;  %v5234_v0 = vor.u32 %v4046_v57, %v3479_v56  ;;  %v5238_v2 = vor.u32 %v4045_v60, %v3481_v61  ;;  %v4094_v6 = vld [vmem:[#allocation2 + $0xac] sm:$0xf]  ;;  %v3487_v20 = vld [vmem:[%s4468_s27 + $0x30] sm:$0xf] }
  0xca   : > { %v3677_v7 = vld [vmem:[#allocation2 + $0xc4] sm:$0xf0]  ;;  %v4154_v18 = vld [vmem:[#allocation2 + $0x288] sm:$0xf0]  ;;  %v4064_v23 = vld [vmem:[%s4468_s27 + $0xb4] sm:$0xf0] }
  0xcb   : > { %1938 = vmatpush.bf16.msra.mxu1 %v3844_v42  ;;  %4199 = vmatpush.bf16.msra.mxu3 %v3844_v42  ;;  %v5218_v42 = vor.u32 %v4043_v36, %v3473_v37  ;;  %v3901_v12 = vld [vmem:[#allocation2 + $0x284] sm:$0xf0]  ;;  %v3908_v19 = vor.u32 %v4154_v18, %v3907_v17  ;;  %v4047_v24 = vld [vmem:[%s4468_s27 + $0x34] sm:$0xf]  ;;  %v3553_v27 = vld [vmem:[%s4468_s27 + $0xb8] sm:$0xf0] }
  0xcc   : > { %1850 = vmatpush.bf16.msra.mxu0 %v3592_v54  ;;  %4192 = vmatpush.bf16.msra.mxu2 %v3592_v54  ;;  %v4161_v54 = vld [vmem:[#allocation2 + $0x2c0] sm:$0xf0]  ;;  %v4087_v32 = vld [vmem:[#allocation2 + $0x74] sm:$0xf]  ;;  %v3649_v33 = vld [vmem:[#allocation2 + $0x8c] sm:$0xf0] }
  0xcd   : > { %v3936_v55 = vor.u32 %v4161_v54, %v3935_v53  ;;  %v4143_v34 = vld [vmem:[#allocation2 + $0x234] sm:$0xf]  ;;  %v3652_v35 = vor.u32 %v4087_v32, %v3649_v33  ;;  %v3873_v36 = vld [vmem:[#allocation2 + $0x24c] sm:$0xf0]  ;;  %v3655_v37 = vld [vmem:[#allocation2 + $0x78] sm:$0xf] }
  0xce   : > { %v4091_v38 = vld [vmem:[#allocation2 + $0x90] sm:$0xf0]  ;;  %v3876_v39 = vor.u32 %v4143_v34, %v3873_v36  ;;  %v3879_v45 = vld [vmem:[#allocation2 + $0x238] sm:$0xf]  ;;  %v3495_v48 = vld [vmem:[%s4468_s27 + $0x40] sm:$0xf] }
  0xcf   : > { %1939 = vmatpush.bf16.msra.mxu1 %v3816_v58  ;;  %4200 = vmatpush.bf16.msra.mxu3 %v3816_v58  ;;  %v3543_v58 = vld [vmem:[%s4468_s27 + $0xa0] sm:$0xf]  ;;  %v3656_v44 = vor.u32 %v4091_v38, %v3655_v37  ;;  %v4147_v46 = vld [vmem:[#allocation2 + $0x250] sm:$0xf0]  ;;  %v4050_v49 = vld [vmem:[%s4468_s27 + $0x44] sm:$0xf0] }
  0xd0   : > { %2021 = vmatpush.bf16.msrb.mxu2 %v3792_v62  ;;  %1851 = vmatmul.bf16.vlgmr.msra.gmra.mxu0 %v5194_v3  ;;  %v4061_v62 = vld [vmem:[%s4468_s27 + $0xa4] sm:$0xf]  ;;  %v5236_v1 = vor.u32 %v4062_v59, %v3543_v58  ;;  %v3559_v50 = vld [vmem:[%s4468_s27 + $0xc0] sm:$0xf]  ;;  %v3497_v53 = vld [vmem:[%s4468_s27 + $0x48] sm:$0xf0]  ;;  %v5274_v56 = vor.u32 %v4050_v49, %v3495_v48 }
  0xd1   : > { %1891 = vmatmul.bf16.vlgmr.msra.gmra.mxu2 %v5196_v4  ;;  %2199 = vmatpush.bf16.msrb.mxu0 %v3796_v10  ;;  %v4150_v10 = vld [vmem:[#allocation2 + $0x26c] sm:$0xf]  ;;  %v4065_v54 = vld [vmem:[%s4468_s27 + $0xc4] sm:$0xf]  ;;  %v4080_v60 = vld [vmem:[#allocation2 + $0x3c] sm:$0xf] }
  0xd2   : > { %1940 = vmatmul.bf16.vlgmr.msra.gmra.mxu1 %v5198_v8  ;;  %1980 = vmatmul.bf16.vlgmr.msra.gmra.mxu3 %v5200_v9  ;;  %v3904_v15 = vor.u32 %v4150_v10, %v3901_v12  ;;  %v3621_v61 = vld [vmem:[#allocation2 + $0x54] sm:$0xf0]  ;;  %v4084_v10 = vld [vmem:[#allocation2 + $0x58] sm:$0xf0]  ;;  %v3567_v18 = vld [vmem:[%s4468_s27 + $0xd0] sm:$0xf] }
  0xd3   : > { %2110 = vmatpush.bf16.msrb.mxu3 %v4016_v63  ;;  %2288 = vmatpush.bf16.msrb.mxu1 %v4020_v11  ;;  %v3545_v63 = vld [vmem:[%s4468_s27 + $0xa8] sm:$0xf0]  ;;  %v3680_v11 = vor.u32 %v4094_v6, %v3677_v7  ;;  %v3845_v6 = vld [vmem:[#allocation2 + $0x214] sm:$0xf0]  ;;  %v3627_v7 = vld [vmem:[#allocation2 + $0x40] sm:$0xf] }
  0xd4   : > { %2022 = vmatpush.bf16.msrb.mxu2 %v3764_v13  ;;  %v5240_v5 = vor.u32 %v4061_v62, %v3545_v63  ;;  %v3683_v13 = vld [vmem:[#allocation2 + $0xb0] sm:$0xf]  ;;  %v4136_v62 = vld [vmem:[#allocation2 + $0x1fc] sm:$0xf]  ;;  %v3624_v63 = vor.u32 %v4080_v60, %v3621_v61  ;;  %v3628_v12 = vor.u32 %v4084_v10, %v3627_v7  ;;  %v4052_v17 = vld [vmem:[%s4468_s27 + $0x54] sm:$0xf0] }
  0xd5   : > { %2200 = vmatpush.bf16.msrb.mxu0 %v3768_v21  ;;  %v4048_v21 = vld [vmem:[%s4468_s27 + $0x34] sm:$0xf0]  ;;  %v4073_v32 = vld [vmem:[#allocation2 + $0x4] sm:$0xf]  ;;  %v3593_v33 = vld [vmem:[#allocation2 + $0x1c] sm:$0xf0] }
  0xd6   : > { %v5254_v28 = vor.u32 %v4048_v21, %v3487_v20  ;;  %v4051_v20 = vld [vmem:[%s4468_s27 + $0x54] sm:$0xf]  ;;  %v3505_v21 = vld [vmem:[%s4468_s27 + $0x58] sm:$0xf0]  ;;  %v4129_v34 = vld [vmem:[#allocation2 + $0x1c4] sm:$0xf] }
  0xd7   : > { %2111 = vmatpush.bf16.msrb.mxu3 %v3988_v14  ;;  %2289 = vmatpush.bf16.msrb.mxu1 %v3992_v22  ;;  %v4098_v14 = vld [vmem:[#allocation2 + $0xc8] sm:$0xf0]  ;;  %v3551_v22 = vld [vmem:[%s4468_s27 + $0xb0] sm:$0xf]  ;;  %v3817_v36 = vld [vmem:[#allocation2 + $0x1dc] sm:$0xf0] }
  0xd8   : > { %2023 = vmatpush.bf16.msrb.mxu2 %v3736_v25  ;;  %v3684_v16 = vor.u32 %v4098_v14, %v3683_v13  ;;  %v3489_v25 = vld [vmem:[%s4468_s27 + $0x38] sm:$0xf0]  ;;  %v5256_v29 = vor.u32 %v4064_v23, %v3551_v22  ;;  %v3851_v13 = vld [vmem:[#allocation2 + $0x200] sm:$0xf]  ;;  %v4067_v22 = vld [vmem:[%s4468_s27 + $0xd4] sm:$0xf] }
  0xd9   : > { %2201 = vmatpush.bf16.msrb.mxu0 %v3740_v30  ;;  %v5258_v30 = vor.u32 %v4047_v24, %v3489_v25  ;;  %v4140_v14 = vld [vmem:[#allocation2 + $0x218] sm:$0xf0]  ;;  %v3599_v37 = vld [vmem:[#allocation2 + $0x8] sm:$0xf]  ;;  %v4077_v38 = vld [vmem:[#allocation2 + $0x20] sm:$0xf0] }
  0xda   : > { %v3569_v23 = vld [vmem:[%s4468_s27 + $0xd8] sm:$0xf0]  ;;  %v3511_v48 = vld [vmem:[%s4468_s27 + $0x60] sm:$0xf]  ;;  %v4054_v49 = vld [vmem:[%s4468_s27 + $0x64] sm:$0xf0] }
  0xdb   : > { %2112 = vmatpush.bf16.msrb.mxu3 %v3960_v26  ;;  %2290 = vmatpush.bf16.msrb.mxu1 %v3964_v31  ;;  %v4063_v26 = vld [vmem:[%s4468_s27 + $0xb4] sm:$0xf]  ;;  %v5314_v60 = vor.u32 %v4054_v49, %v3511_v48  ;;  %v3797_v7 = vld [vmem:[#allocation2 + $0x1ac] sm:$0xf0]  ;;  %v3769_v48 = vld [vmem:[#allocation2 + $0x174] sm:$0xf0] }
  0xdc   : > { %2024 = vmatpush.bf16.msrb.mxu2 %v3708_v47  ;;  %v5260_v31 = vor.u32 %v4063_v26, %v3553_v27  ;;  %v3880_v47 = vor.u32 %v4147_v46, %v3879_v45  ;;  %v5298_v26 = vor.u32 %v4051_v20, %v3505_v21  ;;  %v5300_v27 = vor.u32 %v4067_v22, %v3569_v23  ;;  %v3823_v45 = vld [vmem:[#allocation2 + $0x1c8] sm:$0xf]  ;;  %v4133_v46 = vld [vmem:[#allocation2 + $0x1e0] sm:$0xf0]  ;;  %v4179_v10 = vld [vmem:[#allocation2 + $0x354] sm:$0xf] }
  0xdd   : > { %2202 = vmatpush.bf16.msrb.mxu0 %v3712_v52  ;;  %v4049_v52 = vld [vmem:[%s4468_s27 + $0x44] sm:$0xf]  ;;  %v3803_v20 = vld [vmem:[#allocation2 + $0x198] sm:$0xf]  ;;  %v4127_v21 = vld [vmem:[#allocation2 + $0x1b0] sm:$0xf0] }
  0xde   : > { %v5278_v58 = vor.u32 %v4049_v52, %v3497_v53  ;;  %v4053_v52 = vld [vmem:[%s4468_s27 + $0x64] sm:$0xf]  ;;  %v3513_v53 = vld [vmem:[%s4468_s27 + $0x68] sm:$0xf0]  ;;  %v4027_v22 = vld [vmem:[#allocation2 + $0x358] sm:$0xf] }
  0xdf   : > { %2113 = vmatpush.bf16.msrb.mxu3 %v3932_v51  ;;  %2291 = vmatpush.bf16.msrb.mxu1 %v3936_v55  ;;  %v4066_v51 = vld [vmem:[%s4468_s27 + $0xc4] sm:$0xf0]  ;;  %v3561_v55 = vld [vmem:[%s4468_s27 + $0xc8] sm:$0xf0]  ;;  %v4071_v23 = vld [vmem:[%s4468_s27 + $0xf4] sm:$0xf] }
  0xe0   : > { %1856 = vmatmul.bf16.gmra.mxu0 %v5214_v40  ;;  %2025 = vmatpush.bf16.msrb.mxu2 %v3680_v11  ;;  %v5276_v57 = vor.u32 %v4066_v51, %v3559_v50  ;;  %v5280_v59 = vor.u32 %v4065_v54, %v3561_v55  ;;  %v3848_v11 = vor.u32 %v4136_v62, %v3845_v6  ;;  %v3575_v50 = vld [vmem:[%s4468_s27 + $0xe0] sm:$0xf]  ;;  %v4070_v51 = vld [vmem:[%s4468_s27 + $0xe4] sm:$0xf0]  ;;  %v4069_v54 = vld [vmem:[%s4468_s27 + $0xe4] sm:$0xf] }
  0xe1   : > { %1896 = vmatmul.bf16.gmra.mxu2 %v5216_v41  ;;  %2203 = vmatpush.bf16.msrb.mxu0 %v3684_v16  ;;  %v3503_v16 = vld [vmem:[%s4468_s27 + $0x50] sm:$0xf]  ;;  %v3577_v55 = vld [vmem:[%s4468_s27 + $0xe8] sm:$0xf0]  ;;  %v5316_v61 = vor.u32 %v4070_v51, %v3575_v50  ;;  %v5318_v62 = vor.u32 %v4053_v52, %v3513_v53  ;;  %v4123_v6 = vld [vmem:[#allocation2 + $0x194] sm:$0xf] }
  0xe2   : > { %1945 = vmatmul.bf16.gmra.mxu1 %v5218_v42  ;;  %1985 = vmatmul.bf16.gmra.mxu3 %v5220_v43  ;;  %v5294_v24 = vor.u32 %v4052_v17, %v3503_v16  ;;  %v3583_v16 = vld [vmem:[%s4468_s27 + $0xf0] sm:$0xf]  ;;  %v4072_v17 = vld [vmem:[%s4468_s27 + $0xf4] sm:$0xf0]  ;;  %v4172_v49 = vld [vmem:[#allocation2 + $0x31c] sm:$0xf] }
  0xe3   : > { %2114 = vmatpush.bf16.msrb.mxu3 %v3904_v15  ;;  %2292 = vmatpush.bf16.msrb.mxu1 %v3908_v19  ;;  %v3852_v15 = vor.u32 %v4140_v14, %v3851_v13  ;;  %v4068_v19 = vld [vmem:[%s4468_s27 + $0xd4] sm:$0xf0]  ;;  %v3519_v14 = vld [vmem:[%s4468_s27 + $0x70] sm:$0xf]  ;;  %vm3095_vm1 = vcmask 130048  }
  0xe4   : > { %2026 = vmatpush.bf16.msrb.mxu2 %v3652_v35  ;;  %v5296_v25 = vor.u32 %v4068_v19, %v3567_v18  ;;  %v3596_v35 = vor.u32 %v4073_v32, %v3593_v33  ;;  %v4055_v18 = vld [vmem:[%s4468_s27 + $0x74] sm:$0xf]  ;;  %v3521_v19 = vld [vmem:[%s4468_s27 + $0x78] sm:$0xf0]  ;;  %v3804_v33 = vor.u32 %v4127_v21, %v3803_v20  ;;  %v3993_v51 = vld [vmem:[#allocation2 + $0x334] sm:$0xf0] }
  0xe5   : > { %2204 = vmatpush.bf16.msrb.mxu0 %v3656_v44  ;;  %v3600_v44 = vor.u32 %v4077_v38, %v3599_v37  ;;  %v3585_v32 = vld [vmem:[%s4468_s27 + $0xf8] sm:$0xf0]  ;;  %v5336_v37 = vor.u32 %v4072_v17, %v3583_v16  ;;  %v5338_v38 = vor.u32 %v4055_v18, %v3521_v19  ;;  %v3996_v53 = vor.u32 %v4172_v49, %v3993_v51  ;;  %v4109_v51 = vld [vmem:[#allocation2 + $0x124] sm:$0xf] }
  0xe7   : > { %2115 = vmatpush.bf16.msrb.mxu3 %v3876_v39  ;;  %2293 = vmatpush.bf16.msrb.mxu1 %v3880_v47  ;;  %v3820_v39 = vor.u32 %v4129_v34, %v3817_v36  ;;  %v3824_v47 = vor.u32 %v4133_v46, %v3823_v45  ;;  %v4183_v34 = vld [vmem:[#allocation2 + $0x370] sm:$0xf0] }
  0xe8   : > { %2027 = vmatpush.bf16.msrb.mxu2 %v3624_v63  ;;  %v5320_v63 = vor.u32 %v4069_v54, %v3577_v55 }
  0xe9   : > { %2205 = vmatpush.bf16.msrb.mxu0 %v3628_v12  ;;  %v4021_v12 = vld [vmem:[#allocation2 + $0x36c] sm:$0xf0] }
  0xea   : > { %v4024_v13 = vor.u32 %v4179_v10, %v4021_v12  ;;  %v4120_v12 = vld [vmem:[#allocation2 + $0x178] sm:$0xf0] }
  0xeb   : > { %2116 = vmatpush.bf16.msrb.mxu3 %v3848_v11  ;;  %2294 = vmatpush.bf16.msrb.mxu1 %v3852_v15  ;;  %v3800_v11 = vor.u32 %v4123_v6, %v3797_v7  ;;  %v4056_v15 = vld [vmem:[%s4468_s27 + $0x74] sm:$0xf0] }
  0xec   : > { %2028 = vmatpush.bf16.msrb.mxu2 %v3596_v35  ;;  %v4028_v35 = vor.u32 %v4183_v34, %v4027_v22  ;;  %v5334_v36 = vor.u32 %v4056_v15, %v3519_v14  ;;  %v3999_v14 = vld [vmem:[#allocation2 + $0x320] sm:$0xf]  ;;  %v4176_v15 = vld [vmem:[#allocation2 + $0x338] sm:$0xf0] }
  0xed   : > { %2206 = vmatpush.bf16.msrb.mxu0 %v3600_v44  ;;  %v4000_v17 = vor.u32 %v4176_v15, %v3999_v14  ;;  %v3747_v15 = vld [vmem:[#allocation2 + $0x128] sm:$0xf] }
  0xef   : > { %2117 = vmatpush.bf16.msrb.mxu3 %v3820_v39  ;;  %2295 = vmatpush.bf16.msrb.mxu1 %v3824_v47  ;;  %v5340_v39 = vor.u32 %v4071_v23, %v3585_v32  ;;  %v4116_v47 = vld [vmem:[#allocation2 + $0x15c] sm:$0xf] }
  0xf0   : > { %1861 = vmatmul.bf16.gmra.mxu0 %v5234_v0  ;;  %2377 = vmatpush.bf16.msra.mxu2 %v3800_v11  ;;  %v3772_v50 = vor.u32 %v4116_v47, %v3769_v48  ;;  %v3775_v11 = vld [vmem:[#allocation2 + $0x160] sm:$0xf] }
  0xf1   : > { %1901 = vmatmul.bf16.gmra.mxu2 %v5236_v1  ;;  %2555 = vmatpush.bf16.msra.mxu0 %v3804_v33 }
  0xf2   : > { %1950 = vmatmul.bf16.gmra.mxu1 %v5238_v2  ;;  %1990 = vmatmul.bf16.gmra.mxu3 %v5240_v5 }
  0xf3   : > { %2466 = vmatpush.bf16.msra.mxu3 %v4024_v13  ;;  %2644 = vmatpush.bf16.msra.mxu1 %v4028_v35  ;;  %v3776_v13 = vor.u32 %v4120_v12, %v3775_v11 }
  0xf4   : > { %2378 = vmatpush.bf16.msra.mxu2 %v3772_v50 }
  0xf5   : > { %2556 = vmatpush.bf16.msra.mxu0 %v3776_v13 }
  0xf7   : > { %2467 = vmatpush.bf16.msra.mxu3 %v3996_v53  ;;  %2645 = vmatpush.bf16.msra.mxu1 %v4000_v17 }
 0x100   : > { %1866 = vmatmul.bf16.gmra.mxu0 %v5254_v28 }
 0x101   : > { %1906 = vmatmul.bf16.gmra.mxu2 %v5256_v29 }
 0x102   : > { %1955 = vmatmul.bf16.gmra.mxu1 %v5258_v30  ;;  %1995 = vmatmul.bf16.gmra.mxu3 %v5260_v31 }
 0x110   : > { %1871 = vmatmul.bf16.gmra.mxu0 %v5274_v56 }
 0x111   : > { %1911 = vmatmul.bf16.gmra.mxu2 %v5276_v57 }
 0x112   : > { %1960 = vmatmul.bf16.gmra.mxu1 %v5278_v58  ;;  %2000 = vmatmul.bf16.gmra.mxu3 %v5280_v59 }
 0x120   : > { %1876 = vmatmul.bf16.gmra.mxu0 %v5294_v24 }
 0x121   : > { %1916 = vmatmul.bf16.gmra.mxu2 %v5296_v25 }
 0x122   : > { %1965 = vmatmul.bf16.gmra.mxu1 %v5298_v26  ;;  %2005 = vmatmul.bf16.gmra.mxu3 %v5300_v27 }
 0x130   : > { %1881 = vmatmul.bf16.gmra.mxu0 %v5314_v60 }
 0x131   : > { %1921 = vmatmul.bf16.gmra.mxu2 %v5316_v61 }
 0x132   : > { %1970 = vmatmul.bf16.gmra.mxu1 %v5318_v62  ;;  %2010 = vmatmul.bf16.gmra.mxu3 %v5320_v63 }
 0x140   : > { %1886 = vmatmul.bf16.gmra.mxu0 %v5334_v36 }
 0x141   : > { %1926 = vmatmul.bf16.gmra.mxu2 %v5336_v37 }
 0x142   : > { %1975 = vmatmul.bf16.gmra.mxu1 %v5338_v38  ;;  %2015 = vmatmul.bf16.gmra.mxu3 %v5340_v39 }
 0x14d   : > { %v1852_v44 = vpop.f32.mrf.mxu0 }
 0x14f   : > { %v1941_v45 = vpop.f32.mrf.mxu1 }
 0x150   : > { %v1942_v46 = vadd.f32 %v1941_v45, %v1852_v44  ;;  %2207 = vmatmul.bf16.vlgmr.msrb.gmra.mxu0 %v5194_v3 }
 0x151   : > { %2029 = vmatmul.bf16.vlgmr.msrb.gmra.mxu2 %v5194_v3 }
 0x152   : > { %3089 = vst [vmem:[%s4479_s6] sm:$0xff] %v1942_v46  ;;  %2118 = vmatmul.bf16.vlgmr.msrb.gmra.mxu3 %v5198_v8  ;;  %2296 = vmatmul.bf16.vlgmr.msrb.gmra.mxu1 %v5198_v8 }
 0x154   : > { %v1892_v52 = vpop.f32.mrf.mxu2 }
 0x155   : > { %v1981_v54 = vpop.f32.mrf.mxu3  ;;  %v1854_v6 = vpop.f32.mrf.mxu0 }
 0x156   : > { %v1982_v55 = vadd.f32 %v1981_v54, %v1892_v52  ;;  %v3741_v52 = vld [vmem:[#allocation2 + $0x13c] sm:$0xf0]  ;;  %v4165_v54 = vld [vmem:[#allocation2 + $0x2e4] sm:$0xf] }
 0x157   : > { %v1943_v7 = vpop.f32.mrf.mxu1  ;;  %v3744_v53 = vor.u32 %v4109_v51, %v3741_v52 }
 0x158   : > { %3202 = vst [vmem:[%s4479_s6 + $0x380] sm:$0xff] %v1982_v55  ;;  %v1944_v10 = vadd.f32 %v1943_v7, %v1854_v6  ;;  %v3965_v55 = vld [vmem:[#allocation2 + $0x2fc] sm:$0xf0] }
 0x159   : > { %v3968_v7 = vor.u32 %v4165_v54, %v3965_v55  ;;  %2379 = vmatpush.bf16.msra.mxu2 %v3744_v53  ;;  %v4102_v55 = vld [vmem:[#allocation2 + $0xec] sm:$0xf] }
 0x15a   : > { %3097 = vst [vmem:[%s4479_s6 + $0x38] sm:$0xff] %v1944_v10 }
 0x15b   : > { %2468 = vmatpush.bf16.msra.mxu3 %v3968_v7 }
 0x15c   : > { %v1894_v16 = vpop.f32.mrf.mxu2 }
 0x15d   : > { %v1983_v18 = vpop.f32.mrf.mxu3  ;;  %v1857_v20 = vpop.f32.mrf.mxu0 }
 0x15e   : > { %v1984_v19 = vadd.f32 %v1983_v18, %v1894_v16  ;;  %v4113_v16 = vld [vmem:[#allocation2 + $0x140] sm:$0xf0]  ;;  %v3971_v18 = vld [vmem:[#allocation2 + $0x2e8] sm:$0xf] }
 0x15f   : > { %v1946_v21 = vpop.f32.mrf.mxu1  ;;  %v3748_v17 = vor.u32 %v4113_v16, %v3747_v15 }
 0x160   : > { %3209 = vst [vmem:[%s4479_s6 + $0x3b8] sm:$0xff] %v1984_v19  ;;  %v1947_v22 = vadd.f32 %v1946_v21, %v1857_v20  ;;  %2212 = vmatmul.bf16.gmra.mxu0 %v5214_v40  ;;  %v4169_v19 = vld [vmem:[#allocation2 + $0x300] sm:$0xf0] }
 0x161   : > { %2034 = vmatmul.bf16.gmra.mxu2 %v5214_v40  ;;  %v3972_v21 = vor.u32 %v4169_v19, %v3971_v18  ;;  %2557 = vmatpush.bf16.msra.mxu0 %v3748_v17  ;;  %v3719_v19 = vld [vmem:[#allocation2 + $0xf0] sm:$0xf] }
 0x162   : > { %3104 = vst [vmem:[%s4479_s6 + $0x70] sm:$0xff] %v1947_v22  ;;  %2123 = vmatmul.bf16.gmra.mxu3 %v5218_v42  ;;  %2301 = vmatmul.bf16.gmra.mxu1 %v5218_v42 }
 0x163   : > { %2646 = vmatpush.bf16.msra.mxu1 %v3972_v21 }
 0x164   : > { %v1897_v23 = vpop.f32.mrf.mxu2 }
 0x165   : > { %v1986_v32 = vpop.f32.mrf.mxu3  ;;  %v1859_v34 = vpop.f32.mrf.mxu0 }
 0x166   : > { %v1987_v33 = vadd.f32 %v1986_v32, %v1897_v23 }
 0x167   : > { %v1948_v35 = vpop.f32.mrf.mxu1 }
 0x168   : > { %3216 = vst [vmem:[%s4479_s6 + $0x3f0] sm:$0xff] %v1987_v33  ;;  %v1949_v44 = vadd.f32 %v1948_v35, %v1859_v34 }
 0x16a   : > { %3111 = vst [vmem:[%s4479_s6 + $0xa8] sm:$0xff] %v1949_v44 }
 0x16c   : > { %v1899_v45 = vpop.f32.mrf.mxu2 }
 0x16d   : > { %v1988_v46 = vpop.f32.mrf.mxu3  ;;  %v1862_v48 = vpop.f32.mrf.mxu0 }
 0x16e   : > { %v1989_v47 = vadd.f32 %v1988_v46, %v1899_v45 }
 0x16f   : > { %v1951_v49 = vpop.f32.mrf.mxu1 }
 0x170   : > { %3223 = vst [vmem:[%s4479_s6 + $0x428] sm:$0xff] %v1989_v47  ;;  %v1952_v50 = vadd.f32 %v1951_v49, %v1862_v48  ;;  %2217 = vmatmul.bf16.gmra.mxu0 %v5234_v0 }
 0x171   : > { %2039 = vmatmul.bf16.gmra.mxu2 %v5234_v0 }
 0x172   : > { %3118 = vst [vmem:[%s4479_s6 + $0xe0] sm:$0xff] %v1952_v50  ;;  %2128 = vmatmul.bf16.gmra.mxu3 %v5238_v2  ;;  %2306 = vmatmul.bf16.gmra.mxu1 %v5238_v2 }
 0x174   : > { %v1902_v6 = vpop.f32.mrf.mxu2 }
 0x175   : > { %v1991_v10 = vpop.f32.mrf.mxu3  ;;  %v1864_v12 = vpop.f32.mrf.mxu0 }
 0x176   : > { %v1992_v11 = vadd.f32 %v1991_v10, %v1902_v6  ;;  %v3713_v6 = vld [vmem:[#allocation2 + $0x104] sm:$0xf0]  ;;  %v4158_v10 = vld [vmem:[#allocation2 + $0x2ac] sm:$0xf] }
 0x177   : > { %v1953_v13 = vpop.f32.mrf.mxu1  ;;  %v3716_v7 = vor.u32 %v4102_v55, %v3713_v6 }
 0x178   : > { %3230 = vst [vmem:[%s4479_s6 + $0x460] sm:$0xff] %v1992_v11  ;;  %v1954_v14 = vadd.f32 %v1953_v13, %v1864_v12  ;;  %v3937_v11 = vld [vmem:[#allocation2 + $0x2c4] sm:$0xf0] }
 0x179   : > { %v3940_v13 = vor.u32 %v4158_v10, %v3937_v11  ;;  %2380 = vmatpush.bf16.msra.mxu2 %v3716_v7  ;;  %v4095_v11 = vld [vmem:[#allocation2 + $0xb4] sm:$0xf] }
 0x17a   : > { %3125 = vst [vmem:[%s4479_s6 + $0x118] sm:$0xff] %v1954_v14 }
 0x17b   : > { %2469 = vmatpush.bf16.msra.mxu3 %v3940_v13 }
 0x17c   : > { %v1904_v20 = vpop.f32.mrf.mxu2 }
 0x17d   : > { %v1993_v22 = vpop.f32.mrf.mxu3  ;;  %v1867_v32 = vpop.f32.mrf.mxu0 }
 0x17e   : > { %v1994_v23 = vadd.f32 %v1993_v22, %v1904_v20  ;;  %v4106_v20 = vld [vmem:[#allocation2 + $0x108] sm:$0xf0]  ;;  %v3943_v22 = vld [vmem:[#allocation2 + $0x2b0] sm:$0xf] }
 0x17f   : > { %v1956_v33 = vpop.f32.mrf.mxu1  ;;  %v3720_v21 = vor.u32 %v4106_v20, %v3719_v19 }
 0x180   : > { %3237 = vst [vmem:[%s4479_s6 + $0x498] sm:$0xff] %v1994_v23  ;;  %v1957_v34 = vadd.f32 %v1956_v33, %v1867_v32  ;;  %2222 = vmatmul.bf16.gmra.mxu0 %v5254_v28  ;;  %v4162_v23 = vld [vmem:[#allocation2 + $0x2c8] sm:$0xf0] }
 0x181   : > { %2044 = vmatmul.bf16.gmra.mxu2 %v5254_v28  ;;  %v3944_v33 = vor.u32 %v4162_v23, %v3943_v22  ;;  %2558 = vmatpush.bf16.msra.mxu0 %v3720_v21  ;;  %v3691_v23 = vld [vmem:[#allocation2 + $0xb8] sm:$0xf] }
 0x182   : > { %3132 = vst [vmem:[%s4479_s6 + $0x150] sm:$0xff] %v1957_v34  ;;  %2133 = vmatmul.bf16.gmra.mxu3 %v5258_v30  ;;  %2311 = vmatmul.bf16.gmra.mxu1 %v5258_v30 }
 0x183   : > { %2647 = vmatpush.bf16.msra.mxu1 %v3944_v33 }
 0x184   : > { %v1907_v35 = vpop.f32.mrf.mxu2 }
 0x185   : > { %v1996_v44 = vpop.f32.mrf.mxu3  ;;  %v1869_v46 = vpop.f32.mrf.mxu0 }
 0x186   : > { %v1997_v45 = vadd.f32 %v1996_v44, %v1907_v35 }
 0x187   : > { %v1958_v47 = vpop.f32.mrf.mxu1 }
 0x188   : > { %3244 = vst [vmem:[%s4479_s6 + $0x4d0] sm:$0xff] %v1997_v45  ;;  %v1959_v48 = vadd.f32 %v1958_v47, %v1869_v46 }
 0x18a   : > { %3139 = vst [vmem:[%s4479_s6 + $0x188] sm:$0xff] %v1959_v48 }
 0x18c   : > { %v1909_v49 = vpop.f32.mrf.mxu2 }
 0x18d   : > { %v1998_v50 = vpop.f32.mrf.mxu3  ;;  %v1872_v52 = vpop.f32.mrf.mxu0 }
 0x18e   : > { %v1999_v51 = vadd.f32 %v1998_v50, %v1909_v49 }
 0x18f   : > { %v1961_v53 = vpop.f32.mrf.mxu1 }
 0x190   : > { %3251 = vst [vmem:[%s4479_s6 + $0x508] sm:$0xff] %v1999_v51  ;;  %v1962_v54 = vadd.f32 %v1961_v53, %v1872_v52  ;;  %2227 = vmatmul.bf16.gmra.mxu0 %v5274_v56 }
 0x191   : > { %2049 = vmatmul.bf16.gmra.mxu2 %v5274_v56 }
 0x192   : > { %3146 = vst [vmem:[%s4479_s6 + $0x1c0] sm:$0xff] %v1962_v54  ;;  %2138 = vmatmul.bf16.gmra.mxu3 %v5278_v58  ;;  %2316 = vmatmul.bf16.gmra.mxu1 %v5278_v58 }
 0x194   : > { %v1912_v12 = vpop.f32.mrf.mxu2 }
 0x195   : > { %v2001_v14 = vpop.f32.mrf.mxu3  ;;  %v1874_v16 = vpop.f32.mrf.mxu0 }
 0x196   : > { %v2002_v15 = vadd.f32 %v2001_v14, %v1912_v12  ;;  %v3685_v12 = vld [vmem:[#allocation2 + $0xcc] sm:$0xf0]  ;;  %v4151_v14 = vld [vmem:[#allocation2 + $0x274] sm:$0xf] }
 0x197   : > { %v1963_v17 = vpop.f32.mrf.mxu1  ;;  %v3688_v13 = vor.u32 %v4095_v11, %v3685_v12 }
 0x198   : > { %3258 = vst [vmem:[%s4479_s6 + $0x540] sm:$0xff] %v2002_v15  ;;  %v1964_v18 = vadd.f32 %v1963_v17, %v1874_v16  ;;  %v3909_v15 = vld [vmem:[#allocation2 + $0x28c] sm:$0xf0] }
 0x199   : > { %v3912_v17 = vor.u32 %v4151_v14, %v3909_v15  ;;  %2381 = vmatpush.bf16.msra.mxu2 %v3688_v13  ;;  %v4088_v15 = vld [vmem:[#allocation2 + $0x7c] sm:$0xf] }
 0x19a   : > { %3153 = vst [vmem:[%s4479_s6 + $0x1f8] sm:$0xff] %v1964_v18 }
 0x19b   : > { %2470 = vmatpush.bf16.msra.mxu3 %v3912_v17 }
 0x19c   : > { %v1914_v32 = vpop.f32.mrf.mxu2 }
 0x19d   : > { %v2003_v34 = vpop.f32.mrf.mxu3  ;;  %v1877_v44 = vpop.f32.mrf.mxu0 }
 0x19e   : > { %v2004_v35 = vadd.f32 %v2003_v34, %v1914_v32  ;;  %v4099_v32 = vld [vmem:[#allocation2 + $0xd0] sm:$0xf0]  ;;  %v3915_v34 = vld [vmem:[#allocation2 + $0x278] sm:$0xf] }
 0x19f   : > { %v1966_v45 = vpop.f32.mrf.mxu1  ;;  %v3692_v33 = vor.u32 %v4099_v32, %v3691_v23 }
 0x1a0   : > { %3265 = vst [vmem:[%s4479_s6 + $0x578] sm:$0xff] %v2004_v35  ;;  %v1967_v46 = vadd.f32 %v1966_v45, %v1877_v44  ;;  %2232 = vmatmul.bf16.gmra.mxu0 %v5294_v24  ;;  %v4155_v35 = vld [vmem:[#allocation2 + $0x290] sm:$0xf0] }
 0x1a1   : > { %2054 = vmatmul.bf16.gmra.mxu2 %v5294_v24  ;;  %v3916_v45 = vor.u32 %v4155_v35, %v3915_v34  ;;  %2559 = vmatpush.bf16.msra.mxu0 %v3692_v33  ;;  %v3663_v35 = vld [vmem:[#allocation2 + $0x80] sm:$0xf] }
 0x1a2   : > { %3160 = vst [vmem:[%s4479_s6 + $0x230] sm:$0xff] %v1967_v46  ;;  %2143 = vmatmul.bf16.gmra.mxu3 %v5298_v26  ;;  %2321 = vmatmul.bf16.gmra.mxu1 %v5298_v26 }
 0x1a3   : > { %2648 = vmatpush.bf16.msra.mxu1 %v3916_v45 }
 0x1a4   : > { %v1917_v47 = vpop.f32.mrf.mxu2 }
 0x1a5   : > { %v2006_v48 = vpop.f32.mrf.mxu3  ;;  %v1879_v50 = vpop.f32.mrf.mxu0 }
 0x1a6   : > { %v2007_v49 = vadd.f32 %v2006_v48, %v1917_v47 }
 0x1a7   : > { %v1968_v51 = vpop.f32.mrf.mxu1 }
 0x1a8   : > { %3272 = vst [vmem:[%s4479_s6 + $0x5b0] sm:$0xff] %v2007_v49  ;;  %v1969_v52 = vadd.f32 %v1968_v51, %v1879_v50 }
 0x1aa   : > { %3167 = vst [vmem:[%s4479_s6 + $0x268] sm:$0xff] %v1969_v52 }
 0x1ac   : > { %v1919_v53 = vpop.f32.mrf.mxu2 }
 0x1ad   : > { %v2008_v54 = vpop.f32.mrf.mxu3  ;;  %v1882_v6 = vpop.f32.mrf.mxu0 }
 0x1ae   : > { %v2009_v55 = vadd.f32 %v2008_v54, %v1919_v53 }
 0x1af   : > { %v1971_v7 = vpop.f32.mrf.mxu1 }
 0x1b0   : > { %3279 = vst [vmem:[%s4479_s6 + $0x5e8] sm:$0xff] %v2009_v55  ;;  %v1972_v10 = vadd.f32 %v1971_v7, %v1882_v6  ;;  %2237 = vmatmul.bf16.gmra.mxu0 %v5314_v60 }
 0x1b1   : > { %2059 = vmatmul.bf16.gmra.mxu2 %v5314_v60 }
 0x1b2   : > { %3174 = vst [vmem:[%s4479_s6 + $0x2a0] sm:$0xff] %v1972_v10  ;;  %2148 = vmatmul.bf16.gmra.mxu3 %v5318_v62  ;;  %2326 = vmatmul.bf16.gmra.mxu1 %v5318_v62 }
 0x1b4   : > { %v1922_v16 = vpop.f32.mrf.mxu2 }
 0x1b5   : > { %v2011_v18 = vpop.f32.mrf.mxu3  ;;  %v1884_v20 = vpop.f32.mrf.mxu0 }
 0x1b6   : > { %v2012_v19 = vadd.f32 %v2011_v18, %v1922_v16  ;;  %v3657_v16 = vld [vmem:[#allocation2 + $0x94] sm:$0xf0]  ;;  %v4144_v18 = vld [vmem:[#allocation2 + $0x23c] sm:$0xf] }
 0x1b7   : > { %v1973_v21 = vpop.f32.mrf.mxu1  ;;  %v3660_v17 = vor.u32 %v4088_v15, %v3657_v16 }
 0x1b8   : > { %3286 = vst [vmem:[%s4479_s6 + $0x620] sm:$0xff] %v2012_v19  ;;  %v1974_v22 = vadd.f32 %v1973_v21, %v1884_v20  ;;  %v3881_v19 = vld [vmem:[#allocation2 + $0x254] sm:$0xf0] }
 0x1b9   : > { %v3884_v21 = vor.u32 %v4144_v18, %v3881_v19  ;;  %2382 = vmatpush.bf16.msra.mxu2 %v3660_v17  ;;  %v4081_v19 = vld [vmem:[#allocation2 + $0x44] sm:$0xf] }
 0x1ba   : > { %3181 = vst [vmem:[%s4479_s6 + $0x2d8] sm:$0xff] %v1974_v22 }
 0x1bb   : > { %2471 = vmatpush.bf16.msra.mxu3 %v3884_v21 }
 0x1bc   : > { %v1924_v44 = vpop.f32.mrf.mxu2 }
 0x1bd   : > { %v2013_v46 = vpop.f32.mrf.mxu3  ;;  %v1887_v48 = vpop.f32.mrf.mxu0 }
 0x1be   : > { %v2014_v47 = vadd.f32 %v2013_v46, %v1924_v44  ;;  %v4092_v44 = vld [vmem:[#allocation2 + $0x98] sm:$0xf0]  ;;  %v3887_v46 = vld [vmem:[#allocation2 + $0x240] sm:$0xf] }
 0x1bf   : > { %v1976_v49 = vpop.f32.mrf.mxu1  ;;  %v3664_v45 = vor.u32 %v4092_v44, %v3663_v35 }
 0x1c0   : > { %3293 = vst [vmem:[%s4479_s6 + $0x658] sm:$0xff] %v2014_v47  ;;  %v1977_v50 = vadd.f32 %v1976_v49, %v1887_v48  ;;  %2242 = vmatmul.bf16.gmra.mxu0 %v5334_v36  ;;  %v4148_v47 = vld [vmem:[#allocation2 + $0x258] sm:$0xf0] }
 0x1c1   : > { %2064 = vmatmul.bf16.gmra.mxu2 %v5334_v36  ;;  %v3888_v49 = vor.u32 %v4148_v47, %v3887_v46  ;;  %2560 = vmatpush.bf16.msra.mxu0 %v3664_v45  ;;  %v3635_v47 = vld [vmem:[#allocation2 + $0x48] sm:$0xf] }
 0x1c2   : > { %3188 = vst [vmem:[%s4479_s6 + $0x310] sm:$0xff] %v1977_v50  ;;  %2153 = vmatmul.bf16.gmra.mxu3 %v5338_v38  ;;  %2331 = vmatmul.bf16.gmra.mxu1 %v5338_v38 }
 0x1c3   : > { %2649 = vmatpush.bf16.msra.mxu1 %v3888_v49 }
 0x1c4   : > { %v1927_v51 = vpop.f32.mrf.mxu2 }
 0x1c5   : > { %v2016_v52 = vpop.f32.mrf.mxu3  ;;  %v1889_v54 = vpop.f32.mrf.mxu0 }
 0x1c6   : > { %v2017_v53 = vadd.f32 %v2016_v52, %v1927_v51 }
 0x1c7   : > { %v1978_v55 = vpop.f32.mrf.mxu1 }
 0x1c8   : > { %3300 = vst [vmem:[%s4479_s6 + $0x690] sm:$0xff] %v2017_v53  ;;  %v1979_v6 = vadd.f32 %v1978_v55, %v1889_v54 }
 0x1ca   : > { %3195 = vst [vmem:[%s4479_s6 + $0x348] sm:$0xff] %v1979_v6 }
 0x1cc   : > { %v1929_v7 = vpop.f32.mrf.mxu2 }
 0x1cd   : > { %v2018_v10 = vpop.f32.mrf.mxu3  ;;  %v2208_v12 = vpop.f32.mrf.mxu0 }
 0x1ce   : > { %v2019_v11 = vadd.f32 %v2018_v10, %v1929_v7 }
 0x1cf   : > { %v2297_v13 = vpop.f32.mrf.mxu1 }
 0x1d0   : > { %3307 = vst [vmem:[%s4479_s6 + $0x6c8] sm:$0xff] %v2019_v11  ;;  %v2298_v14 = vadd.f32 %v2297_v13, %v2208_v12  ;;  %2247 = vmatmul.bf16.gmra.mxu0 %v5196_v4 }
 0x1d1   : > { %2069 = vmatmul.bf16.gmra.mxu2 %v5196_v4 }
 0x1d2   : > { %3091 = vst [vmem:[%s4479_s6 + $0x10] sm:$0xff] %v2298_v14  ;;  %2158 = vmatmul.bf16.gmra.mxu3 %v5200_v9  ;;  %2336 = vmatmul.bf16.gmra.mxu1 %v5200_v9 }
 0x1d4   : > { %v2030_v20 = vpop.f32.mrf.mxu2 }
 0x1d5   : > { %v2119_v22 = vpop.f32.mrf.mxu3  ;;  %v2210_v32 = vpop.f32.mrf.mxu0 }
 0x1d6   : > { %v2120_v23 = vadd.f32 %v2119_v22, %v2030_v20  ;;  %v3629_v20 = vld [vmem:[#allocation2 + $0x5c] sm:$0xf0]  ;;  %v4137_v22 = vld [vmem:[#allocation2 + $0x204] sm:$0xf] }
 0x1d7   : > { %v2299_v33 = vpop.f32.mrf.mxu1  ;;  %v3632_v21 = vor.u32 %v4081_v19, %v3629_v20 }
 0x1d8   : > { %3090 = vst [vmem:[%s4479_s6 + $0x8] sm:$0xff] %v2120_v23  ;;  %v2300_v34 = vadd.f32 %v2299_v33, %v2210_v32  ;;  %v3853_v23 = vld [vmem:[#allocation2 + $0x21c] sm:$0xf0] }
 0x1d9   : > { %v3856_v33 = vor.u32 %v4137_v22, %v3853_v23  ;;  %2383 = vmatpush.bf16.msra.mxu2 %v3632_v21  ;;  %v4074_v23 = vld [vmem:[#allocation2 + $0xc] sm:$0xf] }
 0x1da   : > { %3099 = vst [vmem:[%s4479_s6 + $0x48] sm:$0xff] %v2300_v34 }
 0x1db   : > { %2472 = vmatpush.bf16.msra.mxu3 %v3856_v33 }
 0x1dc   : > { %v2032_v48 = vpop.f32.mrf.mxu2 }
 0x1dd   : > { %v2121_v50 = vpop.f32.mrf.mxu3  ;;  %v2213_v52 = vpop.f32.mrf.mxu0 }
 0x1de   : > { %v2122_v51 = vadd.f32 %v2121_v50, %v2032_v48  ;;  %v4085_v48 = vld [vmem:[#allocation2 + $0x60] sm:$0xf0]  ;;  %v3859_v50 = vld [vmem:[#allocation2 + $0x208] sm:$0xf] }
 0x1df   : > { %v2302_v53 = vpop.f32.mrf.mxu1  ;;  %v3636_v49 = vor.u32 %v4085_v48, %v3635_v47 }
 0x1e0   : > { %3098 = vst [vmem:[%s4479_s6 + $0x40] sm:$0xff] %v2122_v51  ;;  %v2303_v54 = vadd.f32 %v2302_v53, %v2213_v52  ;;  %2252 = vmatmul.bf16.gmra.mxu0 %v5216_v41  ;;  %v4141_v51 = vld [vmem:[#allocation2 + $0x220] sm:$0xf0] }
 0x1e1   : > { %2074 = vmatmul.bf16.gmra.mxu2 %v5216_v41  ;;  %v3860_v53 = vor.u32 %v4141_v51, %v3859_v50  ;;  %2561 = vmatpush.bf16.msra.mxu0 %v3636_v49  ;;  %v3607_v51 = vld [vmem:[#allocation2 + $0x10] sm:$0xf] }
 0x1e2   : > { %3106 = vst [vmem:[%s4479_s6 + $0x80] sm:$0xff] %v2303_v54  ;;  %2163 = vmatmul.bf16.gmra.mxu3 %v5220_v43  ;;  %2341 = vmatmul.bf16.gmra.mxu1 %v5220_v43 }
 0x1e3   : > { %2650 = vmatpush.bf16.msra.mxu1 %v3860_v53 }
 0x1e4   : > { %v2035_v55 = vpop.f32.mrf.mxu2 }
 0x1e5   : > { %v2124_v6 = vpop.f32.mrf.mxu3  ;;  %v2215_v10 = vpop.f32.mrf.mxu0 }
 0x1e6   : > { %v2125_v7 = vadd.f32 %v2124_v6, %v2035_v55 }
 0x1e7   : > { %v2304_v11 = vpop.f32.mrf.mxu1 }
 0x1e8   : > { %3105 = vst [vmem:[%s4479_s6 + $0x78] sm:$0xff] %v2125_v7  ;;  %v2305_v12 = vadd.f32 %v2304_v11, %v2215_v10 }
 0x1ea   : > { %3113 = vst [vmem:[%s4479_s6 + $0xb8] sm:$0xff] %v2305_v12 }
 0x1ec   : > { %v2037_v13 = vpop.f32.mrf.mxu2 }
 0x1ed   : > { %v2126_v14 = vpop.f32.mrf.mxu3  ;;  %v2218_v16 = vpop.f32.mrf.mxu0 }
 0x1ee   : > { %v2127_v15 = vadd.f32 %v2126_v14, %v2037_v13 }
 0x1ef   : > { %v2307_v17 = vpop.f32.mrf.mxu1 }
 0x1f0   : > { %3112 = vst [vmem:[%s4479_s6 + $0xb0] sm:$0xff] %v2127_v15  ;;  %v2308_v18 = vadd.f32 %v2307_v17, %v2218_v16  ;;  %2257 = vmatmul.bf16.gmra.mxu0 %v5236_v1 }
 0x1f1   : > { %2079 = vmatmul.bf16.gmra.mxu2 %v5236_v1 }
 0x1f2   : > { %3120 = vst [vmem:[%s4479_s6 + $0xf0] sm:$0xff] %v2308_v18  ;;  %2168 = vmatmul.bf16.gmra.mxu3 %v5240_v5  ;;  %2346 = vmatmul.bf16.gmra.mxu1 %v5240_v5 }
 0x1f4   : > { %v2040_v32 = vpop.f32.mrf.mxu2 }
 0x1f5   : > { %v2129_v34 = vpop.f32.mrf.mxu3  ;;  %v2220_v44 = vpop.f32.mrf.mxu0 }
 0x1f6   : > { %v2130_v35 = vadd.f32 %v2129_v34, %v2040_v32  ;;  %v3601_v32 = vld [vmem:[#allocation2 + $0x24] sm:$0xf0]  ;;  %v4130_v34 = vld [vmem:[#allocation2 + $0x1cc] sm:$0xf] }
 0x1f7   : > { %v2309_v45 = vpop.f32.mrf.mxu1  ;;  %v3604_v33 = vor.u32 %v4074_v23, %v3601_v32 }
 0x1f8   : > { %3119 = vst [vmem:[%s4479_s6 + $0xe8] sm:$0xff] %v2130_v35  ;;  %v2310_v46 = vadd.f32 %v2309_v45, %v2220_v44  ;;  %v3825_v35 = vld [vmem:[#allocation2 + $0x1e4] sm:$0xf0] }
 0x1f9   : > { %v3828_v45 = vor.u32 %v4130_v34, %v3825_v35  ;;  %2384 = vmatpush.bf16.msra.mxu2 %v3604_v33  ;;  %v4124_v35 = vld [vmem:[#allocation2 + $0x19c] sm:$0xf] }
 0x1fa   : > { %3127 = vst [vmem:[%s4479_s6 + $0x128] sm:$0xff] %v2310_v46 }
 0x1fb   : > { %2473 = vmatpush.bf16.msra.mxu3 %v3828_v45 }
 0x1fc   : > { %v2042_v52 = vpop.f32.mrf.mxu2 }
 0x1fd   : > { %v2131_v54 = vpop.f32.mrf.mxu3  ;;  %v2223_v6 = vpop.f32.mrf.mxu0 }
 0x1fe   : > { %v2132_v55 = vadd.f32 %v2131_v54, %v2042_v52  ;;  %v4078_v52 = vld [vmem:[#allocation2 + $0x28] sm:$0xf0]  ;;  %v3831_v54 = vld [vmem:[#allocation2 + $0x1d0] sm:$0xf] }
 0x1ff   : > { %v2312_v7 = vpop.f32.mrf.mxu1  ;;  %v3608_v53 = vor.u32 %v4078_v52, %v3607_v51 }
 0x200   : > { %3126 = vst [vmem:[%s4479_s6 + $0x120] sm:$0xff] %v2132_v55  ;;  %v2313_v10 = vadd.f32 %v2312_v7, %v2223_v6  ;;  %2262 = vmatmul.bf16.gmra.mxu0 %v5256_v29  ;;  %v4134_v55 = vld [vmem:[#allocation2 + $0x1e8] sm:$0xf0] }
 0x201   : > { %2084 = vmatmul.bf16.gmra.mxu2 %v5256_v29  ;;  %v3832_v7 = vor.u32 %v4134_v55, %v3831_v54  ;;  %2562 = vmatpush.bf16.msra.mxu0 %v3608_v53  ;;  %v3811_v55 = vld [vmem:[#allocation2 + $0x1a0] sm:$0xf] }
 0x202   : > { %3134 = vst [vmem:[%s4479_s6 + $0x160] sm:$0xff] %v2313_v10  ;;  %2173 = vmatmul.bf16.gmra.mxu3 %v5260_v31  ;;  %2351 = vmatmul.bf16.gmra.mxu1 %v5260_v31 }
 0x203   : > { %2651 = vmatpush.bf16.msra.mxu1 %v3832_v7 }
 0x204   : > { %v2045_v11 = vpop.f32.mrf.mxu2 }
 0x205   : > { %v2134_v12 = vpop.f32.mrf.mxu3  ;;  %v2225_v14 = vpop.f32.mrf.mxu0 }
 0x206   : > { %v2135_v13 = vadd.f32 %v2134_v12, %v2045_v11 }
 0x207   : > { %v2314_v15 = vpop.f32.mrf.mxu1 }
 0x208   : > { %3133 = vst [vmem:[%s4479_s6 + $0x158] sm:$0xff] %v2135_v13  ;;  %v2315_v16 = vadd.f32 %v2314_v15, %v2225_v14 }
 0x20a   : > { %3141 = vst [vmem:[%s4479_s6 + $0x198] sm:$0xff] %v2315_v16 }
 0x20c   : > { %v2047_v17 = vpop.f32.mrf.mxu2 }
 0x20d   : > { %v2136_v18 = vpop.f32.mrf.mxu3  ;;  %v2228_v20 = vpop.f32.mrf.mxu0 }
 0x20e   : > { %v2137_v19 = vadd.f32 %v2136_v18, %v2047_v17 }
 0x20f   : > { %v2317_v21 = vpop.f32.mrf.mxu1 }
 0x210   : > { %3140 = vst [vmem:[%s4479_s6 + $0x190] sm:$0xff] %v2137_v19  ;;  %v2318_v22 = vadd.f32 %v2317_v21, %v2228_v20  ;;  %2267 = vmatmul.bf16.gmra.mxu0 %v5276_v57 }
 0x211   : > { %2089 = vmatmul.bf16.gmra.mxu2 %v5276_v57 }
 0x212   : > { %3148 = vst [vmem:[%s4479_s6 + $0x1d0] sm:$0xff] %v2318_v22  ;;  %2178 = vmatmul.bf16.gmra.mxu3 %v5280_v59  ;;  %2356 = vmatmul.bf16.gmra.mxu1 %v5280_v59 }
 0x214   : > { %v2050_v44 = vpop.f32.mrf.mxu2 }
 0x215   : > { %v2139_v46 = vpop.f32.mrf.mxu3  ;;  %v2230_v48 = vpop.f32.mrf.mxu0 }
 0x216   : > { %v2140_v47 = vadd.f32 %v2139_v46, %v2050_v44  ;;  %v3805_v44 = vld [vmem:[#allocation2 + $0x1b4] sm:$0xf0]  ;;  %v4180_v46 = vld [vmem:[#allocation2 + $0x35c] sm:$0xf] }
 0x217   : > { %v2319_v49 = vpop.f32.mrf.mxu1  ;;  %v3808_v45 = vor.u32 %v4124_v35, %v3805_v44 }
 0x218   : > { %3147 = vst [vmem:[%s4479_s6 + $0x1c8] sm:$0xff] %v2140_v47  ;;  %v2320_v50 = vadd.f32 %v2319_v49, %v2230_v48  ;;  %v4029_v47 = vld [vmem:[#allocation2 + $0x374] sm:$0xf0] }
 0x219   : > { %v4032_v49 = vor.u32 %v4180_v46, %v4029_v47  ;;  %2733 = vmatpush.bf16.msrb.mxu2 %v3808_v45  ;;  %v4117_v47 = vld [vmem:[#allocation2 + $0x164] sm:$0xf] }
 0x21a   : > { %3155 = vst [vmem:[%s4479_s6 + $0x208] sm:$0xff] %v2320_v50 }
 0x21b   : > { %2822 = vmatpush.bf16.msrb.mxu3 %v4032_v49 }
 0x21c   : > { %v2052_v6 = vpop.f32.mrf.mxu2 }
 0x21d   : > { %v2141_v10 = vpop.f32.mrf.mxu3  ;;  %v2233_v12 = vpop.f32.mrf.mxu0 }
 0x21e   : > { %v2142_v11 = vadd.f32 %v2141_v10, %v2052_v6  ;;  %v4128_v6 = vld [vmem:[#allocation2 + $0x1b8] sm:$0xf0]  ;;  %v4035_v10 = vld [vmem:[#allocation2 + $0x360] sm:$0xf] }
 0x21f   : > { %v2322_v13 = vpop.f32.mrf.mxu1  ;;  %v3812_v7 = vor.u32 %v4128_v6, %v3811_v55 }
 0x220   : > { %3154 = vst [vmem:[%s4479_s6 + $0x200] sm:$0xff] %v2142_v11  ;;  %v2323_v14 = vadd.f32 %v2322_v13, %v2233_v12  ;;  %2272 = vmatmul.bf16.gmra.mxu0 %v5296_v25  ;;  %v4184_v11 = vld [vmem:[#allocation2 + $0x378] sm:$0xf0] }
 0x221   : > { %2094 = vmatmul.bf16.gmra.mxu2 %v5296_v25  ;;  %v4036_v13 = vor.u32 %v4184_v11, %v4035_v10  ;;  %2911 = vmatpush.bf16.msrb.mxu0 %v3812_v7  ;;  %v3783_v11 = vld [vmem:[#allocation2 + $0x168] sm:$0xf] }
 0x222   : > { %3162 = vst [vmem:[%s4479_s6 + $0x240] sm:$0xff] %v2323_v14  ;;  %2183 = vmatmul.bf16.gmra.mxu3 %v5300_v27  ;;  %2361 = vmatmul.bf16.gmra.mxu1 %v5300_v27 }
 0x223   : > { %3000 = vmatpush.bf16.msrb.mxu1 %v4036_v13 }
 0x224   : > { %v2055_v15 = vpop.f32.mrf.mxu2 }
 0x225   : > { %v2144_v16 = vpop.f32.mrf.mxu3  ;;  %v2235_v18 = vpop.f32.mrf.mxu0 }
 0x226   : > { %v2145_v17 = vadd.f32 %v2144_v16, %v2055_v15 }
 0x227   : > { %v2324_v19 = vpop.f32.mrf.mxu1 }
 0x228   : > { %3161 = vst [vmem:[%s4479_s6 + $0x238] sm:$0xff] %v2145_v17  ;;  %v2325_v20 = vadd.f32 %v2324_v19, %v2235_v18 }
 0x22a   : > { %3169 = vst [vmem:[%s4479_s6 + $0x278] sm:$0xff] %v2325_v20 }
 0x22c   : > { %v2057_v21 = vpop.f32.mrf.mxu2 }
 0x22d   : > { %v2146_v22 = vpop.f32.mrf.mxu3  ;;  %v2238_v32 = vpop.f32.mrf.mxu0 }
 0x22e   : > { %v2147_v23 = vadd.f32 %v2146_v22, %v2057_v21 }
 0x22f   : > { %v2327_v33 = vpop.f32.mrf.mxu1 }
 0x230   : > { %3168 = vst [vmem:[%s4479_s6 + $0x270] sm:$0xff] %v2147_v23  ;;  %v2328_v34 = vadd.f32 %v2327_v33, %v2238_v32  ;;  %2277 = vmatmul.bf16.gmra.mxu0 %v5316_v61 }
 0x231   : > { %2099 = vmatmul.bf16.gmra.mxu2 %v5316_v61 }
 0x232   : > { %3176 = vst [vmem:[%s4479_s6 + $0x2b0] sm:$0xff] %v2328_v34  ;;  %2188 = vmatmul.bf16.gmra.mxu3 %v5320_v63  ;;  %2366 = vmatmul.bf16.gmra.mxu1 %v5320_v63 }
 0x234   : > { %v2060_v48 = vpop.f32.mrf.mxu2 }
 0x235   : > { %v2149_v50 = vpop.f32.mrf.mxu3  ;;  %v2240_v52 = vpop.f32.mrf.mxu0 }
 0x236   : > { %v2150_v51 = vadd.f32 %v2149_v50, %v2060_v48  ;;  %v3777_v48 = vld [vmem:[#allocation2 + $0x17c] sm:$0xf0]  ;;  %v4173_v50 = vld [vmem:[#allocation2 + $0x324] sm:$0xf] }
 0x237   : > { %v2329_v53 = vpop.f32.mrf.mxu1  ;;  %v3780_v49 = vor.u32 %v4117_v47, %v3777_v48 }
 0x238   : > { %3175 = vst [vmem:[%s4479_s6 + $0x2a8] sm:$0xff] %v2150_v51  ;;  %v2330_v54 = vadd.f32 %v2329_v53, %v2240_v52  ;;  %v4001_v51 = vld [vmem:[#allocation2 + $0x33c] sm:$0xf0] }
 0x239   : > { %v4004_v53 = vor.u32 %v4173_v50, %v4001_v51  ;;  %2734 = vmatpush.bf16.msrb.mxu2 %v3780_v49  ;;  %v4110_v51 = vld [vmem:[#allocation2 + $0x12c] sm:$0xf] }
 0x23a   : > { %3183 = vst [vmem:[%s4479_s6 + $0x2e8] sm:$0xff] %v2330_v54 }
 0x23b   : > { %2823 = vmatpush.bf16.msrb.mxu3 %v4004_v53 }
 0x23c   : > { %v2062_v12 = vpop.f32.mrf.mxu2 }
 0x23d   : > { %v2151_v14 = vpop.f32.mrf.mxu3  ;;  %v2243_v16 = vpop.f32.mrf.mxu0 }
 0x23e   : > { %v2152_v15 = vadd.f32 %v2151_v14, %v2062_v12  ;;  %v4121_v12 = vld [vmem:[#allocation2 + $0x180] sm:$0xf0]  ;;  %v4007_v14 = vld [vmem:[#allocation2 + $0x328] sm:$0xf] }
 0x23f   : > { %v2332_v17 = vpop.f32.mrf.mxu1  ;;  %v3784_v13 = vor.u32 %v4121_v12, %v3783_v11 }
 0x240   : > { %3182 = vst [vmem:[%s4479_s6 + $0x2e0] sm:$0xff] %v2152_v15  ;;  %v2333_v18 = vadd.f32 %v2332_v17, %v2243_v16  ;;  %2282 = vmatmul.bf16.gmra.mxu0 %v5336_v37  ;;  %v4177_v15 = vld [vmem:[#allocation2 + $0x340] sm:$0xf0] }
 0x241   : > { %2104 = vmatmul.bf16.gmra.mxu2 %v5336_v37  ;;  %v4008_v17 = vor.u32 %v4177_v15, %v4007_v14  ;;  %2912 = vmatpush.bf16.msrb.mxu0 %v3784_v13  ;;  %v3755_v15 = vld [vmem:[#allocation2 + $0x130] sm:$0xf] }
 0x242   : > { %3190 = vst [vmem:[%s4479_s6 + $0x320] sm:$0xff] %v2333_v18  ;;  %2193 = vmatmul.bf16.gmra.mxu3 %v5340_v39  ;;  %2371 = vmatmul.bf16.gmra.mxu1 %v5340_v39 }
 0x243   : > { %3001 = vmatpush.bf16.msrb.mxu1 %v4008_v17 }
 0x244   : > { %v2065_v19 = vpop.f32.mrf.mxu2 }
 0x245   : > { %v2154_v20 = vpop.f32.mrf.mxu3  ;;  %v2245_v22 = vpop.f32.mrf.mxu0 }
 0x246   : > { %v2155_v21 = vadd.f32 %v2154_v20, %v2065_v19 }
 0x247   : > { %v2334_v23 = vpop.f32.mrf.mxu1 }
 0x248   : > { %3189 = vst [vmem:[%s4479_s6 + $0x318] sm:$0xff] %v2155_v21  ;;  %v2335_v32 = vadd.f32 %v2334_v23, %v2245_v22 }
 0x24a   : > { %3197 = vst [vmem:[%s4479_s6 + $0x358] sm:$0xff] %v2335_v32 }
 0x24c   : > { %v2067_v33 = vpop.f32.mrf.mxu2 }
 0x24d   : > { %v2156_v34 = vpop.f32.mrf.mxu3  ;;  %v2248_v44 = vpop.f32.mrf.mxu0 }
 0x24e   : > { %v2157_v35 = vadd.f32 %v2156_v34, %v2067_v33 }
 0x24f   : > { %v2337_v45 = vpop.f32.mrf.mxu1 }
 0x250   : > { %3196 = vst [vmem:[%s4479_s6 + $0x350] sm:$0xff] %v2157_v35  ;;  %v2338_v46 = vadd.f32 %v2337_v45, %v2248_v44  ;;  %2563 = vmatmul.bf16.vlgmr.msra.gmra.mxu0 %v5194_v3 }
 0x251   : > { %2385 = vmatmul.bf16.vlgmr.msra.gmra.mxu2 %v5194_v3 }
 0x252   : > { %3204 = vst [vmem:[%s4479_s6 + $0x390] sm:$0xff] %v2338_v46  ;;  %2474 = vmatmul.bf16.vlgmr.msra.gmra.mxu3 %v5198_v8  ;;  %2652 = vmatmul.bf16.vlgmr.msra.gmra.mxu1 %v5198_v8 }
 0x254   : > { %v2070_v52 = vpop.f32.mrf.mxu2 }
 0x255   : > { %v2159_v54 = vpop.f32.mrf.mxu3  ;;  %v2250_v6 = vpop.f32.mrf.mxu0 }
 0x256   : > { %v2160_v55 = vadd.f32 %v2159_v54, %v2070_v52  ;;  %v3749_v52 = vld [vmem:[#allocation2 + $0x144] sm:$0xf0]  ;;  %v4166_v54 = vld [vmem:[#allocation2 + $0x2ec] sm:$0xf] }
 0x257   : > { %v2339_v7 = vpop.f32.mrf.mxu1  ;;  %v3752_v53 = vor.u32 %v4110_v51, %v3749_v52 }
 0x258   : > { %3203 = vst [vmem:[%s4479_s6 + $0x388] sm:$0xff] %v2160_v55  ;;  %v2340_v10 = vadd.f32 %v2339_v7, %v2250_v6  ;;  %v3973_v55 = vld [vmem:[#allocation2 + $0x304] sm:$0xf0] }
 0x259   : > { %v3976_v7 = vor.u32 %v4166_v54, %v3973_v55  ;;  %2735 = vmatpush.bf16.msrb.mxu2 %v3752_v53  ;;  %v4103_v55 = vld [vmem:[#allocation2 + $0xf4] sm:$0xf] }
 0x25a   : > { %3211 = vst [vmem:[%s4479_s6 + $0x3c8] sm:$0xff] %v2340_v10 }
 0x25b   : > { %2824 = vmatpush.bf16.msrb.mxu3 %v3976_v7 }
 0x25c   : > { %v2072_v16 = vpop.f32.mrf.mxu2 }
 0x25d   : > { %v2161_v18 = vpop.f32.mrf.mxu3  ;;  %v2253_v20 = vpop.f32.mrf.mxu0 }
 0x25e   : > { %v2162_v19 = vadd.f32 %v2161_v18, %v2072_v16  ;;  %v4114_v16 = vld [vmem:[#allocation2 + $0x148] sm:$0xf0]  ;;  %v3979_v18 = vld [vmem:[#allocation2 + $0x2f0] sm:$0xf] }
 0x25f   : > { %v2342_v21 = vpop.f32.mrf.mxu1  ;;  %v3756_v17 = vor.u32 %v4114_v16, %v3755_v15 }
 0x260   : > { %3210 = vst [vmem:[%s4479_s6 + $0x3c0] sm:$0xff] %v2162_v19  ;;  %v2343_v22 = vadd.f32 %v2342_v21, %v2253_v20  ;;  %2568 = vmatmul.bf16.gmra.mxu0 %v5214_v40  ;;  %v4170_v19 = vld [vmem:[#allocation2 + $0x308] sm:$0xf0] }
 0x261   : > { %2390 = vmatmul.bf16.gmra.mxu2 %v5214_v40  ;;  %v3980_v21 = vor.u32 %v4170_v19, %v3979_v18  ;;  %2913 = vmatpush.bf16.msrb.mxu0 %v3756_v17  ;;  %v3727_v19 = vld [vmem:[#allocation2 + $0xf8] sm:$0xf] }
 0x262   : > { %3218 = vst [vmem:[%s4479_s6 + $0x400] sm:$0xff] %v2343_v22  ;;  %2479 = vmatmul.bf16.gmra.mxu3 %v5218_v42  ;;  %2657 = vmatmul.bf16.gmra.mxu1 %v5218_v42 }
 0x263   : > { %3002 = vmatpush.bf16.msrb.mxu1 %v3980_v21 }
 0x264   : > { %v2075_v23 = vpop.f32.mrf.mxu2 }
 0x265   : > { %v2164_v32 = vpop.f32.mrf.mxu3  ;;  %v2255_v34 = vpop.f32.mrf.mxu0 }
 0x266   : > { %v2165_v33 = vadd.f32 %v2164_v32, %v2075_v23 }
 0x267   : > { %v2344_v35 = vpop.f32.mrf.mxu1 }
 0x268   : > { %3217 = vst [vmem:[%s4479_s6 + $0x3f8] sm:$0xff] %v2165_v33  ;;  %v2345_v44 = vadd.f32 %v2344_v35, %v2255_v34 }
 0x26a   : > { %3225 = vst [vmem:[%s4479_s6 + $0x438] sm:$0xff] %v2345_v44 }
 0x26c   : > { %v2077_v45 = vpop.f32.mrf.mxu2 }
 0x26d   : > { %v2166_v46 = vpop.f32.mrf.mxu3  ;;  %v2258_v48 = vpop.f32.mrf.mxu0 }
 0x26e   : > { %v2167_v47 = vadd.f32 %v2166_v46, %v2077_v45 }
 0x26f   : > { %v2347_v49 = vpop.f32.mrf.mxu1 }
 0x270   : > { %3224 = vst [vmem:[%s4479_s6 + $0x430] sm:$0xff] %v2167_v47  ;;  %v2348_v50 = vadd.f32 %v2347_v49, %v2258_v48  ;;  %2573 = vmatmul.bf16.gmra.mxu0 %v5234_v0 }
 0x271   : > { %2395 = vmatmul.bf16.gmra.mxu2 %v5234_v0 }
 0x272   : > { %3232 = vst [vmem:[%s4479_s6 + $0x470] sm:$0xff] %v2348_v50  ;;  %2484 = vmatmul.bf16.gmra.mxu3 %v5238_v2  ;;  %2662 = vmatmul.bf16.gmra.mxu1 %v5238_v2 }
 0x274   : > { %v2080_v6 = vpop.f32.mrf.mxu2 }
 0x275   : > { %v2169_v10 = vpop.f32.mrf.mxu3  ;;  %v2260_v12 = vpop.f32.mrf.mxu0 }
 0x276   : > { %v2170_v11 = vadd.f32 %v2169_v10, %v2080_v6  ;;  %v3721_v6 = vld [vmem:[#allocation2 + $0x10c] sm:$0xf0]  ;;  %v4159_v10 = vld [vmem:[#allocation2 + $0x2b4] sm:$0xf] }
 0x277   : > { %v2349_v13 = vpop.f32.mrf.mxu1  ;;  %v3724_v7 = vor.u32 %v4103_v55, %v3721_v6 }
 0x278   : > { %3231 = vst [vmem:[%s4479_s6 + $0x468] sm:$0xff] %v2170_v11  ;;  %v2350_v14 = vadd.f32 %v2349_v13, %v2260_v12  ;;  %v3945_v11 = vld [vmem:[#allocation2 + $0x2cc] sm:$0xf0] }
 0x279   : > { %v3948_v13 = vor.u32 %v4159_v10, %v3945_v11  ;;  %2736 = vmatpush.bf16.msrb.mxu2 %v3724_v7  ;;  %v4096_v11 = vld [vmem:[#allocation2 + $0xbc] sm:$0xf] }
 0x27a   : > { %3239 = vst [vmem:[%s4479_s6 + $0x4a8] sm:$0xff] %v2350_v14 }
 0x27b   : > { %2825 = vmatpush.bf16.msrb.mxu3 %v3948_v13 }
 0x27c   : > { %v2082_v20 = vpop.f32.mrf.mxu2 }
 0x27d   : > { %v2171_v22 = vpop.f32.mrf.mxu3  ;;  %v2263_v32 = vpop.f32.mrf.mxu0 }
 0x27e   : > { %v2172_v23 = vadd.f32 %v2171_v22, %v2082_v20  ;;  %v4107_v20 = vld [vmem:[#allocation2 + $0x110] sm:$0xf0]  ;;  %v3951_v22 = vld [vmem:[#allocation2 + $0x2b8] sm:$0xf] }
 0x27f   : > { %v2352_v33 = vpop.f32.mrf.mxu1  ;;  %v3728_v21 = vor.u32 %v4107_v20, %v3727_v19 }
 0x280   : > { %3238 = vst [vmem:[%s4479_s6 + $0x4a0] sm:$0xff] %v2172_v23  ;;  %v2353_v34 = vadd.f32 %v2352_v33, %v2263_v32  ;;  %2578 = vmatmul.bf16.gmra.mxu0 %v5254_v28  ;;  %v4163_v23 = vld [vmem:[#allocation2 + $0x2d0] sm:$0xf0] }
 0x281   : > { %2400 = vmatmul.bf16.gmra.mxu2 %v5254_v28  ;;  %v3952_v33 = vor.u32 %v4163_v23, %v3951_v22  ;;  %2914 = vmatpush.bf16.msrb.mxu0 %v3728_v21  ;;  %v3699_v23 = vld [vmem:[#allocation2 + $0xc0] sm:$0xf] }
 0x282   : > { %3246 = vst [vmem:[%s4479_s6 + $0x4e0] sm:$0xff] %v2353_v34  ;;  %2489 = vmatmul.bf16.gmra.mxu3 %v5258_v30  ;;  %2667 = vmatmul.bf16.gmra.mxu1 %v5258_v30 }
 0x283   : > { %3003 = vmatpush.bf16.msrb.mxu1 %v3952_v33 }
 0x284   : > { %v2085_v35 = vpop.f32.mrf.mxu2 }
 0x285   : > { %v2174_v44 = vpop.f32.mrf.mxu3  ;;  %v2265_v46 = vpop.f32.mrf.mxu0 }
 0x286   : > { %v2175_v45 = vadd.f32 %v2174_v44, %v2085_v35 }
 0x287   : > { %v2354_v47 = vpop.f32.mrf.mxu1 }
 0x288   : > { %3245 = vst [vmem:[%s4479_s6 + $0x4d8] sm:$0xff] %v2175_v45  ;;  %v2355_v48 = vadd.f32 %v2354_v47, %v2265_v46 }
 0x28a   : > { %3253 = vst [vmem:[%s4479_s6 + $0x518] sm:$0xff] %v2355_v48 }
 0x28c   : > { %v2087_v49 = vpop.f32.mrf.mxu2 }
 0x28d   : > { %v2176_v50 = vpop.f32.mrf.mxu3  ;;  %v2268_v52 = vpop.f32.mrf.mxu0 }
 0x28e   : > { %v2177_v51 = vadd.f32 %v2176_v50, %v2087_v49 }
 0x28f   : > { %v2357_v53 = vpop.f32.mrf.mxu1 }
 0x290   : > { %3252 = vst [vmem:[%s4479_s6 + $0x510] sm:$0xff] %v2177_v51  ;;  %v2358_v54 = vadd.f32 %v2357_v53, %v2268_v52  ;;  %2583 = vmatmul.bf16.gmra.mxu0 %v5274_v56 }
 0x291   : > { %2405 = vmatmul.bf16.gmra.mxu2 %v5274_v56 }
 0x292   : > { %3260 = vst [vmem:[%s4479_s6 + $0x550] sm:$0xff] %v2358_v54  ;;  %2494 = vmatmul.bf16.gmra.mxu3 %v5278_v58  ;;  %2672 = vmatmul.bf16.gmra.mxu1 %v5278_v58 }
 0x294   : > { %v2090_v12 = vpop.f32.mrf.mxu2 }
 0x295   : > { %v2179_v14 = vpop.f32.mrf.mxu3  ;;  %v2270_v16 = vpop.f32.mrf.mxu0 }
 0x296   : > { %v2180_v15 = vadd.f32 %v2179_v14, %v2090_v12  ;;  %v3693_v12 = vld [vmem:[#allocation2 + $0xd4] sm:$0xf0]  ;;  %v4152_v14 = vld [vmem:[#allocation2 + $0x27c] sm:$0xf] }
 0x297   : > { %v2359_v17 = vpop.f32.mrf.mxu1  ;;  %v3696_v13 = vor.u32 %v4096_v11, %v3693_v12 }
 0x298   : > { %3259 = vst [vmem:[%s4479_s6 + $0x548] sm:$0xff] %v2180_v15  ;;  %v2360_v18 = vadd.f32 %v2359_v17, %v2270_v16  ;;  %v3917_v15 = vld [vmem:[#allocation2 + $0x294] sm:$0xf0] }
 0x299   : > { %v3920_v17 = vor.u32 %v4152_v14, %v3917_v15  ;;  %2737 = vmatpush.bf16.msrb.mxu2 %v3696_v13  ;;  %v4089_v15 = vld [vmem:[#allocation2 + $0x84] sm:$0xf] }
 0x29a   : > { %3267 = vst [vmem:[%s4479_s6 + $0x588] sm:$0xff] %v2360_v18 }
 0x29b   : > { %2826 = vmatpush.bf16.msrb.mxu3 %v3920_v17 }
 0x29c   : > { %v2092_v32 = vpop.f32.mrf.mxu2 }
 0x29d   : > { %v2181_v34 = vpop.f32.mrf.mxu3  ;;  %v2273_v44 = vpop.f32.mrf.mxu0 }
 0x29e   : > { %v2182_v35 = vadd.f32 %v2181_v34, %v2092_v32  ;;  %v4100_v32 = vld [vmem:[#allocation2 + $0xd8] sm:$0xf0]  ;;  %v3923_v34 = vld [vmem:[#allocation2 + $0x280] sm:$0xf] }
 0x29f   : > { %v2362_v45 = vpop.f32.mrf.mxu1  ;;  %v3700_v33 = vor.u32 %v4100_v32, %v3699_v23 }
 0x2a0   : > { %3266 = vst [vmem:[%s4479_s6 + $0x580] sm:$0xff] %v2182_v35  ;;  %v2363_v46 = vadd.f32 %v2362_v45, %v2273_v44  ;;  %2588 = vmatmul.bf16.gmra.mxu0 %v5294_v24  ;;  %v4156_v35 = vld [vmem:[#allocation2 + $0x298] sm:$0xf0] }
 0x2a1   : > { %2410 = vmatmul.bf16.gmra.mxu2 %v5294_v24  ;;  %v3924_v45 = vor.u32 %v4156_v35, %v3923_v34  ;;  %2915 = vmatpush.bf16.msrb.mxu0 %v3700_v33  ;;  %v3671_v35 = vld [vmem:[#allocation2 + $0x88] sm:$0xf] }
 0x2a2   : > { %3274 = vst [vmem:[%s4479_s6 + $0x5c0] sm:$0xff] %v2363_v46  ;;  %2499 = vmatmul.bf16.gmra.mxu3 %v5298_v26  ;;  %2677 = vmatmul.bf16.gmra.mxu1 %v5298_v26 }
 0x2a3   : > { %3004 = vmatpush.bf16.msrb.mxu1 %v3924_v45 }
 0x2a4   : > { %v2095_v47 = vpop.f32.mrf.mxu2 }
 0x2a5   : > { %v2184_v48 = vpop.f32.mrf.mxu3  ;;  %v2275_v50 = vpop.f32.mrf.mxu0 }
 0x2a6   : > { %v2185_v49 = vadd.f32 %v2184_v48, %v2095_v47 }
 0x2a7   : > { %v2364_v51 = vpop.f32.mrf.mxu1 }
 0x2a8   : > { %3273 = vst [vmem:[%s4479_s6 + $0x5b8] sm:$0xff] %v2185_v49  ;;  %v2365_v52 = vadd.f32 %v2364_v51, %v2275_v50 }
 0x2aa   : > { %3281 = vst [vmem:[%s4479_s6 + $0x5f8] sm:$0xff] %v2365_v52 }
 0x2ac   : > { %v2097_v53 = vpop.f32.mrf.mxu2 }
 0x2ad   : > { %v2186_v54 = vpop.f32.mrf.mxu3  ;;  %v2278_v6 = vpop.f32.mrf.mxu0 }
 0x2ae   : > { %v2187_v55 = vadd.f32 %v2186_v54, %v2097_v53 }
 0x2af   : > { %v2367_v7 = vpop.f32.mrf.mxu1 }
 0x2b0   : > { %3280 = vst [vmem:[%s4479_s6 + $0x5f0] sm:$0xff] %v2187_v55  ;;  %v2368_v10 = vadd.f32 %v2367_v7, %v2278_v6  ;;  %2593 = vmatmul.bf16.gmra.mxu0 %v5314_v60 }
 0x2b1   : > { %2415 = vmatmul.bf16.gmra.mxu2 %v5314_v60 }
 0x2b2   : > { %3288 = vst [vmem:[%s4479_s6 + $0x630] sm:$0xff] %v2368_v10  ;;  %2504 = vmatmul.bf16.gmra.mxu3 %v5318_v62  ;;  %2682 = vmatmul.bf16.gmra.mxu1 %v5318_v62 }
 0x2b4   : > { %v2100_v16 = vpop.f32.mrf.mxu2 }
 0x2b5   : > { %v2189_v18 = vpop.f32.mrf.mxu3  ;;  %v2280_v20 = vpop.f32.mrf.mxu0 }
 0x2b6   : > { %v2190_v19 = vadd.f32 %v2189_v18, %v2100_v16  ;;  %v3665_v16 = vld [vmem:[#allocation2 + $0x9c] sm:$0xf0]  ;;  %v4145_v18 = vld [vmem:[#allocation2 + $0x244] sm:$0xf] }
 0x2b7   : > { %v2369_v21 = vpop.f32.mrf.mxu1  ;;  %v3668_v17 = vor.u32 %v4089_v15, %v3665_v16 }
 0x2b8   : > { %3287 = vst [vmem:[%s4479_s6 + $0x628] sm:$0xff] %v2190_v19  ;;  %v2370_v22 = vadd.f32 %v2369_v21, %v2280_v20  ;;  %v3889_v19 = vld [vmem:[#allocation2 + $0x25c] sm:$0xf0] }
 0x2b9   : > { %v3892_v21 = vor.u32 %v4145_v18, %v3889_v19  ;;  %2738 = vmatpush.bf16.msrb.mxu2 %v3668_v17  ;;  %v4082_v19 = vld [vmem:[#allocation2 + $0x4c] sm:$0xf] }
 0x2ba   : > { %3295 = vst [vmem:[%s4479_s6 + $0x668] sm:$0xff] %v2370_v22 }
 0x2bb   : > { %2827 = vmatpush.bf16.msrb.mxu3 %v3892_v21 }
 0x2bc   : > { %v2102_v44 = vpop.f32.mrf.mxu2 }
 0x2bd   : > { %v2191_v46 = vpop.f32.mrf.mxu3  ;;  %v2283_v48 = vpop.f32.mrf.mxu0 }
 0x2be   : > { %v2192_v47 = vadd.f32 %v2191_v46, %v2102_v44  ;;  %v4093_v44 = vld [vmem:[#allocation2 + $0xa0] sm:$0xf0]  ;;  %v3895_v46 = vld [vmem:[#allocation2 + $0x248] sm:$0xf] }
 0x2bf   : > { %v2372_v49 = vpop.f32.mrf.mxu1  ;;  %v3672_v45 = vor.u32 %v4093_v44, %v3671_v35 }
 0x2c0   : > { %3294 = vst [vmem:[%s4479_s6 + $0x660] sm:$0xff] %v2192_v47  ;;  %v2373_v50 = vadd.f32 %v2372_v49, %v2283_v48  ;;  %2598 = vmatmul.bf16.gmra.mxu0 %v5334_v36  ;;  %v4149_v47 = vld [vmem:[#allocation2 + $0x260] sm:$0xf0] }
 0x2c1   : > { %2420 = vmatmul.bf16.gmra.mxu2 %v5334_v36  ;;  %v3896_v49 = vor.u32 %v4149_v47, %v3895_v46  ;;  %2916 = vmatpush.bf16.msrb.mxu0 %v3672_v45  ;;  %v3643_v47 = vld [vmem:[#allocation2 + $0x50] sm:$0xf] }
 0x2c2   : > { %3302 = vst [vmem:[%s4479_s6 + $0x6a0] sm:$0xff] %v2373_v50  ;;  %2509 = vmatmul.bf16.gmra.mxu3 %v5338_v38  ;;  %2687 = vmatmul.bf16.gmra.mxu1 %v5338_v38 }
 0x2c3   : > { %3005 = vmatpush.bf16.msrb.mxu1 %v3896_v49 }
 0x2c4   : > { %v2105_v51 = vpop.f32.mrf.mxu2 }
 0x2c5   : > { %v2194_v52 = vpop.f32.mrf.mxu3  ;;  %v2285_v54 = vpop.f32.mrf.mxu0 }
 0x2c6   : > { %v2195_v53 = vadd.f32 %v2194_v52, %v2105_v51 }
 0x2c7   : > { %v2374_v55 = vpop.f32.mrf.mxu1 }
 0x2c8   : > { %3301 = vst [vmem:[%s4479_s6 + $0x698] sm:$0xff] %v2195_v53  ;;  %v2375_v6 = vadd.f32 %v2374_v55, %v2285_v54 }
 0x2ca   : > { %3309 = vst [vmem:[%s4479_s6 + $0x6d8] sm:$0xff] %v2375_v6 }
 0x2cc   : > { %v2107_v7 = vpop.f32.mrf.mxu2 }
 0x2cd   : > { %v2196_v10 = vpop.f32.mrf.mxu3  ;;  %v2564_v12 = vpop.f32.mrf.mxu0 }
 0x2ce   : > { %v2197_v11 = vadd.f32 %v2196_v10, %v2107_v7 }
 0x2cf   : > { %v2653_v13 = vpop.f32.mrf.mxu1 }
 0x2d0   : > { %3308 = vst [vmem:[%s4479_s6 + $0x6d0] sm:$0xff] %v2197_v11  ;;  %v2654_v14 = vadd.f32 %v2653_v13, %v2564_v12  ;;  %2603 = vmatmul.bf16.gmra.mxu0 %v5196_v4 }
 0x2d1   : > { %2425 = vmatmul.bf16.gmra.mxu2 %v5196_v4 }
 0x2d2   : > { %3093 = vst [vmem:[%s4479_s6 + $0x20] sm:$0xff] %v2654_v14  ;;  %2514 = vmatmul.bf16.gmra.mxu3 %v5200_v9  ;;  %2692 = vmatmul.bf16.gmra.mxu1 %v5200_v9 }
 0x2d4   : > { %v2386_v20 = vpop.f32.mrf.mxu2 }
 0x2d5   : > { %v2475_v22 = vpop.f32.mrf.mxu3  ;;  %v2566_v32 = vpop.f32.mrf.mxu0 }
 0x2d6   : > { %v2476_v23 = vadd.f32 %v2475_v22, %v2386_v20  ;;  %v3637_v20 = vld [vmem:[#allocation2 + $0x64] sm:$0xf0]  ;;  %v4138_v22 = vld [vmem:[#allocation2 + $0x20c] sm:$0xf] }
 0x2d7   : > { %v2655_v33 = vpop.f32.mrf.mxu1  ;;  %v3640_v21 = vor.u32 %v4082_v19, %v3637_v20 }
 0x2d8   : > { %3092 = vst [vmem:[%s4479_s6 + $0x18] sm:$0xff] %v2476_v23  ;;  %v2656_v34 = vadd.f32 %v2655_v33, %v2566_v32  ;;  %v3861_v23 = vld [vmem:[#allocation2 + $0x224] sm:$0xf0] }
 0x2d9   : > { %v3864_v33 = vor.u32 %v4138_v22, %v3861_v23  ;;  %2739 = vmatpush.bf16.msrb.mxu2 %v3640_v21  ;;  %v4075_v23 = vld [vmem:[#allocation2 + $0x14] sm:$0xf] }
 0x2da   : > { %3101 = vst [vmem:[%s4479_s6 + $0x58] sm:$0xff] %v2656_v34 }
 0x2db   : > { %2828 = vmatpush.bf16.msrb.mxu3 %v3864_v33 }
 0x2dc   : > { %v2388_v48 = vpop.f32.mrf.mxu2 }
 0x2dd   : > { %v2477_v50 = vpop.f32.mrf.mxu3  ;;  %v2569_v52 = vpop.f32.mrf.mxu0 }
 0x2de   : > { %v2478_v51 = vadd.f32 %v2477_v50, %v2388_v48  ;;  %v4086_v48 = vld [vmem:[#allocation2 + $0x68] sm:$0xf0]  ;;  %v3867_v50 = vld [vmem:[#allocation2 + $0x210] sm:$0xf] }
 0x2df   : > { %v2658_v53 = vpop.f32.mrf.mxu1  ;;  %v3644_v49 = vor.u32 %v4086_v48, %v3643_v47 }
 0x2e0   : > { %3100 = vst [vmem:[%s4479_s6 + $0x50] sm:$0xff] %v2478_v51  ;;  %v2659_v54 = vadd.f32 %v2658_v53, %v2569_v52  ;;  %2608 = vmatmul.bf16.gmra.mxu0 %v5216_v41  ;;  %v4142_v51 = vld [vmem:[#allocation2 + $0x228] sm:$0xf0] }
 0x2e1   : > { %2430 = vmatmul.bf16.gmra.mxu2 %v5216_v41  ;;  %v3868_v53 = vor.u32 %v4142_v51, %v3867_v50  ;;  %2917 = vmatpush.bf16.msrb.mxu0 %v3644_v49  ;;  %v3615_v51 = vld [vmem:[#allocation2 + $0x18] sm:$0xf] }
 0x2e2   : > { %3108 = vst [vmem:[%s4479_s6 + $0x90] sm:$0xff] %v2659_v54  ;;  %2519 = vmatmul.bf16.gmra.mxu3 %v5220_v43  ;;  %2697 = vmatmul.bf16.gmra.mxu1 %v5220_v43 }
 0x2e3   : > { %3006 = vmatpush.bf16.msrb.mxu1 %v3868_v53 }
 0x2e4   : > { %v2391_v55 = vpop.f32.mrf.mxu2 }
 0x2e5   : > { %v2480_v6 = vpop.f32.mrf.mxu3  ;;  %v2571_v10 = vpop.f32.mrf.mxu0 }
 0x2e6   : > { %v2481_v7 = vadd.f32 %v2480_v6, %v2391_v55 }
 0x2e7   : > { %v2660_v11 = vpop.f32.mrf.mxu1 }
 0x2e8   : > { %3107 = vst [vmem:[%s4479_s6 + $0x88] sm:$0xff] %v2481_v7  ;;  %v2661_v12 = vadd.f32 %v2660_v11, %v2571_v10 }
 0x2ea   : > { %3115 = vst [vmem:[%s4479_s6 + $0xc8] sm:$0xff] %v2661_v12 }
 0x2ec   : > { %v2393_v13 = vpop.f32.mrf.mxu2 }
 0x2ed   : > { %v2482_v14 = vpop.f32.mrf.mxu3  ;;  %v2574_v16 = vpop.f32.mrf.mxu0 }
 0x2ee   : > { %v2483_v15 = vadd.f32 %v2482_v14, %v2393_v13 }
 0x2ef   : > { %v2663_v17 = vpop.f32.mrf.mxu1 }
 0x2f0   : > { %3114 = vst [vmem:[%s4479_s6 + $0xc0] sm:$0xff] %v2483_v15  ;;  %v2664_v18 = vadd.f32 %v2663_v17, %v2574_v16  ;;  %2613 = vmatmul.bf16.gmra.mxu0 %v5236_v1 }
 0x2f1   : > { %2435 = vmatmul.bf16.gmra.mxu2 %v5236_v1 }
 0x2f2   : > { %3122 = vst [vmem:[%s4479_s6 + $0x100] sm:$0xff] %v2664_v18  ;;  %2524 = vmatmul.bf16.gmra.mxu3 %v5240_v5  ;;  %2702 = vmatmul.bf16.gmra.mxu1 %v5240_v5 }
 0x2f4   : > { %v2396_v32 = vpop.f32.mrf.mxu2 }
 0x2f5   : > { %v2485_v34 = vpop.f32.mrf.mxu3  ;;  %v2576_v44 = vpop.f32.mrf.mxu0 }
 0x2f6   : > { %v2486_v35 = vadd.f32 %v2485_v34, %v2396_v32  ;;  %v3609_v32 = vld [vmem:[#allocation2 + $0x2c] sm:$0xf0]  ;;  %v4131_v34 = vld [vmem:[#allocation2 + $0x1d4] sm:$0xf] }
 0x2f7   : > { %v2665_v45 = vpop.f32.mrf.mxu1  ;;  %v3612_v33 = vor.u32 %v4075_v23, %v3609_v32 }
 0x2f8   : > { %3121 = vst [vmem:[%s4479_s6 + $0xf8] sm:$0xff] %v2486_v35  ;;  %v2666_v46 = vadd.f32 %v2665_v45, %v2576_v44  ;;  %v3833_v35 = vld [vmem:[#allocation2 + $0x1ec] sm:$0xf0] }
 0x2f9   : > { %v3836_v45 = vor.u32 %v4131_v34, %v3833_v35  ;;  %2740 = vmatpush.bf16.msrb.mxu2 %v3612_v33 }
 0x2fa   : > { %3129 = vst [vmem:[%s4479_s6 + $0x138] sm:$0xff] %v2666_v46 }
 0x2fb   : > { %2829 = vmatpush.bf16.msrb.mxu3 %v3836_v45 }
 0x2fc   : > { %v2398_v52 = vpop.f32.mrf.mxu2 }
 0x2fd   : > { %v2487_v54 = vpop.f32.mrf.mxu3  ;;  %v2579_v6 = vpop.f32.mrf.mxu0 }
 0x2fe   : > { %v2488_v55 = vadd.f32 %v2487_v54, %v2398_v52  ;;  %v4079_v52 = vld [vmem:[#allocation2 + $0x30] sm:$0xf0]  ;;  %v3839_v54 = vld [vmem:[#allocation2 + $0x1d8] sm:$0xf] }
 0x2ff   : > { %v2668_v7 = vpop.f32.mrf.mxu1  ;;  %v3616_v53 = vor.u32 %v4079_v52, %v3615_v51 }
 0x300   : > { %3128 = vst [vmem:[%s4479_s6 + $0x130] sm:$0xff] %v2488_v55  ;;  %v2669_v10 = vadd.f32 %v2668_v7, %v2579_v6  ;;  %2618 = vmatmul.bf16.gmra.mxu0 %v5256_v29  ;;  %v4135_v55 = vld [vmem:[#allocation2 + $0x1f0] sm:$0xf0] }
 0x301   : > { %2440 = vmatmul.bf16.gmra.mxu2 %v5256_v29  ;;  %v3840_v7 = vor.u32 %v4135_v55, %v3839_v54  ;;  %2918 = vmatpush.bf16.msrb.mxu0 %v3616_v53 }
 0x302   : > { %3136 = vst [vmem:[%s4479_s6 + $0x170] sm:$0xff] %v2669_v10  ;;  %2529 = vmatmul.bf16.gmra.mxu3 %v5260_v31  ;;  %2707 = vmatmul.bf16.gmra.mxu1 %v5260_v31 }
 0x303   : > { %3007 = vmatpush.bf16.msrb.mxu1 %v3840_v7 }
 0x304   : > { %v2401_v11 = vpop.f32.mrf.mxu2 }
 0x305   : > { %v2490_v12 = vpop.f32.mrf.mxu3  ;;  %v2581_v14 = vpop.f32.mrf.mxu0 }
 0x306   : > { %v2491_v13 = vadd.f32 %v2490_v12, %v2401_v11 }
 0x307   : > { %v2670_v15 = vpop.f32.mrf.mxu1 }
 0x308   : > { %3135 = vst [vmem:[%s4479_s6 + $0x168] sm:$0xff] %v2491_v13  ;;  %v2671_v16 = vadd.f32 %v2670_v15, %v2581_v14 }
 0x30a   : > { %3143 = vst [vmem:[%s4479_s6 + $0x1a8] sm:$0xff] %v2671_v16 }
 0x30c   : > { %v2403_v17 = vpop.f32.mrf.mxu2 }
 0x30d   : > { %v2492_v18 = vpop.f32.mrf.mxu3  ;;  %v2584_v20 = vpop.f32.mrf.mxu0 }
 0x30e   : > { %v2493_v19 = vadd.f32 %v2492_v18, %v2403_v17 }
 0x30f   : > { %v2673_v21 = vpop.f32.mrf.mxu1 }
 0x310   : > { %3142 = vst [vmem:[%s4479_s6 + $0x1a0] sm:$0xff] %v2493_v19  ;;  %v2674_v22 = vadd.f32 %v2673_v21, %v2584_v20  ;;  %2623 = vmatmul.bf16.gmra.mxu0 %v5276_v57 }
 0x311   : > { %2445 = vmatmul.bf16.gmra.mxu2 %v5276_v57 }
 0x312   : > { %3150 = vst [vmem:[%s4479_s6 + $0x1e0] sm:$0xff] %v2674_v22  ;;  %2534 = vmatmul.bf16.gmra.mxu3 %v5280_v59  ;;  %2712 = vmatmul.bf16.gmra.mxu1 %v5280_v59 }
 0x314   : > { %v2406_v44 = vpop.f32.mrf.mxu2 }
 0x315   : > { %v2495_v46 = vpop.f32.mrf.mxu3  ;;  %v2586_v48 = vpop.f32.mrf.mxu0 }
 0x316   : > { %v2496_v47 = vadd.f32 %v2495_v46, %v2406_v44 }
 0x317   : > { %v2675_v49 = vpop.f32.mrf.mxu1 }
 0x318   : > { %3149 = vst [vmem:[%s4479_s6 + $0x1d8] sm:$0xff] %v2496_v47  ;;  %v2676_v50 = vadd.f32 %v2675_v49, %v2586_v48 }
 0x31a   : > { %3157 = vst [vmem:[%s4479_s6 + $0x218] sm:$0xff] %v2676_v50 }
 0x31c   : > { %v2408_v6 = vpop.f32.mrf.mxu2 }
 0x31d   : > { %v2497_v10 = vpop.f32.mrf.mxu3  ;;  %v2589_v12 = vpop.f32.mrf.mxu0 }
 0x31e   : > { %v2498_v11 = vadd.f32 %v2497_v10, %v2408_v6 }
 0x31f   : > { %v2678_v13 = vpop.f32.mrf.mxu1 }
 0x320   : > { %3156 = vst [vmem:[%s4479_s6 + $0x210] sm:$0xff] %v2498_v11  ;;  %v2679_v14 = vadd.f32 %v2678_v13, %v2589_v12  ;;  %2628 = vmatmul.bf16.gmra.mxu0 %v5296_v25 }
 0x321   : > { %2450 = vmatmul.bf16.gmra.mxu2 %v5296_v25 }
 0x322   : > { %3164 = vst [vmem:[%s4479_s6 + $0x250] sm:$0xff] %v2679_v14  ;;  %2539 = vmatmul.bf16.gmra.mxu3 %v5300_v27  ;;  %2717 = vmatmul.bf16.gmra.mxu1 %v5300_v27 }
 0x324   : > { %v2411_v15 = vpop.f32.mrf.mxu2 }
 0x325   : > { %v2500_v16 = vpop.f32.mrf.mxu3  ;;  %v2591_v18 = vpop.f32.mrf.mxu0 }
 0x326   : > { %v2501_v17 = vadd.f32 %v2500_v16, %v2411_v15 }
 0x327   : > { %v2680_v19 = vpop.f32.mrf.mxu1 }
 0x328   : > { %3163 = vst [vmem:[%s4479_s6 + $0x248] sm:$0xff] %v2501_v17  ;;  %v2681_v20 = vadd.f32 %v2680_v19, %v2591_v18 }
 0x32a   : > { %3171 = vst [vmem:[%s4479_s6 + $0x288] sm:$0xff] %v2681_v20 }
 0x32c   : > { %v2413_v21 = vpop.f32.mrf.mxu2 }
 0x32d   : > { %v2502_v22 = vpop.f32.mrf.mxu3  ;;  %v2594_v32 = vpop.f32.mrf.mxu0 }
 0x32e   : > { %v2503_v23 = vadd.f32 %v2502_v22, %v2413_v21 }
 0x32f   : > { %v2683_v33 = vpop.f32.mrf.mxu1 }
 0x330   : > { %3170 = vst [vmem:[%s4479_s6 + $0x280] sm:$0xff] %v2503_v23  ;;  %v2684_v34 = vadd.f32 %v2683_v33, %v2594_v32  ;;  %2633 = vmatmul.bf16.gmra.mxu0 %v5316_v61 }
 0x331   : > { %2455 = vmatmul.bf16.gmra.mxu2 %v5316_v61 }
 0x332   : > { %3178 = vst [vmem:[%s4479_s6 + $0x2c0] sm:$0xff] %v2684_v34  ;;  %2544 = vmatmul.bf16.gmra.mxu3 %v5320_v63  ;;  %2722 = vmatmul.bf16.gmra.mxu1 %v5320_v63 }
 0x334   : > { %v2416_v35 = vpop.f32.mrf.mxu2 }
 0x335   : > { %v2505_v44 = vpop.f32.mrf.mxu3  ;;  %v2596_v46 = vpop.f32.mrf.mxu0 }
 0x336   : > { %v2506_v45 = vadd.f32 %v2505_v44, %v2416_v35 }
 0x337   : > { %v2685_v47 = vpop.f32.mrf.mxu1 }
 0x338   : > { %3177 = vst [vmem:[%s4479_s6 + $0x2b8] sm:$0xff] %v2506_v45  ;;  %v2686_v48 = vadd.f32 %v2685_v47, %v2596_v46 }
 0x33a   : > { %3185 = vst [vmem:[%s4479_s6 + $0x2f8] sm:$0xff] %v2686_v48 }
 0x33c   : > { %v2418_v49 = vpop.f32.mrf.mxu2 }
 0x33d   : > { %v2507_v50 = vpop.f32.mrf.mxu3  ;;  %v2599_v52 = vpop.f32.mrf.mxu0 }
 0x33e   : > { %v2508_v51 = vadd.f32 %v2507_v50, %v2418_v49 }
 0x33f   : > { %v2688_v53 = vpop.f32.mrf.mxu1 }
 0x340   : > { %3184 = vst [vmem:[%s4479_s6 + $0x2f0] sm:$0xff] %v2508_v51  ;;  %v2689_v54 = vadd.f32 %v2688_v53, %v2599_v52  ;;  %2638 = vmatmul.bf16.gmra.mxu0 %v5336_v37 }
 0x341   : > { %2460 = vmatmul.bf16.gmra.mxu2 %v5336_v37 }
 0x342   : > { %3192 = vst [vmem:[%s4479_s6 + $0x330] sm:$0xff] %v2689_v54  ;;  %2549 = vmatmul.bf16.gmra.mxu3 %v5340_v39  ;;  %2727 = vmatmul.bf16.gmra.mxu1 %v5340_v39 }
 0x344   : > { %v2421_v55 = vpop.f32.mrf.mxu2 }
 0x345   : > { %v2510_v6 = vpop.f32.mrf.mxu3  ;;  %v2601_v10 = vpop.f32.mrf.mxu0 }
 0x346   : > { %v2511_v7 = vadd.f32 %v2510_v6, %v2421_v55 }
 0x347   : > { %v2690_v11 = vpop.f32.mrf.mxu1 }
 0x348   : > { %3191 = vst [vmem:[%s4479_s6 + $0x328] sm:$0xff] %v2511_v7  ;;  %v2691_v12 = vadd.f32 %v2690_v11, %v2601_v10 }
 0x34a   : > { %3199 = vst [vmem:[%s4479_s6 + $0x368] sm:$0xff] %v2691_v12 }
 0x34c   : > { %v2423_v13 = vpop.f32.mrf.mxu2 }
 0x34d   : > { %v2512_v14 = vpop.f32.mrf.mxu3  ;;  %v2604_v16 = vpop.f32.mrf.mxu0 }
 0x34e   : > { %v2513_v15 = vadd.f32 %v2512_v14, %v2423_v13 }
 0x34f   : > { %v2693_v17 = vpop.f32.mrf.mxu1 }
 0x350   : > { %3198 = vst [vmem:[%s4479_s6 + $0x360] sm:$0xff] %v2513_v15  ;;  %v2694_v18 = vadd.f32 %v2693_v17, %v2604_v16  ;;  %2919 = vmatmul.bf16.vlgmr.msrb.gmra.mxu0 %v5194_v3 }
 0x351   : > { %2741 = vmatmul.bf16.vlgmr.msrb.gmra.mxu2 %v5194_v3 }
 0x352   : > { %3206 = vst [vmem:[%s4479_s6 + $0x3a0] sm:$0xff] %v2694_v18  ;;  %2830 = vmatmul.bf16.vlgmr.msrb.gmra.mxu3 %v5198_v8  ;;  %3008 = vmatmul.bf16.vlgmr.msrb.gmra.mxu1 %v5198_v8 }
 0x354   : > { %v2426_v19 = vpop.f32.mrf.mxu2 }
 0x355   : > { %v2515_v20 = vpop.f32.mrf.mxu3  ;;  %v2606_v22 = vpop.f32.mrf.mxu0 }
 0x356   : > { %v2516_v21 = vadd.f32 %v2515_v20, %v2426_v19 }
 0x357   : > { %v2695_v23 = vpop.f32.mrf.mxu1 }
 0x358   : > { %3205 = vst [vmem:[%s4479_s6 + $0x398] sm:$0xff] %v2516_v21  ;;  %v2696_v32 = vadd.f32 %v2695_v23, %v2606_v22 }
 0x35a   : > { %3213 = vst [vmem:[%s4479_s6 + $0x3d8] sm:$0xff] %v2696_v32 }
 0x35c   : > { %v2428_v33 = vpop.f32.mrf.mxu2 }
 0x35d   : > { %v2517_v34 = vpop.f32.mrf.mxu3  ;;  %v2609_v3 = vpop.f32.mrf.mxu0 }
 0x35e   : > { %v2518_v35 = vadd.f32 %v2517_v34, %v2428_v33 }
 0x35f   : > { %v2698_v44 = vpop.f32.mrf.mxu1 }
 0x360   : > { %3212 = vst [vmem:[%s4479_s6 + $0x3d0] sm:$0xff] %v2518_v35  ;;  %v2699_v45 = vadd.f32 %v2698_v44, %v2609_v3  ;;  %2924 = vmatmul.bf16.gmra.mxu0 %v5214_v40 }
 0x361   : > { %2746 = vmatmul.bf16.gmra.mxu2 %v5214_v40 }
 0x362   : > { %3220 = vst [vmem:[%s4479_s6 + $0x410] sm:$0xff] %v2699_v45  ;;  %2835 = vmatmul.bf16.gmra.mxu3 %v5218_v42  ;;  %3013 = vmatmul.bf16.gmra.mxu1 %v5218_v42 }
 0x364   : > { %v2431_v8 = vpop.f32.mrf.mxu2 }
 0x365   : > { %v2520_v46 = vpop.f32.mrf.mxu3  ;;  %v2611_v48 = vpop.f32.mrf.mxu0 }
 0x366   : > { %v2521_v47 = vadd.f32 %v2520_v46, %v2431_v8 }
 0x367   : > { %v2700_v49 = vpop.f32.mrf.mxu1 }
 0x368   : > { %3219 = vst [vmem:[%s4479_s6 + $0x408] sm:$0xff] %v2521_v47  ;;  %v2701_v50 = vadd.f32 %v2700_v49, %v2611_v48 }
 0x36a   : > { %3227 = vst [vmem:[%s4479_s6 + $0x448] sm:$0xff] %v2701_v50 }
 0x36c   : > { %v2433_v51 = vpop.f32.mrf.mxu2 }
 0x36d   : > { %v2522_v52 = vpop.f32.mrf.mxu3  ;;  %v2614_v40 = vpop.f32.mrf.mxu0 }
 0x36e   : > { %v2523_v53 = vadd.f32 %v2522_v52, %v2433_v51 }
 0x36f   : > { %v2703_v54 = vpop.f32.mrf.mxu1 }
 0x370   : > { %3226 = vst [vmem:[%s4479_s6 + $0x440] sm:$0xff] %v2523_v53  ;;  %v2704_v55 = vadd.f32 %v2703_v54, %v2614_v40  ;;  %2929 = vmatmul.bf16.gmra.mxu0 %v5234_v0 }
 0x371   : > { %2751 = vmatmul.bf16.gmra.mxu2 %v5234_v0 }
 0x372   : > { %3234 = vst [vmem:[%s4479_s6 + $0x480] sm:$0xff] %v2704_v55  ;;  %2840 = vmatmul.bf16.gmra.mxu3 %v5238_v2  ;;  %3018 = vmatmul.bf16.gmra.mxu1 %v5238_v2 }
 0x374   : > { %v2436_v42 = vpop.f32.mrf.mxu2 }
 0x375   : > { %v2525_v6 = vpop.f32.mrf.mxu3  ;;  %v2616_v10 = vpop.f32.mrf.mxu0 }
 0x376   : > { %v2526_v7 = vadd.f32 %v2525_v6, %v2436_v42 }
 0x377   : > { %v2705_v11 = vpop.f32.mrf.mxu1 }
 0x378   : > { %3233 = vst [vmem:[%s4479_s6 + $0x478] sm:$0xff] %v2526_v7  ;;  %v2706_v12 = vadd.f32 %v2705_v11, %v2616_v10 }
 0x37a   : > { %3241 = vst [vmem:[%s4479_s6 + $0x4b8] sm:$0xff] %v2706_v12 }
 0x37c   : > { %v2438_v13 = vpop.f32.mrf.mxu2 }
 0x37d   : > { %v2527_v14 = vpop.f32.mrf.mxu3  ;;  %v2619_v0 = vpop.f32.mrf.mxu0 }
 0x37e   : > { %v2528_v15 = vadd.f32 %v2527_v14, %v2438_v13 }
 0x37f   : > { %v2708_v16 = vpop.f32.mrf.mxu1 }
 0x380   : > { %3240 = vst [vmem:[%s4479_s6 + $0x4b0] sm:$0xff] %v2528_v15  ;;  %v2709_v17 = vadd.f32 %v2708_v16, %v2619_v0  ;;  %2934 = vmatmul.bf16.gmra.mxu0 %v5254_v28 }
 0x381   : > { %2756 = vmatmul.bf16.gmra.mxu2 %v5254_v28 }
 0x382   : > { %3248 = vst [vmem:[%s4479_s6 + $0x4f0] sm:$0xff] %v2709_v17  ;;  %2845 = vmatmul.bf16.gmra.mxu3 %v5258_v30  ;;  %3023 = vmatmul.bf16.gmra.mxu1 %v5258_v30 }
 0x384   : > { %v2441_v2 = vpop.f32.mrf.mxu2 }
 0x385   : > { %v2530_v18 = vpop.f32.mrf.mxu3  ;;  %v2621_v20 = vpop.f32.mrf.mxu0 }
 0x386   : > { %v2531_v19 = vadd.f32 %v2530_v18, %v2441_v2 }
 0x387   : > { %v2710_v21 = vpop.f32.mrf.mxu1 }
 0x388   : > { %3247 = vst [vmem:[%s4479_s6 + $0x4e8] sm:$0xff] %v2531_v19  ;;  %v2711_v22 = vadd.f32 %v2710_v21, %v2621_v20 }
 0x38a   : > { %3255 = vst [vmem:[%s4479_s6 + $0x528] sm:$0xff] %v2711_v22 }
 0x38c   : > { %v2443_v23 = vpop.f32.mrf.mxu2 }
 0x38d   : > { %v2532_v32 = vpop.f32.mrf.mxu3  ;;  %v2624_v28 = vpop.f32.mrf.mxu0 }
 0x38e   : > { %v2533_v33 = vadd.f32 %v2532_v32, %v2443_v23 }
 0x38f   : > { %v2713_v34 = vpop.f32.mrf.mxu1 }
 0x390   : > { %3254 = vst [vmem:[%s4479_s6 + $0x520] sm:$0xff] %v2533_v33  ;;  %v2714_v35 = vadd.f32 %v2713_v34, %v2624_v28  ;;  %2939 = vmatmul.bf16.gmra.mxu0 %v5274_v56 }
 0x391   : > { %2761 = vmatmul.bf16.gmra.mxu2 %v5274_v56 }
 0x392   : > { %3262 = vst [vmem:[%s4479_s6 + $0x560] sm:$0xff] %v2714_v35  ;;  %2850 = vmatmul.bf16.gmra.mxu3 %v5278_v58  ;;  %3028 = vmatmul.bf16.gmra.mxu1 %v5278_v58 }
 0x394   : > { %v2446_v30 = vpop.f32.mrf.mxu2 }
 0x395   : > { %v2535_v3 = vpop.f32.mrf.mxu3  ;;  %v2626_v45 = vpop.f32.mrf.mxu0 }
 0x396   : > { %v2536_v44 = vadd.f32 %v2535_v3, %v2446_v30 }
 0x397   : > { %v2715_v8 = vpop.f32.mrf.mxu1 }
 0x398   : > { %3261 = vst [vmem:[%s4479_s6 + $0x558] sm:$0xff] %v2536_v44  ;;  %v2716_v46 = vadd.f32 %v2715_v8, %v2626_v45 }
 0x39a   : > { %3269 = vst [vmem:[%s4479_s6 + $0x598] sm:$0xff] %v2716_v46 }
 0x39c   : > { %v2448_v47 = vpop.f32.mrf.mxu2 }
 0x39d   : > { %v2537_v48 = vpop.f32.mrf.mxu3  ;;  %v2629_v56 = vpop.f32.mrf.mxu0 }
 0x39e   : > { %v2538_v49 = vadd.f32 %v2537_v48, %v2448_v47 }
 0x39f   : > { %v2718_v50 = vpop.f32.mrf.mxu1 }
 0x3a0   : > { %3268 = vst [vmem:[%s4479_s6 + $0x590] sm:$0xff] %v2538_v49  ;;  %v2719_v51 = vadd.f32 %v2718_v50, %v2629_v56  ;;  %2944 = vmatmul.bf16.gmra.mxu0 %v5294_v24 }
 0x3a1   : > { %2766 = vmatmul.bf16.gmra.mxu2 %v5294_v24 }
 0x3a2   : > { %3276 = vst [vmem:[%s4479_s6 + $0x5d0] sm:$0xff] %v2719_v51  ;;  %2855 = vmatmul.bf16.gmra.mxu3 %v5298_v26  ;;  %3033 = vmatmul.bf16.gmra.mxu1 %v5298_v26 }
 0x3a4   : > { %v2451_v58 = vpop.f32.mrf.mxu2 }
 0x3a5   : > { %v2540_v52 = vpop.f32.mrf.mxu3  ;;  %v2631_v40 = vpop.f32.mrf.mxu0 }
 0x3a6   : > { %v2541_v53 = vadd.f32 %v2540_v52, %v2451_v58 }
 0x3a7   : > { %v2720_v54 = vpop.f32.mrf.mxu1 }
 0x3a8   : > { %3275 = vst [vmem:[%s4479_s6 + $0x5c8] sm:$0xff] %v2541_v53  ;;  %v2721_v55 = vadd.f32 %v2720_v54, %v2631_v40 }
 0x3aa   : > { %3283 = vst [vmem:[%s4479_s6 + $0x608] sm:$0xff] %v2721_v55 }
 0x3ac   : > { %v2453_v42 = vpop.f32.mrf.mxu2 }
 0x3ad   : > { %v2542_v6 = vpop.f32.mrf.mxu3  ;;  %v2634_v24 = vpop.f32.mrf.mxu0 }
 0x3ae   : > { %v2543_v7 = vadd.f32 %v2542_v6, %v2453_v42 }
 0x3af   : > { %v2723_v10 = vpop.f32.mrf.mxu1 }
 0x3b0   : > { %3282 = vst [vmem:[%s4479_s6 + $0x600] sm:$0xff] %v2543_v7  ;;  %v2724_v11 = vadd.f32 %v2723_v10, %v2634_v24  ;;  %2949 = vmatmul.bf16.gmra.mxu0 %v5314_v60 }
 0x3b1   : > { %2771 = vmatmul.bf16.gmra.mxu2 %v5314_v60 }
 0x3b2   : > { %3290 = vst [vmem:[%s4479_s6 + $0x640] sm:$0xff] %v2724_v11  ;;  %2860 = vmatmul.bf16.gmra.mxu3 %v5318_v62  ;;  %3038 = vmatmul.bf16.gmra.mxu1 %v5318_v62 }
 0x3b4   : > { %v2456_v26 = vpop.f32.mrf.mxu2 }
 0x3b5   : > { %v2545_v12 = vpop.f32.mrf.mxu3  ;;  %v2636_v14 = vpop.f32.mrf.mxu0 }
 0x3b6   : > { %v2546_v13 = vadd.f32 %v2545_v12, %v2456_v26 }
 0x3b7   : > { %v2725_v15 = vpop.f32.mrf.mxu1 }
 0x3b8   : > { %3289 = vst [vmem:[%s4479_s6 + $0x638] sm:$0xff] %v2546_v13  ;;  %v2726_v0 = vadd.f32 %v2725_v15, %v2636_v14 }
 0x3ba   : > { %3297 = vst [vmem:[%s4479_s6 + $0x678] sm:$0xff] %v2726_v0 }
 0x3bc   : > { %v2458_v16 = vpop.f32.mrf.mxu2 }
 0x3bd   : > { %v2547_v17 = vpop.f32.mrf.mxu3  ;;  %v2639_v60 = vpop.f32.mrf.mxu0 }
 0x3be   : > { %v2548_v2 = vadd.f32 %v2547_v17, %v2458_v16 }
 0x3bf   : > { %v2728_v18 = vpop.f32.mrf.mxu1 }
 0x3c0   : > { %3296 = vst [vmem:[%s4479_s6 + $0x670] sm:$0xff] %v2548_v2  ;;  %v2729_v19 = vadd.f32 %v2728_v18, %v2639_v60  ;;  %2954 = vmatmul.bf16.gmra.mxu0 %v5334_v36 }
 0x3c1   : > { %2776 = vmatmul.bf16.gmra.mxu2 %v5334_v36 }
 0x3c2   : > { %3304 = vst [vmem:[%s4479_s6 + $0x6b0] sm:$0xff] %v2729_v19  ;;  %2865 = vmatmul.bf16.gmra.mxu3 %v5338_v38  ;;  %3043 = vmatmul.bf16.gmra.mxu1 %v5338_v38 }
 0x3c4   : > { %v2461_v62 = vpop.f32.mrf.mxu2 }
 0x3c5   : > { %v2550_v20 = vpop.f32.mrf.mxu3  ;;  %v2641_v22 = vpop.f32.mrf.mxu0 }
 0x3c6   : > { %v2551_v21 = vadd.f32 %v2550_v20, %v2461_v62 }
 0x3c7   : > { %v2730_v23 = vpop.f32.mrf.mxu1 }
 0x3c8   : > { %3303 = vst [vmem:[%s4479_s6 + $0x6a8] sm:$0xff] %v2551_v21  ;;  %v2731_v32 = vadd.f32 %v2730_v23, %v2641_v22 }
 0x3ca   : > { %3311 = vst [vmem:[%s4479_s6 + $0x6e8] sm:$0xff] %v2731_v32 }
 0x3cc   : > { %v2463_v33 = vpop.f32.mrf.mxu2 }
 0x3cd   : > { %v2552_v28 = vpop.f32.mrf.mxu3  ;;  %v2920_v36 = vpop.f32.mrf.mxu0 }
 0x3ce   : > { %v2553_v34 = vadd.f32 %v2552_v28, %v2463_v33 }
 0x3cf   : > { %v3009_v35 = vpop.f32.mrf.mxu1 }
 0x3d0   : > { %3310 = vst [vmem:[%s4479_s6 + $0x6e0] sm:$0xff] %v2553_v34  ;;  %v3010_v30 = vadd.f32 %v3009_v35, %v2920_v36  ;;  %2959 = vmatmul.bf16.gmra.mxu0 %v5196_v4 }
 0x3d1   : > { %2781 = vmatmul.bf16.gmra.mxu2 %v5196_v4 }
 0x3d2   : > { %3096 = vst.msk [vmem:[%s4479_s6 + $0x30] sm:$0xff] %vm3095_vm1, %v3010_v30  ;;  %2870 = vmatmul.bf16.gmra.mxu3 %v5200_v9  ;;  %3048 = vmatmul.bf16.gmra.mxu1 %v5200_v9 }
 0x3d4   : > { %v2742_v38 = vpop.f32.mrf.mxu2 }
 0x3d5   : > { %v2831_v3 = vpop.f32.mrf.mxu3  ;;  %v2922_v45 = vpop.f32.mrf.mxu0 }
 0x3d6   : > { %v2832_v44 = vadd.f32 %v2831_v3, %v2742_v38 }
 0x3d7   : > { %v3011_v8 = vpop.f32.mrf.mxu1 }
 0x3d8   : > { %3094 = vst [vmem:[%s4479_s6 + $0x28] sm:$0xff] %v2832_v44  ;;  %v3012_v46 = vadd.f32 %v3011_v8, %v2922_v45 }
 0x3da   : > { %3103 = vst.msk [vmem:[%s4479_s6 + $0x68] sm:$0xff] %vm3095_vm1, %v3012_v46 }
 0x3dc   : > { %v2744_v47 = vpop.f32.mrf.mxu2 }
 0x3dd   : > { %v2833_v48 = vpop.f32.mrf.mxu3  ;;  %v2925_v49 = vpop.f32.mrf.mxu0 }
 0x3de   : > { %v2834_v4 = vadd.f32 %v2833_v48, %v2744_v47 }
 0x3df   : > { %v3014_v56 = vpop.f32.mrf.mxu1 }
 0x3e0   : > { %3102 = vst [vmem:[%s4479_s6 + $0x60] sm:$0xff] %v2834_v4  ;;  %v3015_v50 = vadd.f32 %v3014_v56, %v2925_v49  ;;  %2964 = vmatmul.bf16.gmra.mxu0 %v5216_v41 }
 0x3e1   : > { %2786 = vmatmul.bf16.gmra.mxu2 %v5216_v41 }
 0x3e2   : > { %3110 = vst.msk [vmem:[%s4479_s6 + $0xa0] sm:$0xff] %vm3095_vm1, %v3015_v50  ;;  %2875 = vmatmul.bf16.gmra.mxu3 %v5220_v43  ;;  %3053 = vmatmul.bf16.gmra.mxu1 %v5220_v43 }
 0x3e4   : > { %v2747_v9 = vpop.f32.mrf.mxu2 }
 0x3e5   : > { %v2836_v51 = vpop.f32.mrf.mxu3  ;;  %v2927_v52 = vpop.f32.mrf.mxu0 }
 0x3e6   : > { %v2837_v58 = vadd.f32 %v2836_v51, %v2747_v9 }
 0x3e7   : > { %v3016_v53 = vpop.f32.mrf.mxu1 }
 0x3e8   : > { %3109 = vst [vmem:[%s4479_s6 + $0x98] sm:$0xff] %v2837_v58  ;;  %v3017_v40 = vadd.f32 %v3016_v53, %v2927_v52 }
 0x3ea   : > { %3117 = vst.msk [vmem:[%s4479_s6 + $0xd8] sm:$0xff] %vm3095_vm1, %v3017_v40 }
 0x3ec   : > { %v2749_v54 = vpop.f32.mrf.mxu2 }
 0x3ed   : > { %v2838_v55 = vpop.f32.mrf.mxu3  ;;  %v2930_v42 = vpop.f32.mrf.mxu0 }
 0x3ee   : > { %v2839_v41 = vadd.f32 %v2838_v55, %v2749_v54 }
 0x3ef   : > { %v3019_v6 = vpop.f32.mrf.mxu1 }
 0x3f0   : > { %3116 = vst [vmem:[%s4479_s6 + $0xd0] sm:$0xff] %v2839_v41  ;;  %v3020_v7 = vadd.f32 %v3019_v6, %v2930_v42  ;;  %2969 = vmatmul.bf16.gmra.mxu0 %v5236_v1 }
 0x3f1   : > { %2791 = vmatmul.bf16.gmra.mxu2 %v5236_v1 }
 0x3f2   : > { %3124 = vst.msk [vmem:[%s4479_s6 + $0x110] sm:$0xff] %vm3095_vm1, %v3020_v7  ;;  %2880 = vmatmul.bf16.gmra.mxu3 %v5240_v5  ;;  %3058 = vmatmul.bf16.gmra.mxu1 %v5240_v5 }
 0x3f4   : > { %v2752_v43 = vpop.f32.mrf.mxu2 }
 0x3f5   : > { %v2841_v24 = vpop.f32.mrf.mxu3  ;;  %v2932_v11 = vpop.f32.mrf.mxu0 }
 0x3f6   : > { %v2842_v10 = vadd.f32 %v2841_v24, %v2752_v43 }
 0x3f7   : > { %v3021_v26 = vpop.f32.mrf.mxu1 }
 0x3f8   : > { %3123 = vst [vmem:[%s4479_s6 + $0x108] sm:$0xff] %v2842_v10  ;;  %v3022_v12 = vadd.f32 %v3021_v26, %v2932_v11 }
 0x3fa   : > { %3131 = vst.msk [vmem:[%s4479_s6 + $0x148] sm:$0xff] %vm3095_vm1, %v3022_v12 }
 0x3fc   : > { %v2754_v13 = vpop.f32.mrf.mxu2 }
 0x3fd   : > { %v2843_v14 = vpop.f32.mrf.mxu3  ;;  %v2935_v15 = vpop.f32.mrf.mxu0 }
 0x3fe   : > { %v2844_v1 = vadd.f32 %v2843_v14, %v2754_v13 }
 0x3ff   : > { %v3024_v0 = vpop.f32.mrf.mxu1 }
 0x400   : > { %3130 = vst [vmem:[%s4479_s6 + $0x140] sm:$0xff] %v2844_v1  ;;  %v3025_v16 = vadd.f32 %v3024_v0, %v2935_v15  ;;  %2974 = vmatmul.bf16.gmra.mxu0 %v5256_v29 }
 0x401   : > { %2796 = vmatmul.bf16.gmra.mxu2 %v5256_v29 }
 0x402   : > { %3138 = vst.msk [vmem:[%s4479_s6 + $0x180] sm:$0xff] %vm3095_vm1, %v3025_v16  ;;  %2885 = vmatmul.bf16.gmra.mxu3 %v5260_v31  ;;  %3063 = vmatmul.bf16.gmra.mxu1 %v5260_v31 }
 0x404   : > { %v2757_v5 = vpop.f32.mrf.mxu2 }
 0x405   : > { %v2846_v17 = vpop.f32.mrf.mxu3  ;;  %v2937_v60 = vpop.f32.mrf.mxu0 }
 0x406   : > { %v2847_v2 = vadd.f32 %v2846_v17, %v2757_v5 }
 0x407   : > { %v3026_v18 = vpop.f32.mrf.mxu1 }
 0x408   : > { %3137 = vst [vmem:[%s4479_s6 + $0x178] sm:$0xff] %v2847_v2  ;;  %v3027_v19 = vadd.f32 %v3026_v18, %v2937_v60 }
 0x40a   : > { %3145 = vst.msk [vmem:[%s4479_s6 + $0x1b8] sm:$0xff] %vm3095_vm1, %v3027_v19 }
 0x40c   : > { %v2759_v62 = vpop.f32.mrf.mxu2 }
 0x40d   : > { %v2848_v20 = vpop.f32.mrf.mxu3  ;;  %v2940_v21 = vpop.f32.mrf.mxu0 }
 0x40e   : > { %v2849_v29 = vadd.f32 %v2848_v20, %v2759_v62 }
 0x40f   : > { %v3029_v22 = vpop.f32.mrf.mxu1 }
 0x410   : > { %3144 = vst [vmem:[%s4479_s6 + $0x1b0] sm:$0xff] %v2849_v29  ;;  %v3030_v23 = vadd.f32 %v3029_v22, %v2940_v21  ;;  %2979 = vmatmul.bf16.gmra.mxu0 %v5276_v57 }
 0x411   : > { %2801 = vmatmul.bf16.gmra.mxu2 %v5276_v57 }
 0x412   : > { %3152 = vst.msk [vmem:[%s4479_s6 + $0x1f0] sm:$0xff] %vm3095_vm1, %v3030_v23  ;;  %2890 = vmatmul.bf16.gmra.mxu3 %v5280_v59  ;;  %3068 = vmatmul.bf16.gmra.mxu1 %v5280_v59 }
 0x414   : > { %v2762_v31 = vpop.f32.mrf.mxu2 }
 0x415   : > { %v2851_v32 = vpop.f32.mrf.mxu3  ;;  %v2942_v28 = vpop.f32.mrf.mxu0 }
 0x416   : > { %v2852_v33 = vadd.f32 %v2851_v32, %v2762_v31 }
 0x417   : > { %v3031_v34 = vpop.f32.mrf.mxu1 }
 0x418   : > { %3151 = vst [vmem:[%s4479_s6 + $0x1e8] sm:$0xff] %v2852_v33  ;;  %v3032_v36 = vadd.f32 %v3031_v34, %v2942_v28 }
 0x41a   : > { %3159 = vst.msk [vmem:[%s4479_s6 + $0x228] sm:$0xff] %vm3095_vm1, %v3032_v36 }
 0x41c   : > { %v2764_v35 = vpop.f32.mrf.mxu2 }
 0x41d   : > { %v2853_v30 = vpop.f32.mrf.mxu3  ;;  %v2945_v38 = vpop.f32.mrf.mxu0 }
 0x41e   : > { %v2854_v57 = vadd.f32 %v2853_v30, %v2764_v35 }
 0x41f   : > { %v3034_v3 = vpop.f32.mrf.mxu1 }
 0x420   : > { %3158 = vst [vmem:[%s4479_s6 + $0x220] sm:$0xff] %v2854_v57  ;;  %v3035_v44 = vadd.f32 %v3034_v3, %v2945_v38  ;;  %2984 = vmatmul.bf16.gmra.mxu0 %v5296_v25 }
 0x421   : > { %2806 = vmatmul.bf16.gmra.mxu2 %v5296_v25 }
 0x422   : > { %3166 = vst.msk [vmem:[%s4479_s6 + $0x260] sm:$0xff] %vm3095_vm1, %v3035_v44  ;;  %2895 = vmatmul.bf16.gmra.mxu3 %v5300_v27  ;;  %3073 = vmatmul.bf16.gmra.mxu1 %v5300_v27 }
 0x424   : > { %v2767_v59 = vpop.f32.mrf.mxu2 }
 0x425   : > { %v2856_v45 = vpop.f32.mrf.mxu3  ;;  %v2947_v46 = vpop.f32.mrf.mxu0 }
 0x426   : > { %v2857_v8 = vadd.f32 %v2856_v45, %v2767_v59 }
 0x427   : > { %v3036_v47 = vpop.f32.mrf.mxu1 }
 0x428   : > { %3165 = vst [vmem:[%s4479_s6 + $0x258] sm:$0xff] %v2857_v8  ;;  %v3037_v48 = vadd.f32 %v3036_v47, %v2947_v46 }
 0x42a   : > { %3173 = vst.msk [vmem:[%s4479_s6 + $0x298] sm:$0xff] %vm3095_vm1, %v3037_v48 }
 0x42c   : > { %v2769_v4 = vpop.f32.mrf.mxu2 }
 0x42d   : > { %v2858_v49 = vpop.f32.mrf.mxu3  ;;  %v2950_v56 = vpop.f32.mrf.mxu0 }
 0x42e   : > { %v2859_v25 = vadd.f32 %v2858_v49, %v2769_v4 }
 0x42f   : > { %v3039_v50 = vpop.f32.mrf.mxu1 }
 0x430   : > { %3172 = vst [vmem:[%s4479_s6 + $0x290] sm:$0xff] %v2859_v25  ;;  %v3040_v9 = vadd.f32 %v3039_v50, %v2950_v56  ;;  %2989 = vmatmul.bf16.gmra.mxu0 %v5316_v61 }
 0x431   : > { %2811 = vmatmul.bf16.gmra.mxu2 %v5316_v61 }
 0x432   : > { %3180 = vst.msk [vmem:[%s4479_s6 + $0x2d0] sm:$0xff] %vm3095_vm1, %v3040_v9  ;;  %2900 = vmatmul.bf16.gmra.mxu3 %v5320_v63  ;;  %3078 = vmatmul.bf16.gmra.mxu1 %v5320_v63 }
 0x434   : > { %v2772_v27 = vpop.f32.mrf.mxu2 }
 0x435   : > { %v2861_v51 = vpop.f32.mrf.mxu3  ;;  %v2952_v52 = vpop.f32.mrf.mxu0 }
 0x436   : > { %v2862_v58 = vadd.f32 %v2861_v51, %v2772_v27 }
 0x437   : > { %v3041_v53 = vpop.f32.mrf.mxu1 }
 0x438   : > { %3179 = vst [vmem:[%s4479_s6 + $0x2c8] sm:$0xff] %v2862_v58  ;;  %v3042_v40 = vadd.f32 %v3041_v53, %v2952_v52 }
 0x43a   : > { %3187 = vst.msk [vmem:[%s4479_s6 + $0x308] sm:$0xff] %vm3095_vm1, %v3042_v40 }
 0x43c   : > { %v2774_v54 = vpop.f32.mrf.mxu2 }
 0x43d   : > { %v2863_v55 = vpop.f32.mrf.mxu3  ;;  %v2955_v41 = vpop.f32.mrf.mxu0 }
 0x43e   : > { %v2864_v61 = vadd.f32 %v2863_v55, %v2774_v54 }
 0x43f   : > { %v3044_v42 = vpop.f32.mrf.mxu1 }
 0x440   : > { %3186 = vst [vmem:[%s4479_s6 + $0x300] sm:$0xff] %v2864_v61  ;;  %v3045_v6 = vadd.f32 %v3044_v42, %v2955_v41  ;;  %2994 = vmatmul.bf16.gmra.mxu0 %v5336_v37 }
 0x441   : > { %2816 = vmatmul.bf16.gmra.mxu2 %v5336_v37 }
 0x442   : > { %3194 = vst.msk [vmem:[%s4479_s6 + $0x340] sm:$0xff] %vm3095_vm1, %v3045_v6  ;;  %2905 = vmatmul.bf16.gmra.mxu3 %v5340_v39  ;;  %3083 = vmatmul.bf16.gmra.mxu1 %v5340_v39 }
 0x444   : > { %v2777_v63 = vpop.f32.mrf.mxu2 }
 0x445   : > { %v2866_v7 = vpop.f32.mrf.mxu3  ;;  %v2957_v24 = vpop.f32.mrf.mxu0 }
 0x446   : > { %v2867_v43 = vadd.f32 %v2866_v7, %v2777_v63 }
 0x447   : > { %v3046_v10 = vpop.f32.mrf.mxu1 }
 0x448   : > { %3193 = vst [vmem:[%s4479_s6 + $0x338] sm:$0xff] %v2867_v43  ;;  %v3047_v11 = vadd.f32 %v3046_v10, %v2957_v24 }
 0x44a   : > { %3201 = vst.msk [vmem:[%s4479_s6 + $0x378] sm:$0xff] %vm3095_vm1, %v3047_v11 }
 0x44c   : > { %v2779_v37 = vpop.f32.mrf.mxu2 }
 0x44d   : > { %v2868_v26 = vpop.f32.mrf.mxu3  ;;  %v2960_v13 = vpop.f32.mrf.mxu0 }
 0x44e   : > { %v2869_v12 = vadd.f32 %v2868_v26, %v2779_v37 }
 0x44f   : > { %v3049_v14 = vpop.f32.mrf.mxu1 }
 0x450   : > { %3200 = vst [vmem:[%s4479_s6 + $0x370] sm:$0xff] %v2869_v12  ;;  %v3050_v39 = vadd.f32 %v3049_v14, %v2960_v13 }
 0x452   : > { %3208 = vst.msk [vmem:[%s4479_s6 + $0x3b0] sm:$0xff] %vm3095_vm1, %v3050_v39 }
 0x454   : > { %v2782_v1 = vpop.f32.mrf.mxu2 }
 0x455   : > { %v2871_v15 = vpop.f32.mrf.mxu3  ;;  %v2962_v16 = vpop.f32.mrf.mxu0 }
 0x456   : > { %v2872_v0 = vadd.f32 %v2871_v15, %v2782_v1 }
 0x457   : > { %v3051_v5 = vpop.f32.mrf.mxu1 }
 0x458   : > { %3207 = vst [vmem:[%s4479_s6 + $0x3a8] sm:$0xff] %v2872_v0  ;;  %v3052_v17 = vadd.f32 %v3051_v5, %v2962_v16 }
 0x45a   : > { %3215 = vst.msk [vmem:[%s4479_s6 + $0x3e8] sm:$0xff] %vm3095_vm1, %v3052_v17 }
 0x45c   : > { %v2784_v2 = vpop.f32.mrf.mxu2 }
 0x45d   : > { %v2873_v60 = vpop.f32.mrf.mxu3  ;;  %v2965_v19 = vpop.f32.mrf.mxu0 }
 0x45e   : > { %v2874_v18 = vadd.f32 %v2873_v60, %v2784_v2 }
 0x45f   : > { %v3054_v62 = vpop.f32.mrf.mxu1 }
 0x460   : > { %3214 = vst [vmem:[%s4479_s6 + $0x3e0] sm:$0xff] %v2874_v18  ;;  %v3055_v20 = vadd.f32 %v3054_v62, %v2965_v19 }
 0x462   : > { %3222 = vst.msk [vmem:[%s4479_s6 + $0x420] sm:$0xff] %vm3095_vm1, %v3055_v20 }
 0x464   : > { %v2787_v29 = vpop.f32.mrf.mxu2 }
 0x465   : > { %v2876_v21 = vpop.f32.mrf.mxu3  ;;  %v2967_v23 = vpop.f32.mrf.mxu0 }
 0x466   : > { %v2877_v22 = vadd.f32 %v2876_v21, %v2787_v29 }
 0x467   : > { %v3056_v31 = vpop.f32.mrf.mxu1 }
 0x468   : > { %3221 = vst [vmem:[%s4479_s6 + $0x418] sm:$0xff] %v2877_v22  ;;  %v3057_v32 = vadd.f32 %v3056_v31, %v2967_v23 }
 0x46a   : > { %3229 = vst.msk [vmem:[%s4479_s6 + $0x458] sm:$0xff] %vm3095_vm1, %v3057_v32 }
 0x46c   : > { %v2789_v33 = vpop.f32.mrf.mxu2 }
 0x46d   : > { %v2878_v28 = vpop.f32.mrf.mxu3  ;;  %v2970_v36 = vpop.f32.mrf.mxu0 }
 0x46e   : > { %v2879_v34 = vadd.f32 %v2878_v28, %v2789_v33 }
 0x46f   : > { %v3059_v35 = vpop.f32.mrf.mxu1 }
 0x470   : > { %3228 = vst [vmem:[%s4479_s6 + $0x450] sm:$0xff] %v2879_v34  ;;  %v3060_v30 = vadd.f32 %v3059_v35, %v2970_v36 }
 0x472   : > { %3236 = vst.msk [vmem:[%s4479_s6 + $0x490] sm:$0xff] %vm3095_vm1, %v3060_v30 }
 0x474   : > { %v2792_v57 = vpop.f32.mrf.mxu2 }
 0x475   : > { %v2881_v38 = vpop.f32.mrf.mxu3  ;;  %v2972_v44 = vpop.f32.mrf.mxu0 }
 0x476   : > { %v2882_v3 = vadd.f32 %v2881_v38, %v2792_v57 }
 0x477   : > { %v3061_v59 = vpop.f32.mrf.mxu1 }
 0x478   : > { %3235 = vst [vmem:[%s4479_s6 + $0x488] sm:$0xff] %v2882_v3  ;;  %v3062_v45 = vadd.f32 %v3061_v59, %v2972_v44 }
 0x47a   : > { %3243 = vst.msk [vmem:[%s4479_s6 + $0x4c8] sm:$0xff] %vm3095_vm1, %v3062_v45 }
 0x47c   : > { %v2794_v8 = vpop.f32.mrf.mxu2 }
 0x47d   : > { %v2883_v46 = vpop.f32.mrf.mxu3  ;;  %v2975_v48 = vpop.f32.mrf.mxu0 }
 0x47e   : > { %v2884_v47 = vadd.f32 %v2883_v46, %v2794_v8 }
 0x47f   : > { %v3064_v4 = vpop.f32.mrf.mxu1 }
 0x480   : > { %3242 = vst [vmem:[%s4479_s6 + $0x4c0] sm:$0xff] %v2884_v47  ;;  %v3065_v49 = vadd.f32 %v3064_v4, %v2975_v48 }
 0x482   : > { %3250 = vst.msk [vmem:[%s4479_s6 + $0x500] sm:$0xff] %vm3095_vm1, %v3065_v49 }
 0x484   : > { %v2797_v25 = vpop.f32.mrf.mxu2 }
 0x485   : > { %v2886_v56 = vpop.f32.mrf.mxu3  ;;  %v2977_v9 = vpop.f32.mrf.mxu0 }
 0x486   : > { %v2887_v50 = vadd.f32 %v2886_v56, %v2797_v25 }
 0x487   : > { %v3066_v27 = vpop.f32.mrf.mxu1 }
 0x488   : > { %3249 = vst [vmem:[%s4479_s6 + $0x4f8] sm:$0xff] %v2887_v50  ;;  %v3067_v51 = vadd.f32 %v3066_v27, %v2977_v9 }
 0x48a   : > { %3257 = vst.msk [vmem:[%s4479_s6 + $0x538] sm:$0xff] %vm3095_vm1, %v3067_v51 }
 0x48c   : > { %v2799_v58 = vpop.f32.mrf.mxu2 }
 0x48d   : > { %v2888_v52 = vpop.f32.mrf.mxu3  ;;  %v2980_v40 = vpop.f32.mrf.mxu0 }
 0x48e   : > { %v2889_v53 = vadd.f32 %v2888_v52, %v2799_v58 }
 0x48f   : > { %v3069_v54 = vpop.f32.mrf.mxu1 }
 0x490   : > { %3256 = vst [vmem:[%s4479_s6 + $0x530] sm:$0xff] %v2889_v53  ;;  %v3070_v55 = vadd.f32 %v3069_v54, %v2980_v40 }
 0x492   : > { %3264 = vst.msk [vmem:[%s4479_s6 + $0x570] sm:$0xff] %vm3095_vm1, %v3070_v55 }
 0x494   : > { %v2802_v61 = vpop.f32.mrf.mxu2 }
 0x495   : > { %v2891_v41 = vpop.f32.mrf.mxu3  ;;  %v2982_v6 = vpop.f32.mrf.mxu0 }
 0x496   : > { %v2892_v42 = vadd.f32 %v2891_v41, %v2802_v61 }
 0x497   : > { %v3071_v63 = vpop.f32.mrf.mxu1 }
 0x498   : > { %3263 = vst [vmem:[%s4479_s6 + $0x568] sm:$0xff] %v2892_v42  ;;  %v3072_v7 = vadd.f32 %v3071_v63, %v2982_v6 }
 0x49a   : > { %3271 = vst.msk [vmem:[%s4479_s6 + $0x5a8] sm:$0xff] %vm3095_vm1, %v3072_v7 }
 0x49c   : > { %v2804_v43 = vpop.f32.mrf.mxu2 }
 0x49d   : > { %v2893_v24 = vpop.f32.mrf.mxu3  ;;  %v2985_v11 = vpop.f32.mrf.mxu0 }
 0x49e   : > { %v2894_v10 = vadd.f32 %v2893_v24, %v2804_v43 }
 0x49f   : > { %v3074_v37 = vpop.f32.mrf.mxu1 }
 0x4a0   : > { %3270 = vst [vmem:[%s4479_s6 + $0x5a0] sm:$0xff] %v2894_v10  ;;  %v3075_v26 = vadd.f32 %v3074_v37, %v2985_v11 }
 0x4a2   : > { %3278 = vst.msk [vmem:[%s4479_s6 + $0x5e0] sm:$0xff] %vm3095_vm1, %v3075_v26 }
 0x4a4   : > { %v2807_v12 = vpop.f32.mrf.mxu2 }
 0x4a5   : > { %v2896_v13 = vpop.f32.mrf.mxu3  ;;  %v2987_v39 = vpop.f32.mrf.mxu0 }
 0x4a6   : > { %v2897_v14 = vadd.f32 %v2896_v13, %v2807_v12 }
 0x4a7   : > { %v3076_v1 = vpop.f32.mrf.mxu1 }
 0x4a8   : > { %3277 = vst [vmem:[%s4479_s6 + $0x5d8] sm:$0xff] %v2897_v14  ;;  %v3077_v15 = vadd.f32 %v3076_v1, %v2987_v39 }
 0x4aa   : > { %3285 = vst.msk [vmem:[%s4479_s6 + $0x618] sm:$0xff] %vm3095_vm1, %v3077_v15 }
 0x4ac   : > { %v2809_v0 = vpop.f32.mrf.mxu2 }
 0x4ad   : > { %v2898_v16 = vpop.f32.mrf.mxu3  ;;  %v2990_v17 = vpop.f32.mrf.mxu0 }
 0x4ae   : > { %v2899_v5 = vadd.f32 %v2898_v16, %v2809_v0 }
 0x4af   : > { %v3079_v2 = vpop.f32.mrf.mxu1 }
 0x4b0   : > { %3284 = vst [vmem:[%s4479_s6 + $0x610] sm:$0xff] %v2899_v5  ;;  %v3080_v60 = vadd.f32 %v3079_v2, %v2990_v17 }
 0x4b2   : > { %3292 = vst.msk [vmem:[%s4479_s6 + $0x650] sm:$0xff] %vm3095_vm1, %v3080_v60 }
 0x4b4   : > { %v2812_v18 = vpop.f32.mrf.mxu2 }
 0x4b5   : > { %v2901_v19 = vpop.f32.mrf.mxu3  ;;  %v2992_v20 = vpop.f32.mrf.mxu0 }
 0x4b6   : > { %v2902_v62 = vadd.f32 %v2901_v19, %v2812_v18 }
 0x4b7   : > { %v3081_v29 = vpop.f32.mrf.mxu1 }
 0x4b8   : > { %3291 = vst [vmem:[%s4479_s6 + $0x648] sm:$0xff] %v2902_v62  ;;  %v3082_v21 = vadd.f32 %v3081_v29, %v2992_v20 }
 0x4ba   : > { %3299 = vst.msk [vmem:[%s4479_s6 + $0x688] sm:$0xff] %vm3095_vm1, %v3082_v21 }
 0x4bc   : > { %v2814_v22 = vpop.f32.mrf.mxu2 }
 0x4bd   : > { %v2903_v23 = vpop.f32.mrf.mxu3  ;;  %v2995_v32 = vpop.f32.mrf.mxu0 }
 0x4be   : > { %v2904_v31 = vadd.f32 %v2903_v23, %v2814_v22 }
 0x4bf   : > { %v3084_v33 = vpop.f32.mrf.mxu1 }
 0x4c0   : > { %3298 = vst [vmem:[%s4479_s6 + $0x680] sm:$0xff] %v2904_v31  ;;  %v3085_v28 = vadd.f32 %v3084_v33, %v2995_v32 }
 0x4c2   : > { %3306 = vst.msk [vmem:[%s4479_s6 + $0x6c0] sm:$0xff] %vm3095_vm1, %v3085_v28 }
 0x4c4   : > { %v2817_v34 = vpop.f32.mrf.mxu2 }
 0x4c5   : > { %v2906_v36 = vpop.f32.mrf.mxu3  ;;  %v2997_v30 = vpop.f32.mrf.mxu0 }
 0x4c6   : > { %v2907_v35 = vadd.f32 %v2906_v36, %v2817_v34 }
 0x4c7   : > { %v3086_v57 = vpop.f32.mrf.mxu1 }
 0x4c8   : > { %3305 = vst [vmem:[%s4479_s6 + $0x6b8] sm:$0xff] %v2907_v35  ;;  %v3087_v38 = vadd.f32 %v3086_v57, %v2997_v30 }
 0x4ca   : > { %3313 = vst.msk [vmem:[%s4479_s6 + $0x6f8] sm:$0xff] %vm3095_vm1, %v3087_v38 }
 0x4cc   : > { %v2819_v3 = vpop.f32.mrf.mxu2 }
 0x4cd   : > { %v2908_v44 = vpop.f32.mrf.mxu3 }
 0x4ce   : > { %v2909_v59 = vadd.f32 %v2908_v44, %v2819_v3 }
 0x4d0   : > { %3312 = vst [vmem:[%s4479_s6 + $0x6f0] sm:$0xff] %v2909_v59 }
 0x4d1 PF: > { %s15_s16 = sadd.s32 1, %s4371_s16   ;;  %s5823_s9 = smov %s4347_s10 }
 0x4d2   : > { %p12_p2 = scmp.ge.s32.totalorder %s15_s16, 6   ;;  %s5824_s10 = smov %s4351_s11 }
 0x4d3   : > { %s5825_s11 = smov %s4456_s3  ;;  %s5826_s12 = smov %s4363_s14 }
 0x4d4   : > { %s5827_s13 = smov %s4367_s15  ;;  %s5828_s14 = smov %s5831_s18 }
 0x4d5   : > { %s5829_s15 = smov %s5835_s19  ;;  %14 = sbr.rel (!%p12_p2) target bundleno = 5 (0x5), region = 75 }
 0x4da   :  { %3352 = vsyncpa [#allocation4], 1 }
 0x4db   :  { %3354 = vsyncpa [#allocation4 + $0x1], 1 }

</bundles_post_ra>
